<compile_context>
chip_gen: v6e
topology: v6e:2x2x1
jax: 0.10.0
libtpu: 0.0.40
codegen_flags: <defaults>
</compile_context>

<pallas_src>
import functools
import math

import jax
import jax.numpy as jnp
from jax import lax
from jax.experimental import pallas as pl
from jax.experimental.pallas import tpu as pltpu

_LANE = 128
_SUBLANE = 8


def _round_up(n, m):
    return (n + m - 1) // m * m


def _gelu(x):
    # exact (erf-based) GELU == torch.nn.GELU() default
    return 0.5 * x * (1.0 + lax.erf(x / jnp.sqrt(2.0).astype(x.dtype)))


def _make_kernel(num_layers, T, Bp, Hp):
    L = num_layers

    def kernel(x_ref, *refs):
        lstm_refs = refs[:3 * L]                  # per layer: (W_ih, W_hh, b)
        fc_refs = refs[3 * L:3 * L + 8]           # w1,b1,w2,b2,w3,b3,w4,b4
        o_ref = refs[3 * L + 8]
        ih_ref = refs[3 * L + 9]                  # (T*Bp, 4*Hp) f32 scratch
        hseq_ref = refs[3 * L + 10]               # (T*Bp, Hp)  f32 scratch

        def run_layer(l):
            """Serial recurrence over T for layer l; ih_ref already holds
            inputs@W_ih + b for every time step.  Writes the layer's h sequence
            into hseq_ref and returns the final (h, c)."""
            w_hh_ref = lstm_refs[3 * l + 1]
            zeros = jnp.zeros((Bp, Hp), jnp.float32)

            def step(t, carry):
                h, c = carry
                off = pl.multiple_of(t * Bp, Bp)
                # Only the K=Hp recurrence matmul is on the serial path.
                gates = ih_ref[pl.ds(off, Bp), :] + jnp.dot(
                    h.astype(jnp.bfloat16), w_hh_ref[...],
                    preferred_element_type=jnp.float32)
                # PyTorch gate order i, f, g, o; each gate occupies its own
                # 128-lane block -> full-vreg, lane-aligned slices.
                i_g = jax.nn.sigmoid(gates[:, 0 * Hp:1 * Hp])
                f_g = jax.nn.sigmoid(gates[:, 1 * Hp:2 * Hp])
                g_g = jnp.tanh(gates[:, 2 * Hp:3 * Hp])
                o_g = jax.nn.sigmoid(gates[:, 3 * Hp:4 * Hp])
                c_new = f_g * c + i_g * g_g
                h_new = o_g * jnp.tanh(c_new)
                hseq_ref[pl.ds(off, Bp), :] = h_new
                return (h_new, c_new)

            return lax.fori_loop(0, T, step, (zeros, zeros), unroll=True)

        # ---- layer 0: amortize the input-side matmul over all T*Bp rows ----
        ih_ref[...] = (
            jnp.dot(x_ref[...].astype(jnp.bfloat16), lstm_refs[0][...],
                    preferred_element_type=jnp.float32)
            + lstm_refs[2][...])
        h_top, _ = run_layer(0)

        # ---- layers 1..L-1: input is the stored h sequence of layer l-1 ----
        for l in range(1, L):
            ih_ref[...] = (
                jnp.dot(hseq_ref[...].astype(jnp.bfloat16), lstm_refs[3 * l][...],
                        preferred_element_type=jnp.float32)
                + lstm_refs[3 * l + 2][...])
            h_top, _ = run_layer(l)

        # ---- FC head on out[:, -1, :] of the top layer ----
        w1, b1, w2, b2, w3, b3, w4, b4 = fc_refs
        y = _gelu(jnp.dot(h_top.astype(jnp.bfloat16), w1[...],
                          preferred_element_type=jnp.float32) + b1[...])
        y = _gelu(jnp.dot(y.astype(jnp.bfloat16), w2[...],
                          preferred_element_type=jnp.float32) + b2[...])
        y = _gelu(jnp.dot(y.astype(jnp.bfloat16), w3[...],
                          preferred_element_type=jnp.float32) + b3[...])
        y = jnp.dot(y.astype(jnp.bfloat16), w4[...],
                    preferred_element_type=jnp.float32) + b4[...]
        o_ref[...] = y.astype(o_ref.dtype)

    return kernel


def pack_params(params, *, input_size, hidden_size, num_layers, output_size):
    """One-time packing: pad to 128 lanes per gate / per FC width, cast matmul
    weights to bf16, keep biases f32.  Done OUTSIDE the per-call path."""
    H = hidden_size
    Hp = _round_up(H, _LANE)
    Ip = _round_up(input_size, _LANE)
    packed = []
    for l, (wih_t, whh_t, bias) in enumerate(params["lstm"]):
        in_dim = input_size if l == 0 else H
        in_pad = Ip if l == 0 else Hp
        W_ih = jnp.zeros((in_pad, 4 * Hp), jnp.float32)
        W_hh = jnp.zeros((Hp, 4 * Hp), jnp.float32)
        bp = jnp.zeros((1, 4 * Hp), jnp.float32)
        for g in range(4):
            W_ih = W_ih.at[:in_dim, g * Hp:g * Hp + H].set(wih_t[:, g * H:(g + 1) * H])
            W_hh = W_hh.at[:H, g * Hp:g * Hp + H].set(whh_t[:, g * H:(g + 1) * H])
            bp = bp.at[:, g * Hp:g * Hp + H].set(bias[:, g * H:(g + 1) * H])
        packed += [W_ih.astype(jnp.bfloat16), W_hh.astype(jnp.bfloat16), bp]

    # FC head, zero-padded to lane multiples (padded lanes stay exactly 0
    # through exact GELU, so they never contaminate real outputs).
    fc_dims = [(H, 64), (64, 80), (80, 160), (160, output_size)]
    prev_pad = Hp
    for idx, (fin, fout) in enumerate(fc_dims):
        w_t = params["fc"][2 * idx]
        b = params["fc"][2 * idx + 1]
        fout_pad = _round_up(fout, _LANE)
        Wp = jnp.zeros((prev_pad, fout_pad), jnp.float32).at[:fin, :fout].set(w_t)
        bpad = jnp.zeros((1, fout_pad), jnp.float32).at[:, :fout].set(b)
        packed += [Wp.astype(jnp.bfloat16), bpad]
        prev_pad = fout_pad
    return tuple(packed)


@functools.partial(jax.jit,
                   static_argnames=("num_layers", "hidden_size", "output_size"))
def mynet_forward(x, packed, *, num_layers, hidden_size, output_size):
    """x: (B, T, input_size) batch_first, like the PyTorch module.
    `packed` comes from pack_params (called once)."""
    B, T, I = x.shape
    Hp = _round_up(hidden_size, _LANE)
    Ip = _round_up(I, _LANE)
    Bp = _round_up(B, _SUBLANE)
    out_pad = _round_up(output_size, _LANE)

    # Time-major, pad batch (sublanes) / feature (lanes), flatten (T, Bp)->rows
    # so row t*Bp + b corresponds to (time t, batch b).
    xt = jnp.transpose(x, (1, 0, 2)).astype(jnp.float32)            # (T, B, I)
    xt = jnp.pad(xt, ((0, 0), (0, Bp - B), (0, Ip - I)))            # (T, Bp, Ip)
    xt = xt.reshape(T * Bp, Ip)

    kernel = _make_kernel(num_layers, T, Bp, Hp)
    vmem = pl.BlockSpec(memory_space=pltpu.MemorySpace.VMEM)
    operands = (xt,) + tuple(packed)
    out = pl.pallas_call(
        kernel,
        out_shape=jax.ShapeDtypeStruct((Bp, out_pad), jnp.float32),
        in_specs=[vmem] * len(operands),
        out_specs=vmem,
        scratch_shapes=[
            pltpu.VMEM((T * Bp, 4 * Hp), jnp.float32),   # precomputed ih + b
            pltpu.VMEM((T * Bp, Hp), jnp.float32),       # h sequence of a layer
        ],
        compiler_params=pltpu.CompilerParams(vmem_limit_bytes=32 * 1024 * 1024),
    )(*operands)
    return out[:B, :output_size]


def init_params(key, input_size, hidden_size, num_layers, output_size):
    """Deterministic synthetic parameters with PyTorch-style uniform init.
    Weights are stored transposed ((in_features, out_features)) so kernels
    compute y = x @ W + b directly."""
    H = hidden_size
    params = {"lstm": [], "fc": []}
    k = 1.0 / math.sqrt(H)
    for l in range(num_layers):
        in_dim = input_size if l == 0 else H
        key, k1, k2, k3, k4 = jax.random.split(key, 5)
        wih_t = jax.random.uniform(k1, (in_dim, 4 * H), jnp.float32, -k, k)
        whh_t = jax.random.uniform(k2, (H, 4 * H), jnp.float32, -k, k)
        b_ih = jax.random.uniform(k3, (1, 4 * H), jnp.float32, -k, k)
        b_hh = jax.random.uniform(k4, (1, 4 * H), jnp.float32, -k, k)
        params["lstm"].append((wih_t, whh_t, b_ih + b_hh))

    fc_dims = [(H, 64), (64, 80), (80, 160), (160, output_size)]
    for (fin, fout) in fc_dims:
        key, k1, k2 = jax.random.split(key, 3)
        bound = 1.0 / math.sqrt(fin)
        w_t = jax.random.uniform(k1, (fin, fout), jnp.float32, -bound, bound)
        b = jax.random.uniform(k2, (1, fout), jnp.float32, -bound, bound)
        params["fc"].extend([w_t, b])
    return params


def ref_forward(x, params, *, num_layers, hidden_size):
    """Pure-JAX f32 reference matching the PyTorch forward."""
    B, T, _ = x.shape
    H = hidden_size
    h = [jnp.zeros((B, H), jnp.float32) for _ in range(num_layers)]
    c = [jnp.zeros((B, H), jnp.float32) for _ in range(num_layers)]
    for t in range(T):
        inp = x[:, t, :]
        for l in range(num_layers):
            wih, whh, b = params["lstm"][l]
            gates = inp @ wih + h[l] @ whh + b
            i_g = jax.nn.sigmoid(gates[:, :H])
            f_g = jax.nn.sigmoid(gates[:, H:2 * H])
            g_g = jnp.tanh(gates[:, 2 * H:3 * H])
            o_g = jax.nn.sigmoid(gates[:, 3 * H:])
            c[l] = f_g * c[l] + i_g * g_g
            h[l] = o_g * jnp.tanh(c[l])
            inp = h[l]
    w1, b1, w2, b2, w3, b3, w4, b4 = params["fc"]
    y = jax.nn.gelu(h[-1] @ w1 + b1, approximate=False)
    y = jax.nn.gelu(y @ w2 + b2, approximate=False)
    y = jax.nn.gelu(y @ w3 + b3, approximate=False)
    return y @ w4 + b4


if __name__ == "__main__":
    B, T = 2, 8
    input_size, hidden_size, num_layers, output_size = 4, 32, 2, 8

    key = jax.random.PRNGKey(0)
    key, kx = jax.random.split(key)
    x = jax.random.normal(kx, (B, T, input_size), jnp.float32)
    params = init_params(key, input_size, hidden_size, num_layers, output_size)

    # One-time weight packing (outside the per-inference path).
    packed = pack_params(params, input_size=input_size, hidden_size=hidden_size,
                         num_layers=num_layers, output_size=output_size)

    out = mynet_forward(x, packed, num_layers=num_layers,
                        hidden_size=hidden_size, output_size=output_size)
    out = jax.block_until_ready(out)

    ref = ref_forward(x, params, num_layers=num_layers, hidden_size=hidden_size)
    assert out.shape == (B, output_size)
    # bf16 MXU operands vs. f32 reference -> slightly wider tolerance.
    assert jnp.allclose(out, ref, rtol=2e-2, atol=2e-2), "mismatch vs JAX reference"

    print("KERNEL_OK")
</pallas_src>

<mosaic_0001>
module attributes {stable_mosaic.version = 11 : i64} {
  func.func @kernel(%arg0: memref<64x128xf32, #tpu.memory_space<vmem>>, %arg1: memref<128x512xbf16, #tpu.memory_space<vmem>>, %arg2: memref<128x512xbf16, #tpu.memory_space<vmem>>, %arg3: memref<1x512xf32, #tpu.memory_space<vmem>>, %arg4: memref<128x512xbf16, #tpu.memory_space<vmem>>, %arg5: memref<128x512xbf16, #tpu.memory_space<vmem>>, %arg6: memref<1x512xf32, #tpu.memory_space<vmem>>, %arg7: memref<128x128xbf16, #tpu.memory_space<vmem>>, %arg8: memref<1x128xf32, #tpu.memory_space<vmem>>, %arg9: memref<128x128xbf16, #tpu.memory_space<vmem>>, %arg10: memref<1x128xf32, #tpu.memory_space<vmem>>, %arg11: memref<128x256xbf16, #tpu.memory_space<vmem>>, %arg12: memref<1x256xf32, #tpu.memory_space<vmem>>, %arg13: memref<256x128xbf16, #tpu.memory_space<vmem>>, %arg14: memref<1x128xf32, #tpu.memory_space<vmem>>, %arg15: memref<8x128xf32, #tpu.memory_space<vmem>>, %arg16: memref<64x512xf32, #tpu.memory_space<vmem>>, %arg17: memref<64x128xf32, #tpu.memory_space<vmem>>) attributes {dimension_semantics = [], scalar_prefetch = 0 : i64, scratch_operands = 2 : i64, tpu.core_type = #tpu.core_type<tc>} {
    %c0 = arith.constant 0 : index
    %c0_0 = arith.constant 0 : index
    %0 = vector.load %arg0[%c0, %c0_0] : memref<64x128xf32, #tpu.memory_space<vmem>>, vector<64x128xf32>
    %1 = arith.truncf %0 : vector<64x128xf32> to vector<64x128xbf16>
    %c0_1 = arith.constant 0 : index
    %c0_2 = arith.constant 0 : index
    %2 = vector.load %arg1[%c0_1, %c0_2] : memref<128x512xbf16, #tpu.memory_space<vmem>>, vector<128x512xbf16>
    %cst = arith.constant dense<0.000000e+00> : vector<64x512xf32>
    %3 = tpu.matmul %1, %2, %cst {dimension_numbers = #tpu.dot_dimension_numbers<[1], [0], [0], [1], [0, 0, 1, 1], [], []>} : vector<64x128xbf16>, vector<128x512xbf16>, vector<64x512xf32> -> vector<64x512xf32>
    %c0_3 = arith.constant 0 : index
    %c0_4 = arith.constant 0 : index
    %4 = vector.load %arg3[%c0_3, %c0_4] : memref<1x512xf32, #tpu.memory_space<vmem>>, vector<1x512xf32>
    %5 = vector.broadcast %4 : vector<1x512xf32> to vector<64x512xf32>
    %6 = arith.addf %3, %5 : vector<64x512xf32>
    %c0_5 = arith.constant 0 : index
    %c0_6 = arith.constant 0 : index
    %7 = vector.load %arg16[%c0_5, %c0_6] : memref<64x512xf32, #tpu.memory_space<vmem>>, vector<64x512xf32>
    tpu.vector_store %arg16[%c0_5, %c0_6], %6 {strides = array<i32>} : memref<64x512xf32, #tpu.memory_space<vmem>>, vector<64x512xf32>,
    %cst_7 = arith.constant 0.000000e+00 : f32
    %8 = vector.broadcast %cst_7 : f32 to vector<8x128xf32>
    %c0_i32 = arith.constant 0 : i32
    %c8_i32 = arith.constant 8 : i32
    %9 = arith.muli %c0_i32, %c8_i32 : i32
    %10 = tpu.assume_multiple %9, 8 : i32
    %11 = arith.index_cast %10 : i32 to index
    %c0_8 = arith.constant 0 : index
    %12 = vector.load %arg16[%11, %c0_8] : memref<64x512xf32, #tpu.memory_space<vmem>>, vector<8x512xf32>
    %13 = arith.truncf %8 : vector<8x128xf32> to vector<8x128xbf16>
    %c0_9 = arith.constant 0 : index
    %c0_10 = arith.constant 0 : index
    %14 = vector.load %arg2[%c0_9, %c0_10] : memref<128x512xbf16, #tpu.memory_space<vmem>>, vector<128x512xbf16>
    %cst_11 = arith.constant dense<0.000000e+00> : vector<8x512xf32>
    %15 = tpu.matmul %13, %14, %cst_11 {dimension_numbers = #tpu.dot_dimension_numbers<[1], [0], [0], [1], [0, 0, 1, 1], [], []>} : vector<8x128xbf16>, vector<128x512xbf16>, vector<8x512xf32> -> vector<8x512xf32>
    %16 = arith.addf %12, %15 : vector<8x512xf32>
    %17 = vector.extract_strided_slice %16 {offsets = [0, 0], sizes = [8, 128], strides = [1, 1]} : vector<8x512xf32> to vector<8x128xf32>
    %18 = arith.negf %17 : vector<8x128xf32>
    %19 = math.exp %18 : vector<8x128xf32>
    %cst_12 = arith.constant 1.000000e+00 : f32
    %20 = vector.broadcast %cst_12 : f32 to vector<8x128xf32>
    %21 = arith.addf %20, %19 : vector<8x128xf32>
    %22 = arith.divf %20, %21 : vector<8x128xf32>
    %23 = vector.extract_strided_slice %16 {offsets = [0, 128], sizes = [8, 128], strides = [1, 1]} : vector<8x512xf32> to vector<8x128xf32>
    %24 = arith.negf %23 : vector<8x128xf32>
    %25 = math.exp %24 : vector<8x128xf32>
    %cst_13 = arith.constant 1.000000e+00 : f32
    %26 = vector.broadcast %cst_13 : f32 to vector<8x128xf32>
    %27 = arith.addf %26, %25 : vector<8x128xf32>
    %28 = arith.divf %26, %27 : vector<8x128xf32>
    %29 = vector.extract_strided_slice %16 {offsets = [0, 256], sizes = [8, 128], strides = [1, 1]} : vector<8x512xf32> to vector<8x128xf32>
    %30 = math.tanh %29 : vector<8x128xf32>
    %31 = vector.extract_strided_slice %16 {offsets = [0, 384], sizes = [8, 128], strides = [1, 1]} : vector<8x512xf32> to vector<8x128xf32>
    %32 = arith.negf %31 : vector<8x128xf32>
    %33 = math.exp %32 : vector<8x128xf32>
    %cst_14 = arith.constant 1.000000e+00 : f32
    %34 = vector.broadcast %cst_14 : f32 to vector<8x128xf32>
    %35 = arith.addf %34, %33 : vector<8x128xf32>
    %36 = arith.divf %34, %35 : vector<8x128xf32>
    %37 = arith.mulf %28, %8 : vector<8x128xf32>
    %38 = arith.mulf %22, %30 : vector<8x128xf32>
    %39 = arith.addf %37, %38 : vector<8x128xf32>
    %40 = math.tanh %39 : vector<8x128xf32>
    %41 = arith.mulf %36, %40 : vector<8x128xf32>
    %42 = arith.index_cast %10 : i32 to index
    %c0_15 = arith.constant 0 : index
    %43 = vector.load %arg17[%42, %c0_15] : memref<64x128xf32, #tpu.memory_space<vmem>>, vector<8x128xf32>
    tpu.vector_store %arg17[%42, %c0_15], %41 {strides = array<i32>} : memref<64x128xf32, #tpu.memory_space<vmem>>, vector<8x128xf32>,
    %c1_i32 = arith.constant 1 : i32
    %c8_i32_16 = arith.constant 8 : i32
    %44 = arith.muli %c1_i32, %c8_i32_16 : i32
    %45 = tpu.assume_multiple %44, 8 : i32
    %46 = arith.index_cast %45 : i32 to index
    %c0_17 = arith.constant 0 : index
    %47 = vector.load %arg16[%46, %c0_17] : memref<64x512xf32, #tpu.memory_space<vmem>>, vector<8x512xf32>
    %48 = arith.truncf %41 : vector<8x128xf32> to vector<8x128xbf16>
    %c0_18 = arith.constant 0 : index
    %c0_19 = arith.constant 0 : index
    %49 = vector.load %arg2[%c0_18, %c0_19] : memref<128x512xbf16, #tpu.memory_space<vmem>>, vector<128x512xbf16>
    %cst_20 = arith.constant dense<0.000000e+00> : vector<8x512xf32>
    %50 = tpu.matmul %48, %49, %cst_20 {dimension_numbers = #tpu.dot_dimension_numbers<[1], [0], [0], [1], [0, 0, 1, 1], [], []>} : vector<8x128xbf16>, vector<128x512xbf16>, vector<8x512xf32> -> vector<8x512xf32>
    %51 = arith.addf %47, %50 : vector<8x512xf32>
    %52 = vector.extract_strided_slice %51 {offsets = [0, 0], sizes = [8, 128], strides = [1, 1]} : vector<8x512xf32> to vector<8x128xf32>
    %53 = arith.negf %52 : vector<8x128xf32>
    %54 = math.exp %53 : vector<8x128xf32>
    %cst_21 = arith.constant 1.000000e+00 : f32
    %55 = vector.broadcast %cst_21 : f32 to vector<8x128xf32>
    %56 = arith.addf %55, %54 : vector<8x128xf32>
    %57 = arith.divf %55, %56 : vector<8x128xf32>
    %58 = vector.extract_strided_slice %51 {offsets = [0, 128], sizes = [8, 128], strides = [1, 1]} : vector<8x512xf32> to vector<8x128xf32>
    %59 = arith.negf %58 : vector<8x128xf32>
    %60 = math.exp %59 : vector<8x128xf32>
    %cst_22 = arith.constant 1.000000e+00 : f32
    %61 = vector.broadcast %cst_22 : f32 to vector<8x128xf32>
    %62 = arith.addf %61, %60 : vector<8x128xf32>
    %63 = arith.divf %61, %62 : vector<8x128xf32>
    %64 = vector.extract_strided_slice %51 {offsets = [0, 256], sizes = [8, 128], strides = [1, 1]} : vector<8x512xf32> to vector<8x128xf32>
    %65 = math.tanh %64 : vector<8x128xf32>
    %66 = vector.extract_strided_slice %51 {offsets = [0, 384], sizes = [8, 128], strides = [1, 1]} : vector<8x512xf32> to vector<8x128xf32>
    %67 = arith.negf %66 : vector<8x128xf32>
    %68 = math.exp %67 : vector<8x128xf32>
    %cst_23 = arith.constant 1.000000e+00 : f32
    %69 = vector.broadcast %cst_23 : f32 to vector<8x128xf32>
    %70 = arith.addf %69, %68 : vector<8x128xf32>
    %71 = arith.divf %69, %70 : vector<8x128xf32>
    %72 = arith.mulf %63, %39 : vector<8x128xf32>
    %73 = arith.mulf %57, %65 : vector<8x128xf32>
    %74 = arith.addf %72, %73 : vector<8x128xf32>
    %75 = math.tanh %74 : vector<8x128xf32>
    %76 = arith.mulf %71, %75 : vector<8x128xf32>
    %77 = arith.index_cast %45 : i32 to index
    %c0_24 = arith.constant 0 : index
    %78 = vector.load %arg17[%77, %c0_24] : memref<64x128xf32, #tpu.memory_space<vmem>>, vector<8x128xf32>
    tpu.vector_store %arg17[%77, %c0_24], %76 {strides = array<i32>} : memref<64x128xf32, #tpu.memory_space<vmem>>, vector<8x128xf32>,
    %c2_i32 = arith.constant 2 : i32
    %c8_i32_25 = arith.constant 8 : i32
    %79 = arith.muli %c2_i32, %c8_i32_25 : i32
    %80 = tpu.assume_multiple %79, 8 : i32
    %81 = arith.index_cast %80 : i32 to index
    %c0_26 = arith.constant 0 : index
    %82 = vector.load %arg16[%81, %c0_26] : memref<64x512xf32, #tpu.memory_space<vmem>>, vector<8x512xf32>
    %83 = arith.truncf %76 : vector<8x128xf32> to vector<8x128xbf16>
    %c0_27 = arith.constant 0 : index
    %c0_28 = arith.constant 0 : index
    %84 = vector.load %arg2[%c0_27, %c0_28] : memref<128x512xbf16, #tpu.memory_space<vmem>>, vector<128x512xbf16>
    %cst_29 = arith.constant dense<0.000000e+00> : vector<8x512xf32>
    %85 = tpu.matmul %83, %84, %cst_29 {dimension_numbers = #tpu.dot_dimension_numbers<[1], [0], [0], [1], [0, 0, 1, 1], [], []>} : vector<8x128xbf16>, vector<128x512xbf16>, vector<8x512xf32> -> vector<8x512xf32>
    %86 = arith.addf %82, %85 : vector<8x512xf32>
    %87 = vector.extract_strided_slice %86 {offsets = [0, 0], sizes = [8, 128], strides = [1, 1]} : vector<8x512xf32> to vector<8x128xf32>
    %88 = arith.negf %87 : vector<8x128xf32>
    %89 = math.exp %88 : vector<8x128xf32>
    %cst_30 = arith.constant 1.000000e+00 : f32
    %90 = vector.broadcast %cst_30 : f32 to vector<8x128xf32>
    %91 = arith.addf %90, %89 : vector<8x128xf32>
    %92 = arith.divf %90, %91 : vector<8x128xf32>
    %93 = vector.extract_strided_slice %86 {offsets = [0, 128], sizes = [8, 128], strides = [1, 1]} : vector<8x512xf32> to vector<8x128xf32>
    %94 = arith.negf %93 : vector<8x128xf32>
    %95 = math.exp %94 : vector<8x128xf32>
    %cst_31 = arith.constant 1.000000e+00 : f32
    %96 = vector.broadcast %cst_31 : f32 to vector<8x128xf32>
    %97 = arith.addf %96, %95 : vector<8x128xf32>
    %98 = arith.divf %96, %97 : vector<8x128xf32>
    %99 = vector.extract_strided_slice %86 {offsets = [0, 256], sizes = [8, 128], strides = [1, 1]} : vector<8x512xf32> to vector<8x128xf32>
    %100 = math.tanh %99 : vector<8x128xf32>
    %101 = vector.extract_strided_slice %86 {offsets = [0, 384], sizes = [8, 128], strides = [1, 1]} : vector<8x512xf32> to vector<8x128xf32>
    %102 = arith.negf %101 : vector<8x128xf32>
    %103 = math.exp %102 : vector<8x128xf32>
    %cst_32 = arith.constant 1.000000e+00 : f32
    %104 = vector.broadcast %cst_32 : f32 to vector<8x128xf32>
    %105 = arith.addf %104, %103 : vector<8x128xf32>
    %106 = arith.divf %104, %105 : vector<8x128xf32>
    %107 = arith.mulf %98, %74 : vector<8x128xf32>
    %108 = arith.mulf %92, %100 : vector<8x128xf32>
    %109 = arith.addf %107, %108 : vector<8x128xf32>
    %110 = math.tanh %109 : vector<8x128xf32>
    %111 = arith.mulf %106, %110 : vector<8x128xf32>
    %112 = arith.index_cast %80 : i32 to index
    %c0_33 = arith.constant 0 : index
    %113 = vector.load %arg17[%112, %c0_33] : memref<64x128xf32, #tpu.memory_space<vmem>>, vector<8x128xf32>
    tpu.vector_store %arg17[%112, %c0_33], %111 {strides = array<i32>} : memref<64x128xf32, #tpu.memory_space<vmem>>, vector<8x128xf32>,
    %c3_i32 = arith.constant 3 : i32
    %c8_i32_34 = arith.constant 8 : i32
    %114 = arith.muli %c3_i32, %c8_i32_34 : i32
    %115 = tpu.assume_multiple %114, 8 : i32
    %116 = arith.index_cast %115 : i32 to index
    %c0_35 = arith.constant 0 : index
    %117 = vector.load %arg16[%116, %c0_35] : memref<64x512xf32, #tpu.memory_space<vmem>>, vector<8x512xf32>
    %118 = arith.truncf %111 : vector<8x128xf32> to vector<8x128xbf16>
    %c0_36 = arith.constant 0 : index
    %c0_37 = arith.constant 0 : index
    %119 = vector.load %arg2[%c0_36, %c0_37] : memref<128x512xbf16, #tpu.memory_space<vmem>>, vector<128x512xbf16>
    %cst_38 = arith.constant dense<0.000000e+00> : vector<8x512xf32>
    %120 = tpu.matmul %118, %119, %cst_38 {dimension_numbers = #tpu.dot_dimension_numbers<[1], [0], [0], [1], [0, 0, 1, 1], [], []>} : vector<8x128xbf16>, vector<128x512xbf16>, vector<8x512xf32> -> vector<8x512xf32>
    %121 = arith.addf %117, %120 : vector<8x512xf32>
    %122 = vector.extract_strided_slice %121 {offsets = [0, 0], sizes = [8, 128], strides = [1, 1]} : vector<8x512xf32> to vector<8x128xf32>
    %123 = arith.negf %122 : vector<8x128xf32>
    %124 = math.exp %123 : vector<8x128xf32>
    %cst_39 = arith.constant 1.000000e+00 : f32
    %125 = vector.broadcast %cst_39 : f32 to vector<8x128xf32>
    %126 = arith.addf %125, %124 : vector<8x128xf32>
    %127 = arith.divf %125, %126 : vector<8x128xf32>
    %128 = vector.extract_strided_slice %121 {offsets = [0, 128], sizes = [8, 128], strides = [1, 1]} : vector<8x512xf32> to vector<8x128xf32>
    %129 = arith.negf %128 : vector<8x128xf32>
    %130 = math.exp %129 : vector<8x128xf32>
    %cst_40 = arith.constant 1.000000e+00 : f32
    %131 = vector.broadcast %cst_40 : f32 to vector<8x128xf32>
    %132 = arith.addf %131, %130 : vector<8x128xf32>
    %133 = arith.divf %131, %132 : vector<8x128xf32>
    %134 = vector.extract_strided_slice %121 {offsets = [0, 256], sizes = [8, 128], strides = [1, 1]} : vector<8x512xf32> to vector<8x128xf32>
    %135 = math.tanh %134 : vector<8x128xf32>
    %136 = vector.extract_strided_slice %121 {offsets = [0, 384], sizes = [8, 128], strides = [1, 1]} : vector<8x512xf32> to vector<8x128xf32>
    %137 = arith.negf %136 : vector<8x128xf32>
    %138 = math.exp %137 : vector<8x128xf32>
    %cst_41 = arith.constant 1.000000e+00 : f32
    %139 = vector.broadcast %cst_41 : f32 to vector<8x128xf32>
    %140 = arith.addf %139, %138 : vector<8x128xf32>
    %141 = arith.divf %139, %140 : vector<8x128xf32>
    %142 = arith.mulf %133, %109 : vector<8x128xf32>
    %143 = arith.mulf %127, %135 : vector<8x128xf32>
    %144 = arith.addf %142, %143 : vector<8x128xf32>
    %145 = math.tanh %144 : vector<8x128xf32>
    %146 = arith.mulf %141, %145 : vector<8x128xf32>
    %147 = arith.index_cast %115 : i32 to index
    %c0_42 = arith.constant 0 : index
    %148 = vector.load %arg17[%147, %c0_42] : memref<64x128xf32, #tpu.memory_space<vmem>>, vector<8x128xf32>
    tpu.vector_store %arg17[%147, %c0_42], %146 {strides = array<i32>} : memref<64x128xf32, #tpu.memory_space<vmem>>, vector<8x128xf32>,
    %c4_i32 = arith.constant 4 : i32
    %c8_i32_43 = arith.constant 8 : i32
    %149 = arith.muli %c4_i32, %c8_i32_43 : i32
    %150 = tpu.assume_multiple %149, 8 : i32
    %151 = arith.index_cast %150 : i32 to index
    %c0_44 = arith.constant 0 : index
    %152 = vector.load %arg16[%151, %c0_44] : memref<64x512xf32, #tpu.memory_space<vmem>>, vector<8x512xf32>
    %153 = arith.truncf %146 : vector<8x128xf32> to vector<8x128xbf16>
    %c0_45 = arith.constant 0 : index
    %c0_46 = arith.constant 0 : index
    %154 = vector.load %arg2[%c0_45, %c0_46] : memref<128x512xbf16, #tpu.memory_space<vmem>>, vector<128x512xbf16>
    %cst_47 = arith.constant dense<0.000000e+00> : vector<8x512xf32>
    %155 = tpu.matmul %153, %154, %cst_47 {dimension_numbers = #tpu.dot_dimension_numbers<[1], [0], [0], [1], [0, 0, 1, 1], [], []>} : vector<8x128xbf16>, vector<128x512xbf16>, vector<8x512xf32> -> vector<8x512xf32>
    %156 = arith.addf %152, %155 : vector<8x512xf32>
    %157 = vector.extract_strided_slice %156 {offsets = [0, 0], sizes = [8, 128], strides = [1, 1]} : vector<8x512xf32> to vector<8x128xf32>
    %158 = arith.negf %157 : vector<8x128xf32>
    %159 = math.exp %158 : vector<8x128xf32>
    %cst_48 = arith.constant 1.000000e+00 : f32
    %160 = vector.broadcast %cst_48 : f32 to vector<8x128xf32>
    %161 = arith.addf %160, %159 : vector<8x128xf32>
    %162 = arith.divf %160, %161 : vector<8x128xf32>
    %163 = vector.extract_strided_slice %156 {offsets = [0, 128], sizes = [8, 128], strides = [1, 1]} : vector<8x512xf32> to vector<8x128xf32>
    %164 = arith.negf %163 : vector<8x128xf32>
    %165 = math.exp %164 : vector<8x128xf32>
    %cst_49 = arith.constant 1.000000e+00 : f32
    %166 = vector.broadcast %cst_49 : f32 to vector<8x128xf32>
    %167 = arith.addf %166, %165 : vector<8x128xf32>
    %168 = arith.divf %166, %167 : vector<8x128xf32>
    %169 = vector.extract_strided_slice %156 {offsets = [0, 256], sizes = [8, 128], strides = [1, 1]} : vector<8x512xf32> to vector<8x128xf32>
    %170 = math.tanh %169 : vector<8x128xf32>
    %171 = vector.extract_strided_slice %156 {offsets = [0, 384], sizes = [8, 128], strides = [1, 1]} : vector<8x512xf32> to vector<8x128xf32>
    %172 = arith.negf %171 : vector<8x128xf32>
    %173 = math.exp %172 : vector<8x128xf32>
    %cst_50 = arith.constant 1.000000e+00 : f32
    %174 = vector.broadcast %cst_50 : f32 to vector<8x128xf32>
    %175 = arith.addf %174, %173 : vector<8x128xf32>
    %176 = arith.divf %174, %175 : vector<8x128xf32>
    %177 = arith.mulf %168, %144 : vector<8x128xf32>
    %178 = arith.mulf %162, %170 : vector<8x128xf32>
    %179 = arith.addf %177, %178 : vector<8x128xf32>
    %180 = math.tanh %179 : vector<8x128xf32>
    %181 = arith.mulf %176, %180 : vector<8x128xf32>
    %182 = arith.index_cast %150 : i32 to index
    %c0_51 = arith.constant 0 : index
    %183 = vector.load %arg17[%182, %c0_51] : memref<64x128xf32, #tpu.memory_space<vmem>>, vector<8x128xf32>
    tpu.vector_store %arg17[%182, %c0_51], %181 {strides = array<i32>} : memref<64x128xf32, #tpu.memory_space<vmem>>, vector<8x128xf32>,
    %c5_i32 = arith.constant 5 : i32
    %c8_i32_52 = arith.constant 8 : i32
    %184 = arith.muli %c5_i32, %c8_i32_52 : i32
    %185 = tpu.assume_multiple %184, 8 : i32
    %186 = arith.index_cast %185 : i32 to index
    %c0_53 = arith.constant 0 : index
    %187 = vector.load %arg16[%186, %c0_53] : memref<64x512xf32, #tpu.memory_space<vmem>>, vector<8x512xf32>
    %188 = arith.truncf %181 : vector<8x128xf32> to vector<8x128xbf16>
    %c0_54 = arith.constant 0 : index
    %c0_55 = arith.constant 0 : index
    %189 = vector.load %arg2[%c0_54, %c0_55] : memref<128x512xbf16, #tpu.memory_space<vmem>>, vector<128x512xbf16>
    %cst_56 = arith.constant dense<0.000000e+00> : vector<8x512xf32>
    %190 = tpu.matmul %188, %189, %cst_56 {dimension_numbers = #tpu.dot_dimension_numbers<[1], [0], [0], [1], [0, 0, 1, 1], [], []>} : vector<8x128xbf16>, vector<128x512xbf16>, vector<8x512xf32> -> vector<8x512xf32>
    %191 = arith.addf %187, %190 : vector<8x512xf32>
    %192 = vector.extract_strided_slice %191 {offsets = [0, 0], sizes = [8, 128], strides = [1, 1]} : vector<8x512xf32> to vector<8x128xf32>
    %193 = arith.negf %192 : vector<8x128xf32>
    %194 = math.exp %193 : vector<8x128xf32>
    %cst_57 = arith.constant 1.000000e+00 : f32
    %195 = vector.broadcast %cst_57 : f32 to vector<8x128xf32>
    %196 = arith.addf %195, %194 : vector<8x128xf32>
    %197 = arith.divf %195, %196 : vector<8x128xf32>
    %198 = vector.extract_strided_slice %191 {offsets = [0, 128], sizes = [8, 128], strides = [1, 1]} : vector<8x512xf32> to vector<8x128xf32>
    %199 = arith.negf %198 : vector<8x128xf32>
    %200 = math.exp %199 : vector<8x128xf32>
    %cst_58 = arith.constant 1.000000e+00 : f32
    %201 = vector.broadcast %cst_58 : f32 to vector<8x128xf32>
    %202 = arith.addf %201, %200 : vector<8x128xf32>
    %203 = arith.divf %201, %202 : vector<8x128xf32>
    %204 = vector.extract_strided_slice %191 {offsets = [0, 256], sizes = [8, 128], strides = [1, 1]} : vector<8x512xf32> to vector<8x128xf32>
    %205 = math.tanh %204 : vector<8x128xf32>
    %206 = vector.extract_strided_slice %191 {offsets = [0, 384], sizes = [8, 128], strides = [1, 1]} : vector<8x512xf32> to vector<8x128xf32>
    %207 = arith.negf %206 : vector<8x128xf32>
    %208 = math.exp %207 : vector<8x128xf32>
    %cst_59 = arith.constant 1.000000e+00 : f32
    %209 = vector.broadcast %cst_59 : f32 to vector<8x128xf32>
    %210 = arith.addf %209, %208 : vector<8x128xf32>
    %211 = arith.divf %209, %210 : vector<8x128xf32>
    %212 = arith.mulf %203, %179 : vector<8x128xf32>
    %213 = arith.mulf %197, %205 : vector<8x128xf32>
    %214 = arith.addf %212, %213 : vector<8x128xf32>
    %215 = math.tanh %214 : vector<8x128xf32>
    %216 = arith.mulf %211, %215 : vector<8x128xf32>
    %217 = arith.index_cast %185 : i32 to index
    %c0_60 = arith.constant 0 : index
    %218 = vector.load %arg17[%217, %c0_60] : memref<64x128xf32, #tpu.memory_space<vmem>>, vector<8x128xf32>
    tpu.vector_store %arg17[%217, %c0_60], %216 {strides = array<i32>} : memref<64x128xf32, #tpu.memory_space<vmem>>, vector<8x128xf32>,
    %c6_i32 = arith.constant 6 : i32
    %c8_i32_61 = arith.constant 8 : i32
    %219 = arith.muli %c6_i32, %c8_i32_61 : i32
    %220 = tpu.assume_multiple %219, 8 : i32
    %221 = arith.index_cast %220 : i32 to index
    %c0_62 = arith.constant 0 : index
    %222 = vector.load %arg16[%221, %c0_62] : memref<64x512xf32, #tpu.memory_space<vmem>>, vector<8x512xf32>
    %223 = arith.truncf %216 : vector<8x128xf32> to vector<8x128xbf16>
    %c0_63 = arith.constant 0 : index
    %c0_64 = arith.constant 0 : index
    %224 = vector.load %arg2[%c0_63, %c0_64] : memref<128x512xbf16, #tpu.memory_space<vmem>>, vector<128x512xbf16>
    %cst_65 = arith.constant dense<0.000000e+00> : vector<8x512xf32>
    %225 = tpu.matmul %223, %224, %cst_65 {dimension_numbers = #tpu.dot_dimension_numbers<[1], [0], [0], [1], [0, 0, 1, 1], [], []>} : vector<8x128xbf16>, vector<128x512xbf16>, vector<8x512xf32> -> vector<8x512xf32>
    %226 = arith.addf %222, %225 : vector<8x512xf32>
    %227 = vector.extract_strided_slice %226 {offsets = [0, 0], sizes = [8, 128], strides = [1, 1]} : vector<8x512xf32> to vector<8x128xf32>
    %228 = arith.negf %227 : vector<8x128xf32>
    %229 = math.exp %228 : vector<8x128xf32>
    %cst_66 = arith.constant 1.000000e+00 : f32
    %230 = vector.broadcast %cst_66 : f32 to vector<8x128xf32>
    %231 = arith.addf %230, %229 : vector<8x128xf32>
    %232 = arith.divf %230, %231 : vector<8x128xf32>
    %233 = vector.extract_strided_slice %226 {offsets = [0, 128], sizes = [8, 128], strides = [1, 1]} : vector<8x512xf32> to vector<8x128xf32>
    %234 = arith.negf %233 : vector<8x128xf32>
    %235 = math.exp %234 : vector<8x128xf32>
    %cst_67 = arith.constant 1.000000e+00 : f32
    %236 = vector.broadcast %cst_67 : f32 to vector<8x128xf32>
    %237 = arith.addf %236, %235 : vector<8x128xf32>
    %238 = arith.divf %236, %237 : vector<8x128xf32>
    %239 = vector.extract_strided_slice %226 {offsets = [0, 256], sizes = [8, 128], strides = [1, 1]} : vector<8x512xf32> to vector<8x128xf32>
    %240 = math.tanh %239 : vector<8x128xf32>
    %241 = vector.extract_strided_slice %226 {offsets = [0, 384], sizes = [8, 128], strides = [1, 1]} : vector<8x512xf32> to vector<8x128xf32>
    %242 = arith.negf %241 : vector<8x128xf32>
    %243 = math.exp %242 : vector<8x128xf32>
    %cst_68 = arith.constant 1.000000e+00 : f32
    %244 = vector.broadcast %cst_68 : f32 to vector<8x128xf32>
    %245 = arith.addf %244, %243 : vector<8x128xf32>
    %246 = arith.divf %244, %245 : vector<8x128xf32>
    %247 = arith.mulf %238, %214 : vector<8x128xf32>
    %248 = arith.mulf %232, %240 : vector<8x128xf32>
    %249 = arith.addf %247, %248 : vector<8x128xf32>
    %250 = math.tanh %249 : vector<8x128xf32>
    %251 = arith.mulf %246, %250 : vector<8x128xf32>
    %252 = arith.index_cast %220 : i32 to index
    %c0_69 = arith.constant 0 : index
    %253 = vector.load %arg17[%252, %c0_69] : memref<64x128xf32, #tpu.memory_space<vmem>>, vector<8x128xf32>
    tpu.vector_store %arg17[%252, %c0_69], %251 {strides = array<i32>} : memref<64x128xf32, #tpu.memory_space<vmem>>, vector<8x128xf32>,
    %c7_i32 = arith.constant 7 : i32
    %c8_i32_70 = arith.constant 8 : i32
    %254 = arith.muli %c7_i32, %c8_i32_70 : i32
    %255 = tpu.assume_multiple %254, 8 : i32
    %256 = arith.index_cast %255 : i32 to index
    %c0_71 = arith.constant 0 : index
    %257 = vector.load %arg16[%256, %c0_71] : memref<64x512xf32, #tpu.memory_space<vmem>>, vector<8x512xf32>
    %258 = arith.truncf %251 : vector<8x128xf32> to vector<8x128xbf16>
    %c0_72 = arith.constant 0 : index
    %c0_73 = arith.constant 0 : index
    %259 = vector.load %arg2[%c0_72, %c0_73] : memref<128x512xbf16, #tpu.memory_space<vmem>>, vector<128x512xbf16>
    %cst_74 = arith.constant dense<0.000000e+00> : vector<8x512xf32>
    %260 = tpu.matmul %258, %259, %cst_74 {dimension_numbers = #tpu.dot_dimension_numbers<[1], [0], [0], [1], [0, 0, 1, 1], [], []>} : vector<8x128xbf16>, vector<128x512xbf16>, vector<8x512xf32> -> vector<8x512xf32>
    %261 = arith.addf %257, %260 : vector<8x512xf32>
    %262 = vector.extract_strided_slice %261 {offsets = [0, 0], sizes = [8, 128], strides = [1, 1]} : vector<8x512xf32> to vector<8x128xf32>
    %263 = arith.negf %262 : vector<8x128xf32>
    %264 = math.exp %263 : vector<8x128xf32>
    %cst_75 = arith.constant 1.000000e+00 : f32
    %265 = vector.broadcast %cst_75 : f32 to vector<8x128xf32>
    %266 = arith.addf %265, %264 : vector<8x128xf32>
    %267 = arith.divf %265, %266 : vector<8x128xf32>
    %268 = vector.extract_strided_slice %261 {offsets = [0, 128], sizes = [8, 128], strides = [1, 1]} : vector<8x512xf32> to vector<8x128xf32>
    %269 = arith.negf %268 : vector<8x128xf32>
    %270 = math.exp %269 : vector<8x128xf32>
    %cst_76 = arith.constant 1.000000e+00 : f32
    %271 = vector.broadcast %cst_76 : f32 to vector<8x128xf32>
    %272 = arith.addf %271, %270 : vector<8x128xf32>
    %273 = arith.divf %271, %272 : vector<8x128xf32>
    %274 = vector.extract_strided_slice %261 {offsets = [0, 256], sizes = [8, 128], strides = [1, 1]} : vector<8x512xf32> to vector<8x128xf32>
    %275 = math.tanh %274 : vector<8x128xf32>
    %276 = vector.extract_strided_slice %261 {offsets = [0, 384], sizes = [8, 128], strides = [1, 1]} : vector<8x512xf32> to vector<8x128xf32>
    %277 = arith.negf %276 : vector<8x128xf32>
    %278 = math.exp %277 : vector<8x128xf32>
    %cst_77 = arith.constant 1.000000e+00 : f32
    %279 = vector.broadcast %cst_77 : f32 to vector<8x128xf32>
    %280 = arith.addf %279, %278 : vector<8x128xf32>
    %281 = arith.divf %279, %280 : vector<8x128xf32>
    %282 = arith.mulf %273, %249 : vector<8x128xf32>
    %283 = arith.mulf %267, %275 : vector<8x128xf32>
    %284 = arith.addf %282, %283 : vector<8x128xf32>
    %285 = math.tanh %284 : vector<8x128xf32>
    %286 = arith.mulf %281, %285 : vector<8x128xf32>
    %287 = arith.index_cast %255 : i32 to index
    %c0_78 = arith.constant 0 : index
    %288 = vector.load %arg17[%287, %c0_78] : memref<64x128xf32, #tpu.memory_space<vmem>>, vector<8x128xf32>
    tpu.vector_store %arg17[%287, %c0_78], %286 {strides = array<i32>} : memref<64x128xf32, #tpu.memory_space<vmem>>, vector<8x128xf32>,
    %c8_i32_79 = arith.constant 8 : i32
    %c0_80 = arith.constant 0 : index
    %c0_81 = arith.constant 0 : index
    %289 = vector.load %arg17[%c0_80, %c0_81] : memref<64x128xf32, #tpu.memory_space<vmem>>, vector<64x128xf32>
    %290 = arith.truncf %289 : vector<64x128xf32> to vector<64x128xbf16>
    %c0_82 = arith.constant 0 : index
    %c0_83 = arith.constant 0 : index
    %291 = vector.load %arg4[%c0_82, %c0_83] : memref<128x512xbf16, #tpu.memory_space<vmem>>, vector<128x512xbf16>
    %cst_84 = arith.constant dense<0.000000e+00> : vector<64x512xf32>
    %292 = tpu.matmul %290, %291, %cst_84 {dimension_numbers = #tpu.dot_dimension_numbers<[1], [0], [0], [1], [0, 0, 1, 1], [], []>} : vector<64x128xbf16>, vector<128x512xbf16>, vector<64x512xf32> -> vector<64x512xf32>
    %c0_85 = arith.constant 0 : index
    %c0_86 = arith.constant 0 : index
    %293 = vector.load %arg6[%c0_85, %c0_86] : memref<1x512xf32, #tpu.memory_space<vmem>>, vector<1x512xf32>
    %294 = vector.broadcast %293 : vector<1x512xf32> to vector<64x512xf32>
    %295 = arith.addf %292, %294 : vector<64x512xf32>
    %c0_87 = arith.constant 0 : index
    %c0_88 = arith.constant 0 : index
    %296 = vector.load %arg16[%c0_87, %c0_88] : memref<64x512xf32, #tpu.memory_space<vmem>>, vector<64x512xf32>
    tpu.vector_store %arg16[%c0_87, %c0_88], %295 {strides = array<i32>} : memref<64x512xf32, #tpu.memory_space<vmem>>, vector<64x512xf32>,
    %cst_89 = arith.constant 0.000000e+00 : f32
    %297 = vector.broadcast %cst_89 : f32 to vector<8x128xf32>
    %c0_i32_90 = arith.constant 0 : i32
    %c8_i32_91 = arith.constant 8 : i32
    %298 = arith.muli %c0_i32_90, %c8_i32_91 : i32
    %299 = tpu.assume_multiple %298, 8 : i32
    %300 = arith.index_cast %299 : i32 to index
    %c0_92 = arith.constant 0 : index
    %301 = vector.load %arg16[%300, %c0_92] : memref<64x512xf32, #tpu.memory_space<vmem>>, vector<8x512xf32>
    %302 = arith.truncf %297 : vector<8x128xf32> to vector<8x128xbf16>
    %c0_93 = arith.constant 0 : index
    %c0_94 = arith.constant 0 : index
    %303 = vector.load %arg5[%c0_93, %c0_94] : memref<128x512xbf16, #tpu.memory_space<vmem>>, vector<128x512xbf16>
    %cst_95 = arith.constant dense<0.000000e+00> : vector<8x512xf32>
    %304 = tpu.matmul %302, %303, %cst_95 {dimension_numbers = #tpu.dot_dimension_numbers<[1], [0], [0], [1], [0, 0, 1, 1], [], []>} : vector<8x128xbf16>, vector<128x512xbf16>, vector<8x512xf32> -> vector<8x512xf32>
    %305 = arith.addf %301, %304 : vector<8x512xf32>
    %306 = vector.extract_strided_slice %305 {offsets = [0, 0], sizes = [8, 128], strides = [1, 1]} : vector<8x512xf32> to vector<8x128xf32>
    %307 = arith.negf %306 : vector<8x128xf32>
    %308 = math.exp %307 : vector<8x128xf32>
    %cst_96 = arith.constant 1.000000e+00 : f32
    %309 = vector.broadcast %cst_96 : f32 to vector<8x128xf32>
    %310 = arith.addf %309, %308 : vector<8x128xf32>
    %311 = arith.divf %309, %310 : vector<8x128xf32>
    %312 = vector.extract_strided_slice %305 {offsets = [0, 128], sizes = [8, 128], strides = [1, 1]} : vector<8x512xf32> to vector<8x128xf32>
    %313 = arith.negf %312 : vector<8x128xf32>
    %314 = math.exp %313 : vector<8x128xf32>
    %cst_97 = arith.constant 1.000000e+00 : f32
    %315 = vector.broadcast %cst_97 : f32 to vector<8x128xf32>
    %316 = arith.addf %315, %314 : vector<8x128xf32>
    %317 = arith.divf %315, %316 : vector<8x128xf32>
    %318 = vector.extract_strided_slice %305 {offsets = [0, 256], sizes = [8, 128], strides = [1, 1]} : vector<8x512xf32> to vector<8x128xf32>
    %319 = math.tanh %318 : vector<8x128xf32>
    %320 = vector.extract_strided_slice %305 {offsets = [0, 384], sizes = [8, 128], strides = [1, 1]} : vector<8x512xf32> to vector<8x128xf32>
    %321 = arith.negf %320 : vector<8x128xf32>
    %322 = math.exp %321 : vector<8x128xf32>
    %cst_98 = arith.constant 1.000000e+00 : f32
    %323 = vector.broadcast %cst_98 : f32 to vector<8x128xf32>
    %324 = arith.addf %323, %322 : vector<8x128xf32>
    %325 = arith.divf %323, %324 : vector<8x128xf32>
    %326 = arith.mulf %317, %297 : vector<8x128xf32>
    %327 = arith.mulf %311, %319 : vector<8x128xf32>
    %328 = arith.addf %326, %327 : vector<8x128xf32>
    %329 = math.tanh %328 : vector<8x128xf32>
    %330 = arith.mulf %325, %329 : vector<8x128xf32>
    %331 = arith.index_cast %299 : i32 to index
    %c0_99 = arith.constant 0 : index
    %332 = vector.load %arg17[%331, %c0_99] : memref<64x128xf32, #tpu.memory_space<vmem>>, vector<8x128xf32>
    tpu.vector_store %arg17[%331, %c0_99], %330 {strides = array<i32>} : memref<64x128xf32, #tpu.memory_space<vmem>>, vector<8x128xf32>,
    %c1_i32_100 = arith.constant 1 : i32
    %c8_i32_101 = arith.constant 8 : i32
    %333 = arith.muli %c1_i32_100, %c8_i32_101 : i32
    %334 = tpu.assume_multiple %333, 8 : i32
    %335 = arith.index_cast %334 : i32 to index
    %c0_102 = arith.constant 0 : index
    %336 = vector.load %arg16[%335, %c0_102] : memref<64x512xf32, #tpu.memory_space<vmem>>, vector<8x512xf32>
    %337 = arith.truncf %330 : vector<8x128xf32> to vector<8x128xbf16>
    %c0_103 = arith.constant 0 : index
    %c0_104 = arith.constant 0 : index
    %338 = vector.load %arg5[%c0_103, %c0_104] : memref<128x512xbf16, #tpu.memory_space<vmem>>, vector<128x512xbf16>
    %cst_105 = arith.constant dense<0.000000e+00> : vector<8x512xf32>
    %339 = tpu.matmul %337, %338, %cst_105 {dimension_numbers = #tpu.dot_dimension_numbers<[1], [0], [0], [1], [0, 0, 1, 1], [], []>} : vector<8x128xbf16>, vector<128x512xbf16>, vector<8x512xf32> -> vector<8x512xf32>
    %340 = arith.addf %336, %339 : vector<8x512xf32>
    %341 = vector.extract_strided_slice %340 {offsets = [0, 0], sizes = [8, 128], strides = [1, 1]} : vector<8x512xf32> to vector<8x128xf32>
    %342 = arith.negf %341 : vector<8x128xf32>
    %343 = math.exp %342 : vector<8x128xf32>
    %cst_106 = arith.constant 1.000000e+00 : f32
    %344 = vector.broadcast %cst_106 : f32 to vector<8x128xf32>
    %345 = arith.addf %344, %343 : vector<8x128xf32>
    %346 = arith.divf %344, %345 : vector<8x128xf32>
    %347 = vector.extract_strided_slice %340 {offsets = [0, 128], sizes = [8, 128], strides = [1, 1]} : vector<8x512xf32> to vector<8x128xf32>
    %348 = arith.negf %347 : vector<8x128xf32>
    %349 = math.exp %348 : vector<8x128xf32>
    %cst_107 = arith.constant 1.000000e+00 : f32
    %350 = vector.broadcast %cst_107 : f32 to vector<8x128xf32>
    %351 = arith.addf %350, %349 : vector<8x128xf32>
    %352 = arith.divf %350, %351 : vector<8x128xf32>
    %353 = vector.extract_strided_slice %340 {offsets = [0, 256], sizes = [8, 128], strides = [1, 1]} : vector<8x512xf32> to vector<8x128xf32>
    %354 = math.tanh %353 : vector<8x128xf32>
    %355 = vector.extract_strided_slice %340 {offsets = [0, 384], sizes = [8, 128], strides = [1, 1]} : vector<8x512xf32> to vector<8x128xf32>
    %356 = arith.negf %355 : vector<8x128xf32>
    %357 = math.exp %356 : vector<8x128xf32>
    %cst_108 = arith.constant 1.000000e+00 : f32
    %358 = vector.broadcast %cst_108 : f32 to vector<8x128xf32>
    %359 = arith.addf %358, %357 : vector<8x128xf32>
    %360 = arith.divf %358, %359 : vector<8x128xf32>
    %361 = arith.mulf %352, %328 : vector<8x128xf32>
    %362 = arith.mulf %346, %354 : vector<8x128xf32>
    %363 = arith.addf %361, %362 : vector<8x128xf32>
    %364 = math.tanh %363 : vector<8x128xf32>
    %365 = arith.mulf %360, %364 : vector<8x128xf32>
    %366 = arith.index_cast %334 : i32 to index
    %c0_109 = arith.constant 0 : index
    %367 = vector.load %arg17[%366, %c0_109] : memref<64x128xf32, #tpu.memory_space<vmem>>, vector<8x128xf32>
    tpu.vector_store %arg17[%366, %c0_109], %365 {strides = array<i32>} : memref<64x128xf32, #tpu.memory_space<vmem>>, vector<8x128xf32>,
    %c2_i32_110 = arith.constant 2 : i32
    %c8_i32_111 = arith.constant 8 : i32
    %368 = arith.muli %c2_i32_110, %c8_i32_111 : i32
    %369 = tpu.assume_multiple %368, 8 : i32
    %370 = arith.index_cast %369 : i32 to index
    %c0_112 = arith.constant 0 : index
    %371 = vector.load %arg16[%370, %c0_112] : memref<64x512xf32, #tpu.memory_space<vmem>>, vector<8x512xf32>
    %372 = arith.truncf %365 : vector<8x128xf32> to vector<8x128xbf16>
    %c0_113 = arith.constant 0 : index
    %c0_114 = arith.constant 0 : index
    %373 = vector.load %arg5[%c0_113, %c0_114] : memref<128x512xbf16, #tpu.memory_space<vmem>>, vector<128x512xbf16>
    %cst_115 = arith.constant dense<0.000000e+00> : vector<8x512xf32>
    %374 = tpu.matmul %372, %373, %cst_115 {dimension_numbers = #tpu.dot_dimension_numbers<[1], [0], [0], [1], [0, 0, 1, 1], [], []>} : vector<8x128xbf16>, vector<128x512xbf16>, vector<8x512xf32> -> vector<8x512xf32>
    %375 = arith.addf %371, %374 : vector<8x512xf32>
    %376 = vector.extract_strided_slice %375 {offsets = [0, 0], sizes = [8, 128], strides = [1, 1]} : vector<8x512xf32> to vector<8x128xf32>
    %377 = arith.negf %376 : vector<8x128xf32>
    %378 = math.exp %377 : vector<8x128xf32>
    %cst_116 = arith.constant 1.000000e+00 : f32
    %379 = vector.broadcast %cst_116 : f32 to vector<8x128xf32>
    %380 = arith.addf %379, %378 : vector<8x128xf32>
    %381 = arith.divf %379, %380 : vector<8x128xf32>
    %382 = vector.extract_strided_slice %375 {offsets = [0, 128], sizes = [8, 128], strides = [1, 1]} : vector<8x512xf32> to vector<8x128xf32>
    %383 = arith.negf %382 : vector<8x128xf32>
    %384 = math.exp %383 : vector<8x128xf32>
    %cst_117 = arith.constant 1.000000e+00 : f32
    %385 = vector.broadcast %cst_117 : f32 to vector<8x128xf32>
    %386 = arith.addf %385, %384 : vector<8x128xf32>
    %387 = arith.divf %385, %386 : vector<8x128xf32>
    %388 = vector.extract_strided_slice %375 {offsets = [0, 256], sizes = [8, 128], strides = [1, 1]} : vector<8x512xf32> to vector<8x128xf32>
    %389 = math.tanh %388 : vector<8x128xf32>
    %390 = vector.extract_strided_slice %375 {offsets = [0, 384], sizes = [8, 128], strides = [1, 1]} : vector<8x512xf32> to vector<8x128xf32>
    %391 = arith.negf %390 : vector<8x128xf32>
    %392 = math.exp %391 : vector<8x128xf32>
    %cst_118 = arith.constant 1.000000e+00 : f32
    %393 = vector.broadcast %cst_118 : f32 to vector<8x128xf32>
    %394 = arith.addf %393, %392 : vector<8x128xf32>
    %395 = arith.divf %393, %394 : vector<8x128xf32>
    %396 = arith.mulf %387, %363 : vector<8x128xf32>
    %397 = arith.mulf %381, %389 : vector<8x128xf32>
    %398 = arith.addf %396, %397 : vector<8x128xf32>
    %399 = math.tanh %398 : vector<8x128xf32>
    %400 = arith.mulf %395, %399 : vector<8x128xf32>
    %401 = arith.index_cast %369 : i32 to index
    %c0_119 = arith.constant 0 : index
    %402 = vector.load %arg17[%401, %c0_119] : memref<64x128xf32, #tpu.memory_space<vmem>>, vector<8x128xf32>
    tpu.vector_store %arg17[%401, %c0_119], %400 {strides = array<i32>} : memref<64x128xf32, #tpu.memory_space<vmem>>, vector<8x128xf32>,
    %c3_i32_120 = arith.constant 3 : i32
    %c8_i32_121 = arith.constant 8 : i32
    %403 = arith.muli %c3_i32_120, %c8_i32_121 : i32
    %404 = tpu.assume_multiple %403, 8 : i32
    %405 = arith.index_cast %404 : i32 to index
    %c0_122 = arith.constant 0 : index
    %406 = vector.load %arg16[%405, %c0_122] : memref<64x512xf32, #tpu.memory_space<vmem>>, vector<8x512xf32>
    %407 = arith.truncf %400 : vector<8x128xf32> to vector<8x128xbf16>
    %c0_123 = arith.constant 0 : index
    %c0_124 = arith.constant 0 : index
    %408 = vector.load %arg5[%c0_123, %c0_124] : memref<128x512xbf16, #tpu.memory_space<vmem>>, vector<128x512xbf16>
    %cst_125 = arith.constant dense<0.000000e+00> : vector<8x512xf32>
    %409 = tpu.matmul %407, %408, %cst_125 {dimension_numbers = #tpu.dot_dimension_numbers<[1], [0], [0], [1], [0, 0, 1, 1], [], []>} : vector<8x128xbf16>, vector<128x512xbf16>, vector<8x512xf32> -> vector<8x512xf32>
    %410 = arith.addf %406, %409 : vector<8x512xf32>
    %411 = vector.extract_strided_slice %410 {offsets = [0, 0], sizes = [8, 128], strides = [1, 1]} : vector<8x512xf32> to vector<8x128xf32>
    %412 = arith.negf %411 : vector<8x128xf32>
    %413 = math.exp %412 : vector<8x128xf32>
    %cst_126 = arith.constant 1.000000e+00 : f32
    %414 = vector.broadcast %cst_126 : f32 to vector<8x128xf32>
    %415 = arith.addf %414, %413 : vector<8x128xf32>
    %416 = arith.divf %414, %415 : vector<8x128xf32>
    %417 = vector.extract_strided_slice %410 {offsets = [0, 128], sizes = [8, 128], strides = [1, 1]} : vector<8x512xf32> to vector<8x128xf32>
    %418 = arith.negf %417 : vector<8x128xf32>
    %419 = math.exp %418 : vector<8x128xf32>
    %cst_127 = arith.constant 1.000000e+00 : f32
    %420 = vector.broadcast %cst_127 : f32 to vector<8x128xf32>
    %421 = arith.addf %420, %419 : vector<8x128xf32>
    %422 = arith.divf %420, %421 : vector<8x128xf32>
    %423 = vector.extract_strided_slice %410 {offsets = [0, 256], sizes = [8, 128], strides = [1, 1]} : vector<8x512xf32> to vector<8x128xf32>
    %424 = math.tanh %423 : vector<8x128xf32>
    %425 = vector.extract_strided_slice %410 {offsets = [0, 384], sizes = [8, 128], strides = [1, 1]} : vector<8x512xf32> to vector<8x128xf32>
    %426 = arith.negf %425 : vector<8x128xf32>
    %427 = math.exp %426 : vector<8x128xf32>
    %cst_128 = arith.constant 1.000000e+00 : f32
    %428 = vector.broadcast %cst_128 : f32 to vector<8x128xf32>
    %429 = arith.addf %428, %427 : vector<8x128xf32>
    %430 = arith.divf %428, %429 : vector<8x128xf32>
    %431 = arith.mulf %422, %398 : vector<8x128xf32>
    %432 = arith.mulf %416, %424 : vector<8x128xf32>
    %433 = arith.addf %431, %432 : vector<8x128xf32>
    %434 = math.tanh %433 : vector<8x128xf32>
    %435 = arith.mulf %430, %434 : vector<8x128xf32>
    %436 = arith.index_cast %404 : i32 to index
    %c0_129 = arith.constant 0 : index
    %437 = vector.load %arg17[%436, %c0_129] : memref<64x128xf32, #tpu.memory_space<vmem>>, vector<8x128xf32>
    tpu.vector_store %arg17[%436, %c0_129], %435 {strides = array<i32>} : memref<64x128xf32, #tpu.memory_space<vmem>>, vector<8x128xf32>,
    %c4_i32_130 = arith.constant 4 : i32
    %c8_i32_131 = arith.constant 8 : i32
    %438 = arith.muli %c4_i32_130, %c8_i32_131 : i32
    %439 = tpu.assume_multiple %438, 8 : i32
    %440 = arith.index_cast %439 : i32 to index
    %c0_132 = arith.constant 0 : index
    %441 = vector.load %arg16[%440, %c0_132] : memref<64x512xf32, #tpu.memory_space<vmem>>, vector<8x512xf32>
    %442 = arith.truncf %435 : vector<8x128xf32> to vector<8x128xbf16>
    %c0_133 = arith.constant 0 : index
    %c0_134 = arith.constant 0 : index
    %443 = vector.load %arg5[%c0_133, %c0_134] : memref<128x512xbf16, #tpu.memory_space<vmem>>, vector<128x512xbf16>
    %cst_135 = arith.constant dense<0.000000e+00> : vector<8x512xf32>
    %444 = tpu.matmul %442, %443, %cst_135 {dimension_numbers = #tpu.dot_dimension_numbers<[1], [0], [0], [1], [0, 0, 1, 1], [], []>} : vector<8x128xbf16>, vector<128x512xbf16>, vector<8x512xf32> -> vector<8x512xf32>
    %445 = arith.addf %441, %444 : vector<8x512xf32>
    %446 = vector.extract_strided_slice %445 {offsets = [0, 0], sizes = [8, 128], strides = [1, 1]} : vector<8x512xf32> to vector<8x128xf32>
    %447 = arith.negf %446 : vector<8x128xf32>
    %448 = math.exp %447 : vector<8x128xf32>
    %cst_136 = arith.constant 1.000000e+00 : f32
    %449 = vector.broadcast %cst_136 : f32 to vector<8x128xf32>
    %450 = arith.addf %449, %448 : vector<8x128xf32>
    %451 = arith.divf %449, %450 : vector<8x128xf32>
    %452 = vector.extract_strided_slice %445 {offsets = [0, 128], sizes = [8, 128], strides = [1, 1]} : vector<8x512xf32> to vector<8x128xf32>
    %453 = arith.negf %452 : vector<8x128xf32>
    %454 = math.exp %453 : vector<8x128xf32>
    %cst_137 = arith.constant 1.000000e+00 : f32
    %455 = vector.broadcast %cst_137 : f32 to vector<8x128xf32>
    %456 = arith.addf %455, %454 : vector<8x128xf32>
    %457 = arith.divf %455, %456 : vector<8x128xf32>
    %458 = vector.extract_strided_slice %445 {offsets = [0, 256], sizes = [8, 128], strides = [1, 1]} : vector<8x512xf32> to vector<8x128xf32>
    %459 = math.tanh %458 : vector<8x128xf32>
    %460 = vector.extract_strided_slice %445 {offsets = [0, 384], sizes = [8, 128], strides = [1, 1]} : vector<8x512xf32> to vector<8x128xf32>
    %461 = arith.negf %460 : vector<8x128xf32>
    %462 = math.exp %461 : vector<8x128xf32>
    %cst_138 = arith.constant 1.000000e+00 : f32
    %463 = vector.broadcast %cst_138 : f32 to vector<8x128xf32>
    %464 = arith.addf %463, %462 : vector<8x128xf32>
    %465 = arith.divf %463, %464 : vector<8x128xf32>
    %466 = arith.mulf %457, %433 : vector<8x128xf32>
    %467 = arith.mulf %451, %459 : vector<8x128xf32>
    %468 = arith.addf %466, %467 : vector<8x128xf32>
    %469 = math.tanh %468 : vector<8x128xf32>
    %470 = arith.mulf %465, %469 : vector<8x128xf32>
    %471 = arith.index_cast %439 : i32 to index
    %c0_139 = arith.constant 0 : index
    %472 = vector.load %arg17[%471, %c0_139] : memref<64x128xf32, #tpu.memory_space<vmem>>, vector<8x128xf32>
    tpu.vector_store %arg17[%471, %c0_139], %470 {strides = array<i32>} : memref<64x128xf32, #tpu.memory_space<vmem>>, vector<8x128xf32>,
    %c5_i32_140 = arith.constant 5 : i32
    %c8_i32_141 = arith.constant 8 : i32
    %473 = arith.muli %c5_i32_140, %c8_i32_141 : i32
    %474 = tpu.assume_multiple %473, 8 : i32
    %475 = arith.index_cast %474 : i32 to index
    %c0_142 = arith.constant 0 : index
    %476 = vector.load %arg16[%475, %c0_142] : memref<64x512xf32, #tpu.memory_space<vmem>>, vector<8x512xf32>
    %477 = arith.truncf %470 : vector<8x128xf32> to vector<8x128xbf16>
    %c0_143 = arith.constant 0 : index
    %c0_144 = arith.constant 0 : index
    %478 = vector.load %arg5[%c0_143, %c0_144] : memref<128x512xbf16, #tpu.memory_space<vmem>>, vector<128x512xbf16>
    %cst_145 = arith.constant dense<0.000000e+00> : vector<8x512xf32>
    %479 = tpu.matmul %477, %478, %cst_145 {dimension_numbers = #tpu.dot_dimension_numbers<[1], [0], [0], [1], [0, 0, 1, 1], [], []>} : vector<8x128xbf16>, vector<128x512xbf16>, vector<8x512xf32> -> vector<8x512xf32>
    %480 = arith.addf %476, %479 : vector<8x512xf32>
    %481 = vector.extract_strided_slice %480 {offsets = [0, 0], sizes = [8, 128], strides = [1, 1]} : vector<8x512xf32> to vector<8x128xf32>
    %482 = arith.negf %481 : vector<8x128xf32>
    %483 = math.exp %482 : vector<8x128xf32>
    %cst_146 = arith.constant 1.000000e+00 : f32
    %484 = vector.broadcast %cst_146 : f32 to vector<8x128xf32>
    %485 = arith.addf %484, %483 : vector<8x128xf32>
    %486 = arith.divf %484, %485 : vector<8x128xf32>
    %487 = vector.extract_strided_slice %480 {offsets = [0, 128], sizes = [8, 128], strides = [1, 1]} : vector<8x512xf32> to vector<8x128xf32>
    %488 = arith.negf %487 : vector<8x128xf32>
    %489 = math.exp %488 : vector<8x128xf32>
    %cst_147 = arith.constant 1.000000e+00 : f32
    %490 = vector.broadcast %cst_147 : f32 to vector<8x128xf32>
    %491 = arith.addf %490, %489 : vector<8x128xf32>
    %492 = arith.divf %490, %491 : vector<8x128xf32>
    %493 = vector.extract_strided_slice %480 {offsets = [0, 256], sizes = [8, 128], strides = [1, 1]} : vector<8x512xf32> to vector<8x128xf32>
    %494 = math.tanh %493 : vector<8x128xf32>
    %495 = vector.extract_strided_slice %480 {offsets = [0, 384], sizes = [8, 128], strides = [1, 1]} : vector<8x512xf32> to vector<8x128xf32>
    %496 = arith.negf %495 : vector<8x128xf32>
    %497 = math.exp %496 : vector<8x128xf32>
    %cst_148 = arith.constant 1.000000e+00 : f32
    %498 = vector.broadcast %cst_148 : f32 to vector<8x128xf32>
    %499 = arith.addf %498, %497 : vector<8x128xf32>
    %500 = arith.divf %498, %499 : vector<8x128xf32>
    %501 = arith.mulf %492, %468 : vector<8x128xf32>
    %502 = arith.mulf %486, %494 : vector<8x128xf32>
    %503 = arith.addf %501, %502 : vector<8x128xf32>
    %504 = math.tanh %503 : vector<8x128xf32>
    %505 = arith.mulf %500, %504 : vector<8x128xf32>
    %506 = arith.index_cast %474 : i32 to index
    %c0_149 = arith.constant 0 : index
    %507 = vector.load %arg17[%506, %c0_149] : memref<64x128xf32, #tpu.memory_space<vmem>>, vector<8x128xf32>
    tpu.vector_store %arg17[%506, %c0_149], %505 {strides = array<i32>} : memref<64x128xf32, #tpu.memory_space<vmem>>, vector<8x128xf32>,
    %c6_i32_150 = arith.constant 6 : i32
    %c8_i32_151 = arith.constant 8 : i32
    %508 = arith.muli %c6_i32_150, %c8_i32_151 : i32
    %509 = tpu.assume_multiple %508, 8 : i32
    %510 = arith.index_cast %509 : i32 to index
    %c0_152 = arith.constant 0 : index
    %511 = vector.load %arg16[%510, %c0_152] : memref<64x512xf32, #tpu.memory_space<vmem>>, vector<8x512xf32>
    %512 = arith.truncf %505 : vector<8x128xf32> to vector<8x128xbf16>
    %c0_153 = arith.constant 0 : index
    %c0_154 = arith.constant 0 : index
    %513 = vector.load %arg5[%c0_153, %c0_154] : memref<128x512xbf16, #tpu.memory_space<vmem>>, vector<128x512xbf16>
    %cst_155 = arith.constant dense<0.000000e+00> : vector<8x512xf32>
    %514 = tpu.matmul %512, %513, %cst_155 {dimension_numbers = #tpu.dot_dimension_numbers<[1], [0], [0], [1], [0, 0, 1, 1], [], []>} : vector<8x128xbf16>, vector<128x512xbf16>, vector<8x512xf32> -> vector<8x512xf32>
    %515 = arith.addf %511, %514 : vector<8x512xf32>
    %516 = vector.extract_strided_slice %515 {offsets = [0, 0], sizes = [8, 128], strides = [1, 1]} : vector<8x512xf32> to vector<8x128xf32>
    %517 = arith.negf %516 : vector<8x128xf32>
    %518 = math.exp %517 : vector<8x128xf32>
    %cst_156 = arith.constant 1.000000e+00 : f32
    %519 = vector.broadcast %cst_156 : f32 to vector<8x128xf32>
    %520 = arith.addf %519, %518 : vector<8x128xf32>
    %521 = arith.divf %519, %520 : vector<8x128xf32>
    %522 = vector.extract_strided_slice %515 {offsets = [0, 128], sizes = [8, 128], strides = [1, 1]} : vector<8x512xf32> to vector<8x128xf32>
    %523 = arith.negf %522 : vector<8x128xf32>
    %524 = math.exp %523 : vector<8x128xf32>
    %cst_157 = arith.constant 1.000000e+00 : f32
    %525 = vector.broadcast %cst_157 : f32 to vector<8x128xf32>
    %526 = arith.addf %525, %524 : vector<8x128xf32>
    %527 = arith.divf %525, %526 : vector<8x128xf32>
    %528 = vector.extract_strided_slice %515 {offsets = [0, 256], sizes = [8, 128], strides = [1, 1]} : vector<8x512xf32> to vector<8x128xf32>
    %529 = math.tanh %528 : vector<8x128xf32>
    %530 = vector.extract_strided_slice %515 {offsets = [0, 384], sizes = [8, 128], strides = [1, 1]} : vector<8x512xf32> to vector<8x128xf32>
    %531 = arith.negf %530 : vector<8x128xf32>
    %532 = math.exp %531 : vector<8x128xf32>
    %cst_158 = arith.constant 1.000000e+00 : f32
    %533 = vector.broadcast %cst_158 : f32 to vector<8x128xf32>
    %534 = arith.addf %533, %532 : vector<8x128xf32>
    %535 = arith.divf %533, %534 : vector<8x128xf32>
    %536 = arith.mulf %527, %503 : vector<8x128xf32>
    %537 = arith.mulf %521, %529 : vector<8x128xf32>
    %538 = arith.addf %536, %537 : vector<8x128xf32>
    %539 = math.tanh %538 : vector<8x128xf32>
    %540 = arith.mulf %535, %539 : vector<8x128xf32>
    %541 = arith.index_cast %509 : i32 to index
    %c0_159 = arith.constant 0 : index
    %542 = vector.load %arg17[%541, %c0_159] : memref<64x128xf32, #tpu.memory_space<vmem>>, vector<8x128xf32>
    tpu.vector_store %arg17[%541, %c0_159], %540 {strides = array<i32>} : memref<64x128xf32, #tpu.memory_space<vmem>>, vector<8x128xf32>,
    %c7_i32_160 = arith.constant 7 : i32
    %c8_i32_161 = arith.constant 8 : i32
    %543 = arith.muli %c7_i32_160, %c8_i32_161 : i32
    %544 = tpu.assume_multiple %543, 8 : i32
    %545 = arith.index_cast %544 : i32 to index
    %c0_162 = arith.constant 0 : index
    %546 = vector.load %arg16[%545, %c0_162] : memref<64x512xf32, #tpu.memory_space<vmem>>, vector<8x512xf32>
    %547 = arith.truncf %540 : vector<8x128xf32> to vector<8x128xbf16>
    %c0_163 = arith.constant 0 : index
    %c0_164 = arith.constant 0 : index
    %548 = vector.load %arg5[%c0_163, %c0_164] : memref<128x512xbf16, #tpu.memory_space<vmem>>, vector<128x512xbf16>
    %cst_165 = arith.constant dense<0.000000e+00> : vector<8x512xf32>
    %549 = tpu.matmul %547, %548, %cst_165 {dimension_numbers = #tpu.dot_dimension_numbers<[1], [0], [0], [1], [0, 0, 1, 1], [], []>} : vector<8x128xbf16>, vector<128x512xbf16>, vector<8x512xf32> -> vector<8x512xf32>
    %550 = arith.addf %546, %549 : vector<8x512xf32>
    %551 = vector.extract_strided_slice %550 {offsets = [0, 0], sizes = [8, 128], strides = [1, 1]} : vector<8x512xf32> to vector<8x128xf32>
    %552 = arith.negf %551 : vector<8x128xf32>
    %553 = math.exp %552 : vector<8x128xf32>
    %cst_166 = arith.constant 1.000000e+00 : f32
    %554 = vector.broadcast %cst_166 : f32 to vector<8x128xf32>
    %555 = arith.addf %554, %553 : vector<8x128xf32>
    %556 = arith.divf %554, %555 : vector<8x128xf32>
    %557 = vector.extract_strided_slice %550 {offsets = [0, 128], sizes = [8, 128], strides = [1, 1]} : vector<8x512xf32> to vector<8x128xf32>
    %558 = arith.negf %557 : vector<8x128xf32>
    %559 = math.exp %558 : vector<8x128xf32>
    %cst_167 = arith.constant 1.000000e+00 : f32
    %560 = vector.broadcast %cst_167 : f32 to vector<8x128xf32>
    %561 = arith.addf %560, %559 : vector<8x128xf32>
    %562 = arith.divf %560, %561 : vector<8x128xf32>
    %563 = vector.extract_strided_slice %550 {offsets = [0, 256], sizes = [8, 128], strides = [1, 1]} : vector<8x512xf32> to vector<8x128xf32>
    %564 = math.tanh %563 : vector<8x128xf32>
    %565 = vector.extract_strided_slice %550 {offsets = [0, 384], sizes = [8, 128], strides = [1, 1]} : vector<8x512xf32> to vector<8x128xf32>
    %566 = arith.negf %565 : vector<8x128xf32>
    %567 = math.exp %566 : vector<8x128xf32>
    %cst_168 = arith.constant 1.000000e+00 : f32
    %568 = vector.broadcast %cst_168 : f32 to vector<8x128xf32>
    %569 = arith.addf %568, %567 : vector<8x128xf32>
    %570 = arith.divf %568, %569 : vector<8x128xf32>
    %571 = arith.mulf %562, %538 : vector<8x128xf32>
    %572 = arith.mulf %556, %564 : vector<8x128xf32>
    %573 = arith.addf %571, %572 : vector<8x128xf32>
    %574 = math.tanh %573 : vector<8x128xf32>
    %575 = arith.mulf %570, %574 : vector<8x128xf32>
    %576 = arith.index_cast %544 : i32 to index
    %c0_169 = arith.constant 0 : index
    %577 = vector.load %arg17[%576, %c0_169] : memref<64x128xf32, #tpu.memory_space<vmem>>, vector<8x128xf32>
    tpu.vector_store %arg17[%576, %c0_169], %575 {strides = array<i32>} : memref<64x128xf32, #tpu.memory_space<vmem>>, vector<8x128xf32>,
    %c8_i32_170 = arith.constant 8 : i32
    %578 = arith.truncf %575 : vector<8x128xf32> to vector<8x128xbf16>
    %c0_171 = arith.constant 0 : index
    %c0_172 = arith.constant 0 : index
    %579 = vector.load %arg7[%c0_171, %c0_172] : memref<128x128xbf16, #tpu.memory_space<vmem>>, vector<128x128xbf16>
    %cst_173 = arith.constant dense<0.000000e+00> : vector<8x128xf32>
    %580 = tpu.matmul %578, %579, %cst_173 {dimension_numbers = #tpu.dot_dimension_numbers<[1], [0], [0], [1], [0, 0, 1, 1], [], []>} : vector<8x128xbf16>, vector<128x128xbf16>, vector<8x128xf32> -> vector<8x128xf32>
    %c0_174 = arith.constant 0 : index
    %c0_175 = arith.constant 0 : index
    %581 = vector.load %arg8[%c0_174, %c0_175] : memref<1x128xf32, #tpu.memory_space<vmem>>, vector<1x128xf32>
    %582 = vector.broadcast %581 : vector<1x128xf32> to vector<8x128xf32>
    %583 = arith.addf %580, %582 : vector<8x128xf32>
    %cst_176 = arith.constant 5.000000e-01 : f32
    %584 = vector.broadcast %cst_176 : f32 to vector<8x128xf32>
    %585 = arith.mulf %584, %583 : vector<8x128xf32>
    %cst_177 = arith.constant 2.000000e+00 : f32
    %586 = math.sqrt %cst_177 : f32
    %587 = vector.broadcast %586 : f32 to vector<8x128xf32>
    %588 = arith.divf %583, %587 : vector<8x128xf32>
    %589 = math.erf %588 : vector<8x128xf32>
    %cst_178 = arith.constant 1.000000e+00 : f32
    %590 = vector.broadcast %cst_178 : f32 to vector<8x128xf32>
    %591 = arith.addf %590, %589 : vector<8x128xf32>
    %592 = arith.mulf %585, %591 : vector<8x128xf32>
    %593 = arith.truncf %592 : vector<8x128xf32> to vector<8x128xbf16>
    %c0_179 = arith.constant 0 : index
    %c0_180 = arith.constant 0 : index
    %594 = vector.load %arg9[%c0_179, %c0_180] : memref<128x128xbf16, #tpu.memory_space<vmem>>, vector<128x128xbf16>
    %cst_181 = arith.constant dense<0.000000e+00> : vector<8x128xf32>
    %595 = tpu.matmul %593, %594, %cst_181 {dimension_numbers = #tpu.dot_dimension_numbers<[1], [0], [0], [1], [0, 0, 1, 1], [], []>} : vector<8x128xbf16>, vector<128x128xbf16>, vector<8x128xf32> -> vector<8x128xf32>
    %c0_182 = arith.constant 0 : index
    %c0_183 = arith.constant 0 : index
    %596 = vector.load %arg10[%c0_182, %c0_183] : memref<1x128xf32, #tpu.memory_space<vmem>>, vector<1x128xf32>
    %597 = vector.broadcast %596 : vector<1x128xf32> to vector<8x128xf32>
    %598 = arith.addf %595, %597 : vector<8x128xf32>
    %cst_184 = arith.constant 5.000000e-01 : f32
    %599 = vector.broadcast %cst_184 : f32 to vector<8x128xf32>
    %600 = arith.mulf %599, %598 : vector<8x128xf32>
    %cst_185 = arith.constant 2.000000e+00 : f32
    %601 = math.sqrt %cst_185 : f32
    %602 = vector.broadcast %601 : f32 to vector<8x128xf32>
    %603 = arith.divf %598, %602 : vector<8x128xf32>
    %604 = math.erf %603 : vector<8x128xf32>
    %cst_186 = arith.constant 1.000000e+00 : f32
    %605 = vector.broadcast %cst_186 : f32 to vector<8x128xf32>
    %606 = arith.addf %605, %604 : vector<8x128xf32>
    %607 = arith.mulf %600, %606 : vector<8x128xf32>
    %608 = arith.truncf %607 : vector<8x128xf32> to vector<8x128xbf16>
    %c0_187 = arith.constant 0 : index
    %c0_188 = arith.constant 0 : index
    %609 = vector.load %arg11[%c0_187, %c0_188] : memref<128x256xbf16, #tpu.memory_space<vmem>>, vector<128x256xbf16>
    %cst_189 = arith.constant dense<0.000000e+00> : vector<8x256xf32>
    %610 = tpu.matmul %608, %609, %cst_189 {dimension_numbers = #tpu.dot_dimension_numbers<[1], [0], [0], [1], [0, 0, 1, 1], [], []>} : vector<8x128xbf16>, vector<128x256xbf16>, vector<8x256xf32> -> vector<8x256xf32>
    %c0_190 = arith.constant 0 : index
    %c0_191 = arith.constant 0 : index
    %611 = vector.load %arg12[%c0_190, %c0_191] : memref<1x256xf32, #tpu.memory_space<vmem>>, vector<1x256xf32>
    %612 = vector.broadcast %611 : vector<1x256xf32> to vector<8x256xf32>
    %613 = arith.addf %610, %612 : vector<8x256xf32>
    %cst_192 = arith.constant 5.000000e-01 : f32
    %614 = vector.broadcast %cst_192 : f32 to vector<8x256xf32>
    %615 = arith.mulf %614, %613 : vector<8x256xf32>
    %cst_193 = arith.constant 2.000000e+00 : f32
    %616 = math.sqrt %cst_193 : f32
    %617 = vector.broadcast %616 : f32 to vector<8x256xf32>
    %618 = arith.divf %613, %617 : vector<8x256xf32>
    %619 = math.erf %618 : vector<8x256xf32>
    %cst_194 = arith.constant 1.000000e+00 : f32
    %620 = vector.broadcast %cst_194 : f32 to vector<8x256xf32>
    %621 = arith.addf %620, %619 : vector<8x256xf32>
    %622 = arith.mulf %615, %621 : vector<8x256xf32>
    %623 = arith.truncf %622 : vector<8x256xf32> to vector<8x256xbf16>
    %c0_195 = arith.constant 0 : index
    %c0_196 = arith.constant 0 : index
    %624 = vector.load %arg13[%c0_195, %c0_196] : memref<256x128xbf16, #tpu.memory_space<vmem>>, vector<256x128xbf16>
    %cst_197 = arith.constant dense<0.000000e+00> : vector<8x128xf32>
    %625 = tpu.matmul %623, %624, %cst_197 {dimension_numbers = #tpu.dot_dimension_numbers<[1], [0], [0], [1], [0, 0, 1, 1], [], []>} : vector<8x256xbf16>, vector<256x128xbf16>, vector<8x128xf32> -> vector<8x128xf32>
    %c0_198 = arith.constant 0 : index
    %c0_199 = arith.constant 0 : index
    %626 = vector.load %arg14[%c0_198, %c0_199] : memref<1x128xf32, #tpu.memory_space<vmem>>, vector<1x128xf32>
    %627 = vector.broadcast %626 : vector<1x128xf32> to vector<8x128xf32>
    %628 = arith.addf %625, %627 : vector<8x128xf32>
    %c0_200 = arith.constant 0 : index
    %c0_201 = arith.constant 0 : index
    %629 = vector.load %arg15[%c0_200, %c0_201] : memref<8x128xf32, #tpu.memory_space<vmem>>, vector<8x128xf32>
    tpu.vector_store %arg15[%c0_200, %c0_201], %628 {strides = array<i32>} : memref<8x128xf32, #tpu.memory_space<vmem>>, vector<8x128xf32>,
    return
  }
}

</mosaic_0001>

<bundles_post_ra>
// kernel: mynet_forward.1
= control target key start
LH: loop header
LB: loop body
LE: loop exit
PB: predicated region body
PF: predicated region fallthrough
CT: control target
= control target key end

     0   :  { %20 = vsyncpa [#allocation5], 0  ;;  %s9588_s0 = inlined_call_operand.vmem [shape: f32[64,128], index: 0, kind: input, shape index: {}]   ;;  %s9589_s1 = inlined_call_operand.hbm [shape: bf16[128,512], index: 1, kind: input, shape index: {}]   ;;  %s9590_s2 = inlined_call_operand.hbm [shape: bf16[128,512], index: 2, kind: input, shape index: {}]   ;;  %s9591_s3 = inlined_call_operand.hbm [shape: f32[1,512], index: 3, kind: input, shape index: {}]   ;;  %s9592_s4 = inlined_call_operand.hbm [shape: bf16[128,512], index: 4, kind: input, shape index: {}]   ;;  %s9593_s5 = inlined_call_operand.hbm [shape: bf16[128,512], index: 5, kind: input, shape index: {}]   ;;  %s9594_s6 = inlined_call_operand.hbm [shape: f32[1,512], index: 6, kind: input, shape index: {}]   ;;  %s9595_s7 = inlined_call_operand.hbm [shape: bf16[128,128], index: 7, kind: input, shape index: {}]   ;;  %s9596_s8 = inlined_call_operand.vmem [shape: f32[1,128], index: 8, kind: input, shape index: {}]   ;;  %s9597_s9 = inlined_call_operand.hbm [shape: bf16[128,128], index: 9, kind: input, shape index: {}]   ;;  %s9598_s10 = inlined_call_operand.hbm [shape: f32[1,128], index: 10, kind: input, shape index: {}]   ;;  %s9599_s11 = inlined_call_operand.hbm [shape: bf16[128,256], index: 11, kind: input, shape index: {}]   ;;  %s9600_s12 = inlined_call_operand.hbm [shape: f32[1,256], index: 12, kind: input, shape index: {}]   ;;  %s9601_s13 = inlined_call_operand.vmem [shape: bf16[256,128], index: 13, kind: input, shape index: {}]   ;;  %s9602_s14 = inlined_call_operand.vmem [shape: f32[1,128], index: 14, kind: input, shape index: {}]   ;;  %s9603_s15 = inlined_call_operand.vmem [shape: f32[8,128], index: 15, kind: output, shape index: {}]  }
   0x1   :  { %21 = vsyncpa [#allocation7], 0 }
   0x2   :  { %22 = vsyncpa [#allocation10], 0 }
   0x3   :  { %23 = vsyncpa [#allocation13], 0 }
   0x4   :  { %24 = vsyncpa [#allocation16], 0 }
   0x5   :  { %25 = vsyncpa [#allocation19], 0  ;;  %s8176_s18 = smov [#allocation6]   ;;  %s8177_s20 = smov [#allocation9]  }
   0x6   :  { %s45_s19 = sshll.u32 %s8176_s18, 4  ;;  %s67_s21 = sshll.u32 %s8177_s20, 4  ;;  %s46_s19 = int_to_ptr.vmem [resolvable:$true] %s45_s19  ;;  %s68_s21 = int_to_ptr.vmem [resolvable:$true] %s67_s21 }
   0x7   :  { %s7952_s22 = scalar_lea.vmem %s46_s19, 4096  ;;  %p7957_p1 = scmp.lt.s32.totalorder %s46_s19, %s46_s19 }
   0x8   :  { %p7953_p0 = scmp.ne.s32.totalorder %s46_s19, %s7952_s22  ;;  %p7958_p2 = scmp.lt.s32.totalorder %s7952_s22, %s7952_s22 }
   0xa   :  { %p7959_p3 = por %p7958_p2, %p7957_p1 }
   0xc   :  { %p7960_p4 = pnand %p7959_p3, %p7953_p0 }
   0xe   :  { %7963 = shalt.err (!%p7960_p4)
}
   0xf   :  { %s8178_s23 = smov 256   ;;  %s8179_s24 = smov 16  }
  0x10   :  { %51 = dma.hbm_to_vmem [thread:$0]  %s9590_s2, 4096, %s46_s19, [#allocation7], %s8178_s23, %s8178_s23, %s8179_s24  }
  0x11   :  { %s7972_s27 = scalar_lea.vmem %s68_s21, 4096  ;;  %p7977_p6 = scmp.lt.s32.totalorder %s68_s21, %s68_s21 }
  0x12   :  { %p7973_p5 = scmp.ne.s32.totalorder %s68_s21, %s7972_s27  ;;  %p7978_p7 = scmp.lt.s32.totalorder %s7972_s27, %s7972_s27 }
  0x14   :  { %p7979_p8 = por %p7978_p7, %p7977_p6 }
  0x16   :  { %p7980_p9 = pnand %p7979_p8, %p7973_p5 }
  0x18   :  { %7983 = shalt.err (!%p7980_p9)
}
  0x19   :  { %73 = dma.hbm_to_vmem [thread:$0]  %s9592_s4, 4096, %s68_s21, [#allocation10], %s8178_s23, %s8178_s23, %s8179_s24  }
  0x1a   :  { %s8180_s30 = smov [#allocation12]  }
  0x1b   :  { %s92_s16 = sshll.u32 %s8180_s30, 4  ;;  %s93_s16 = int_to_ptr.vmem [resolvable:$true] %s92_s16 }
  0x1c   :  { %s7992_s17 = scalar_lea.vmem %s93_s16, 64  ;;  %p7997_p11 = scmp.lt.s32.totalorder %s93_s16, %s93_s16 }
  0x1d   :  { %p7993_p10 = scmp.ne.s32.totalorder %s93_s16, %s7992_s17  ;;  %p7998_p12 = scmp.lt.s32.totalorder %s7992_s17, %s7992_s17 }
  0x1f   :  { %p7999_p13 = por %p7998_p12, %p7997_p11 }
  0x21   :  { %p8000_p0 = pnand %p7999_p13, %p7993_p10 }
  0x23   :  { %8003 = shalt.err (!%p8000_p0)
}
  0x24   :  { %95 = dma.hbm_to_vmem [thread:$0]  %s9594_s6, 64, %s93_s16, [#allocation13]  }
  0x25   :  { %s8181_s19 = smov [#allocation15]   ;;  %s8182_s22 = smov [#allocation18]  }
  0x26   :  { %s115_s20 = sshll.u32 %s8181_s19, 4  ;;  %s137_s25 = sshll.u32 %s8182_s22, 4  ;;  %s116_s20 = int_to_ptr.vmem [resolvable:$true] %s115_s20  ;;  %s138_s25 = int_to_ptr.vmem [resolvable:$true] %s137_s25 }
  0x27   :  { %s8012_s4 = scalar_lea.vmem %s116_s20, 1024  ;;  %p8017_p2 = scmp.lt.s32.totalorder %s116_s20, %s116_s20 }
  0x28   :  { %p8013_p1 = scmp.ne.s32.totalorder %s116_s20, %s8012_s4  ;;  %p8018_p3 = scmp.lt.s32.totalorder %s8012_s4, %s8012_s4 }
  0x2a   :  { %p8019_p4 = por %p8018_p3, %p8017_p2 }
  0x2c   :  { %p8020_p5 = pnand %p8019_p4, %p8013_p1 }
  0x2e   :  { %8023 = shalt.err (!%p8020_p5)
}
  0x2f   :  { %s8183_s21 = smov 64   ;;  %s8184_s26 = smov 4  }
  0x30   :  { %121 = dma.hbm_to_vmem [thread:$0]  %s9597_s9, 1024, %s116_s20, [#allocation16], %s8183_s21, %s8183_s21, %s8184_s26  }
  0x31   :  { %s8032_s6 = scalar_lea.vmem %s138_s25, 2048  ;;  %p8037_p7 = scmp.lt.s32.totalorder %s138_s25, %s138_s25 }
  0x32   :  { %p8033_p6 = scmp.ne.s32.totalorder %s138_s25, %s8032_s6  ;;  %p8038_p8 = scmp.lt.s32.totalorder %s8032_s6, %s8032_s6 }
  0x34   :  { %p8039_p9 = por %p8038_p8, %p8037_p7 }
  0x36   :  { %p8040_p10 = pnand %p8039_p9, %p8033_p6 }
  0x38   :  { %8043 = shalt.err (!%p8040_p10)
}
  0x39   :  { %s8185_s29 = smov 128   ;;  %s8186_s30 = smov 8  }
  0x3a   :  { %143 = dma.hbm_to_vmem [thread:$0]  %s9599_s11, 2048, %s138_s25, [#allocation19], %s8185_s29, %s8185_s29, %s8186_s30  }
  0x3b   :  { %s8187_s2 = smov [#allocation4]   ;;  %s8188_s19 = smov [#allocation8]  }
  0x3c   :  { %s33_s18 = sshll.u32 %s8187_s2, 4  ;;  %s58_s22 = sshll.u32 %s8188_s19, 4  ;;  %s34_s18 = int_to_ptr.vmem [resolvable:$true] %s33_s18  ;;  %s59_s22 = int_to_ptr.vmem [resolvable:$true] %s58_s22 }
  0x3d   :  { %s8052_s9 = scalar_lea.vmem %s34_s18, 4096  ;;  %p8057_p12 = scmp.lt.s32.totalorder %s34_s18, %s34_s18 }
  0x3e   :  { %p8053_p11 = scmp.ne.s32.totalorder %s34_s18, %s8052_s9  ;;  %p8058_p13 = scmp.lt.s32.totalorder %s8052_s9, %s8052_s9 }
  0x40   :  { %p8059_p0 = por %p8058_p13, %p8057_p12 }
  0x42   :  { %p8060_p1 = pnand %p8059_p0, %p8053_p11 }
  0x44   :  { %8063 = shalt.err (!%p8060_p1)
}
  0x45   :  { %39 = dma.hbm_to_vmem [thread:$0]  %s9589_s1, 4096, %s34_s18, [#allocation5], %s8178_s23, %s8178_s23, %s8179_s24  }
  0x46   :  { %s8072_s11 = scalar_lea.vmem %s59_s22, 64  ;;  %p8077_p3 = scmp.lt.s32.totalorder %s59_s22, %s59_s22 }
  0x47   :  { %p8073_p2 = scmp.ne.s32.totalorder %s59_s22, %s8072_s11  ;;  %p8078_p4 = scmp.lt.s32.totalorder %s8072_s11, %s8072_s11 }
  0x49   :  { %p8079_p5 = por %p8078_p4, %p8077_p3 }
  0x4b   :  { %p8080_p6 = pnand %p8079_p5, %p8073_p2 }
  0x4d   :  { %8083 = shalt.err (!%p8080_p6)
}
  0x4e   :  { %61 = dma.hbm_to_vmem [thread:$0]  %s9591_s3, 64, %s59_s22, [#allocation7]  }
  0x4f   :  { %s8189_s28 = smov [#allocation11]   ;;  %s8190_s29 = smov [#allocation14]  }
  0x50   :  { %s79_s6 = sshll.u32 %s8189_s28, 4  ;;  %s101_s30 = sshll.u32 %s8190_s29, 4  ;;  %s80_s6 = int_to_ptr.vmem [resolvable:$true] %s79_s6  ;;  %s102_s30 = int_to_ptr.vmem [resolvable:$true] %s101_s30 }
  0x51   :  { %s8092_s16 = scalar_lea.vmem %s80_s6, 4096  ;;  %p8097_p8 = scmp.lt.s32.totalorder %s80_s6, %s80_s6 }
  0x52   :  { %p8093_p7 = scmp.ne.s32.totalorder %s80_s6, %s8092_s16  ;;  %p8098_p9 = scmp.lt.s32.totalorder %s8092_s16, %s8092_s16 }
  0x54   :  { %p8099_p10 = por %p8098_p9, %p8097_p8 }
  0x56   :  { %p8100_p11 = pnand %p8099_p10, %p8093_p7 }
  0x58   :  { %8103 = shalt.err (!%p8100_p11)
}
  0x59   :  { %85 = dma.hbm_to_vmem [thread:$0]  %s9593_s5, 4096, %s80_s6, [#allocation10], %s8178_s23, %s8178_s23, %s8179_s24  }
  0x5a   :  { %s8112_s3 = scalar_lea.vmem %s102_s30, 1024  ;;  %p8117_p13 = scmp.lt.s32.totalorder %s102_s30, %s102_s30 }
  0x5b   :  { %p8113_p12 = scmp.ne.s32.totalorder %s102_s30, %s8112_s3  ;;  %p8118_p0 = scmp.lt.s32.totalorder %s8112_s3, %s8112_s3 }
  0x5d   :  { %p8119_p1 = por %p8118_p0, %p8117_p13 }
  0x5f   :  { %p8120_p2 = pnand %p8119_p1, %p8113_p12 }
  0x61   :  { %8123 = shalt.err (!%p8120_p2)
}
  0x62   :  { %107 = dma.hbm_to_vmem [thread:$0]  %s9595_s7, 1024, %s102_s30, [#allocation13], %s8183_s21, %s8183_s21, %s8184_s26  }
  0x63   :  { %s8191_s19 = smov [#allocation17]   ;;  %s8192_s9 = smov [#allocation20]  }
  0x64   :  { %s128_s22 = sshll.u32 %s8191_s19, 4  ;;  %s150_s5 = sshll.u32 %s8192_s9, 4  ;;  %s129_s22 = int_to_ptr.vmem [resolvable:$true] %s128_s22  ;;  %s151_s5 = int_to_ptr.vmem [resolvable:$true] %s150_s5 }
  0x65   :  { %s8132_s23 = scalar_lea.vmem %s129_s22, 16  ;;  %s8136_s24 = scalar_lea.vmem %s129_s22, 32 }
  0x66   :  { %p8133_p3 = scmp.ne.s32.totalorder %s129_s22, %s8132_s23  ;;  %p8137_p4 = scmp.lt.s32.totalorder %s129_s22, %s129_s22 }
  0x67   :  { %p8138_p5 = scmp.lt.s32.totalorder %s8136_s24, %s8132_s23 }
  0x69   :  { %p8139_p6 = por %p8138_p5, %p8137_p4 }
  0x6b   :  { %p8140_p7 = pnand %p8139_p6, %p8133_p3 }
  0x6d   :  { %8143 = shalt.err (!%p8140_p7)
}
  0x6e   :  { %131 = dma.hbm_to_vmem [thread:$0]  %s9598_s10, 16, %s129_s22, [#allocation16]  }
  0x6f   :  { %s8152_s11 = scalar_lea.vmem %s151_s5, 32  ;;  %p8157_p9 = scmp.lt.s32.totalorder %s151_s5, %s151_s5 }
  0x70   :  { %p8153_p8 = scmp.ne.s32.totalorder %s151_s5, %s8152_s11  ;;  %p8158_p10 = scmp.lt.s32.totalorder %s8152_s11, %s8152_s11 }
  0x72   :  { %p8159_p11 = por %p8158_p10, %p8157_p9 }
  0x74   :  { %p8160_p12 = pnand %p8159_p11, %p8153_p8 }
  0x76   :  { %8163 = shalt.err (!%p8160_p12)
}
  0x77   :  { %153 = dma.hbm_to_vmem [thread:$0]  %s9600_s12, 32, %s151_s5, [#allocation19]  }
  0x78   :  { %8164 = dma.done.wait [#allocation5], 4096  }
  0x79   :  { %8165 = vsyncadd [#allocation5], 4294963200 }
  0x7a   :  { %8166 = dma.done.wait [#allocation7], 4160  }
  0x7b   :  { %8167 = vsyncadd [#allocation7], 4294963136 }
  0x7c   :  { %8168 = dma.done.wait [#allocation10], 8192  }
  0x7d   :  { %8169 = vsyncadd [#allocation10], 4294959104 }
  0x7e   :  { %8170 = dma.done.wait [#allocation13], 1088  }
  0x7f   :  { %8171 = vsyncadd [#allocation13], 4294966208 }
  0x80   :  { %8172 = dma.done.wait [#allocation16], 1040  }
  0x81   :  { %8173 = vsyncadd [#allocation16], 4294966256 }
  0x82   :  { %8174 = dma.done.wait [#allocation19], 2080  }
  0x83   :  { %8175 = vsyncadd [#allocation19], 4294965216  ;;  %v9606_v0 = vmov 0   ;;  %v7322_v1 = vld [vmem:[#allocation4 + $0xe4] ss:$16 sps:$4 sm:$0xff]   ;;  %v193_v34 = vld [vmem:[%s9588_s0 + $0x8] sm:$0xff] }
  0x84   :  { %450 = vmatprep.mubr.bf16.mxu0 %v9606_v0  ;;  %523 = vmatprep.mubr.bf16.mxu1 %v9606_v0  ;;  %v7324_v2 = vld [vmem:[#allocation4 + $0xec] ss:$16 sps:$4 sm:$0xff]   ;;  %v7326_v3 = vld [vmem:[#allocation4 + $0xe0] ss:$16 sps:$4 sm:$0xff]   ;;  %v7327_v4 = vld [vmem:[#allocation4 + $0xe8] ss:$16 sps:$4 sm:$0xff]  }
  0x85   :  { %418 = vmatprep.subr.bf16.mxu0 %v7322_v1  ;;  %491 = vmatprep.subr.bf16.mxu1 %v7324_v2  ;;  %v7328_v5 = vld [vmem:[#allocation4 + $0xc4] ss:$16 sps:$4 sm:$0xff]   ;;  %v7330_v6 = vld [vmem:[#allocation4 + $0xcc] ss:$16 sps:$4 sm:$0xff]   ;;  %v7332_v7 = vld [vmem:[#allocation4 + $0xc0] ss:$16 sps:$4 sm:$0xff]  }
  0x86   :  { %419 = vmatpush1.bf16.msra.mxu0 %v7326_v3  ;;  %492 = vmatpush1.bf16.msra.mxu1 %v7327_v4  ;;  %v7333_v8 = vld [vmem:[#allocation4 + $0xc8] ss:$16 sps:$4 sm:$0xff]   ;;  %v7334_v9 = vld [vmem:[#allocation4 + $0xa4] ss:$16 sps:$4 sm:$0xff]   ;;  %v7336_v10 = vld [vmem:[#allocation4 + $0xac] ss:$16 sps:$4 sm:$0xff]  }
  0x87   :  { %420 = vmatprep.subr.bf16.mxu0 %v7328_v5  ;;  %493 = vmatprep.subr.bf16.mxu1 %v7330_v6  ;;  %v7338_v11 = vld [vmem:[#allocation4 + $0xa0] ss:$16 sps:$4 sm:$0xff]   ;;  %v7339_v12 = vld [vmem:[#allocation4 + $0xa8] ss:$16 sps:$4 sm:$0xff]   ;;  %v7340_v13 = vld [vmem:[#allocation4 + $0x84] ss:$16 sps:$4 sm:$0xff]  }
  0x88   :  { %v7342_v14 = vld [vmem:[#allocation4 + $0x8c] ss:$16 sps:$4 sm:$0xff]   ;;  %v7344_v15 = vld [vmem:[#allocation4 + $0x80] ss:$16 sps:$4 sm:$0xff]   ;;  %v7345_v16 = vld [vmem:[#allocation4 + $0x88] ss:$16 sps:$4 sm:$0xff]  }
  0x89   :  { %v7346_v17 = vld [vmem:[#allocation4 + $0x64] ss:$16 sps:$4 sm:$0xff]   ;;  %v7348_v18 = vld [vmem:[#allocation4 + $0x6c] ss:$16 sps:$4 sm:$0xff]   ;;  %v7350_v19 = vld [vmem:[#allocation4 + $0x60] ss:$16 sps:$4 sm:$0xff]  }
  0x8a   :  { %421 = vmatpush1.bf16.msra.mxu0 %v7332_v7  ;;  %494 = vmatpush1.bf16.msra.mxu1 %v7333_v8  ;;  %v7351_v20 = vld [vmem:[#allocation4 + $0x68] ss:$16 sps:$4 sm:$0xff]   ;;  %v7352_v21 = vld [vmem:[#allocation4 + $0x44] ss:$16 sps:$4 sm:$0xff]   ;;  %v7354_v22 = vld [vmem:[#allocation4 + $0x4c] ss:$16 sps:$4 sm:$0xff]  }
  0x8b   :  { %422 = vmatprep.subr.bf16.mxu0 %v7334_v9  ;;  %495 = vmatprep.subr.bf16.mxu1 %v7336_v10  ;;  %v7356_v23 = vld [vmem:[#allocation4 + $0x40] ss:$16 sps:$4 sm:$0xff]   ;;  %v7357_v24 = vld [vmem:[#allocation4 + $0x48] ss:$16 sps:$4 sm:$0xff]   ;;  %v7358_v25 = vld [vmem:[#allocation4 + $0x24] ss:$16 sps:$4 sm:$0xff]  }
  0x8c   :  { %v7360_v26 = vld [vmem:[#allocation4 + $0x2c] ss:$16 sps:$4 sm:$0xff]   ;;  %v7362_v27 = vld [vmem:[#allocation4 + $0x20] ss:$16 sps:$4 sm:$0xff]   ;;  %v7363_v28 = vld [vmem:[#allocation4 + $0x28] ss:$16 sps:$4 sm:$0xff]  }
  0x8d   :  { %v7364_v29 = vld [vmem:[#allocation4 + $0x4] ss:$16 sps:$4 sm:$0xff]   ;;  %v7366_v30 = vld [vmem:[#allocation4 + $0xc] ss:$16 sps:$4 sm:$0xff]   ;;  %v7368_v31 = vld [vmem:[#allocation4] ss:$16 sps:$4 sm:$0xff]  }
  0x8e   :  { %423 = vmatpush1.bf16.msra.mxu0 %v7338_v11  ;;  %496 = vmatpush1.bf16.msra.mxu1 %v7339_v12  ;;  %v7369_v32 = vld [vmem:[#allocation4 + $0x8] ss:$16 sps:$4 sm:$0xff]   ;;  %v192_v33 = vld [vmem:[%s9588_s0] sm:$0xff]  ;;  %v8337_v36 = vld [vmem:[#allocation6 + $0xec] ss:$16 sps:$4 sm:$0xff]   ;;  %vm8195_vm0 = vmmov 0  }
  0x8f   :  { %424 = vmatprep.subr.bf16.mxu0 %v7340_v13  ;;  %497 = vmatprep.subr.bf16.mxu1 %v7342_v14  ;;  %v8335_v35 = vld [vmem:[#allocation6 + $0xe4] ss:$16 sps:$4 sm:$0xff]   ;;  %v200_v37 = vpack.c.bf16 %v193_v34, %v192_v33  ;;  %v8339_v38 = vld [vmem:[#allocation6 + $0xe0] ss:$16 sps:$4 sm:$0xff]   ;;  %v8341_v39 = vld [vmem:[#allocation6 + $0xe8] ss:$16 sps:$4 sm:$0xff]   ;;  %v238_v14 = vlaneseq }
  0x90   :  { %v8345_v40 = vld [vmem:[#allocation6 + $0xc4] ss:$16 sps:$4 sm:$0xff]   ;;  %v8347_v41 = vld [vmem:[#allocation6 + $0xcc] ss:$16 sps:$4 sm:$0xff]   ;;  %v8349_v42 = vld [vmem:[#allocation6 + $0xc0] ss:$16 sps:$4 sm:$0xff]  }
  0x91   :  { %v8351_v43 = vld [vmem:[#allocation6 + $0xc8] ss:$16 sps:$4 sm:$0xff]   ;;  %v194_v44 = vld [vmem:[%s9588_s0 + $0x10] sm:$0xff]  ;;  %v8365_v47 = vld [vmem:[#allocation6 + $0xac] ss:$16 sps:$4 sm:$0xff]  }
  0x92   :  { %425 = vmatpush1.bf16.msra.mxu0 %v7344_v15  ;;  %498 = vmatpush1.bf16.msra.mxu1 %v7345_v16  ;;  %v195_v45 = vld [vmem:[%s9588_s0 + $0x18] sm:$0xff]  ;;  %v8363_v46 = vld [vmem:[#allocation6 + $0xa4] ss:$16 sps:$4 sm:$0xff]   ;;  %v8369_v49 = vld [vmem:[#allocation6 + $0xa0] ss:$16 sps:$4 sm:$0xff]   ;;  %v8495_v15 = vshrl.u32 %v238_v14, 7 }
  0x93   :  { %426 = vmatprep.subr.bf16.mxu0 %v7346_v17  ;;  %499 = vmatprep.subr.bf16.mxu1 %v7348_v18  ;;  %v201_v48 = vpack.c.bf16 %v195_v45, %v194_v44  ;;  %v8371_v50 = vld [vmem:[#allocation6 + $0xa8] ss:$16 sps:$4 sm:$0xff]   ;;  %v8375_v51 = vld [vmem:[#allocation6 + $0x84] ss:$16 sps:$4 sm:$0xff]   ;;  %v8379_v52 = vld [vmem:[#allocation6 + $0x8c] ss:$16 sps:$4 sm:$0xff]  }
  0x94   :  { %v8381_v53 = vld [vmem:[#allocation6 + $0x80] ss:$16 sps:$4 sm:$0xff]   ;;  %v8383_v54 = vld [vmem:[#allocation6 + $0x88] ss:$16 sps:$4 sm:$0xff]   ;;  %v8395_v57 = vld [vmem:[#allocation6 + $0x64] ss:$16 sps:$4 sm:$0xff]  }
  0x95   :  { %v196_v55 = vld [vmem:[%s9588_s0 + $0x20] sm:$0xff]  ;;  %v197_v56 = vld [vmem:[%s9588_s0 + $0x28] sm:$0xff]  ;;  %v198_v3 = vld [vmem:[%s9588_s0 + $0x30] sm:$0xff]  ;;  %9614 = vst [vmem:[#allocation27_spill] sm:$0xff] %v8495_v15  ;;  %v9604_v16 = vsub.s32 2, %v8495_v15  ;;  %v8499_v17 = vsub.s32 0, %v8495_v15 }
  0x96   :  { %427 = vmatpush1.bf16.msra.mxu0 %v7350_v19  ;;  %500 = vmatpush1.bf16.msra.mxu1 %v7351_v20  ;;  %v8397_v58 = vld [vmem:[#allocation6 + $0x6c] ss:$16 sps:$4 sm:$0xff]   ;;  %v8401_v59 = vld [vmem:[#allocation6 + $0x60] ss:$16 sps:$4 sm:$0xff]   ;;  %v8403_v60 = vld [vmem:[#allocation6 + $0x68] ss:$16 sps:$4 sm:$0xff]   ;;  %v202_v61 = vpack.c.bf16 %v197_v56, %v196_v55 }
  0x97   :  { %428 = vmatprep.subr.bf16.mxu0 %v7352_v21  ;;  %501 = vmatprep.subr.bf16.mxu1 %v7354_v22  ;;  %v8405_v62 = vld [vmem:[#allocation6 + $0x44] ss:$16 sps:$4 sm:$0xff]   ;;  %v8407_v63 = vld [vmem:[#allocation6 + $0x4c] ss:$16 sps:$4 sm:$0xff]   ;;  %v8413_v1 = vld [vmem:[#allocation6 + $0x40] ss:$16 sps:$4 sm:$0xff]  }
  0x98   :  { %v8415_v2 = vld [vmem:[#allocation6 + $0x48] ss:$16 sps:$4 sm:$0xff]   ;;  %v8423_v5 = vld [vmem:[#allocation6 + $0x24] ss:$16 sps:$4 sm:$0xff]   ;;  %v8425_v6 = vld [vmem:[#allocation6 + $0x2c] ss:$16 sps:$4 sm:$0xff]  }
  0x99   :  { %v199_v4 = vld [vmem:[%s9588_s0 + $0x38] sm:$0xff]  ;;  %v8433_v7 = vld [vmem:[#allocation6 + $0x20] ss:$16 sps:$4 sm:$0xff]   ;;  %v8437_v10 = vld [vmem:[#allocation6 + $0x4] ss:$16 sps:$4 sm:$0xff]   ;;  %9615 = vst [vmem:[#allocation28_spill] sm:$0xff] %v8499_v17 }
  0x9a   :  { %429 = vmatpush1.bf16.msra.mxu0 %v7356_v23  ;;  %502 = vmatpush1.bf16.msra.mxu1 %v7357_v24  ;;  %v8435_v8 = vld [vmem:[#allocation6 + $0x28] ss:$16 sps:$4 sm:$0xff]   ;;  %v203_v9 = vpack.c.bf16 %v199_v4, %v198_v3  ;;  %v8439_v11 = vld [vmem:[#allocation6 + $0xc] ss:$16 sps:$4 sm:$0xff]   ;;  %v8445_v12 = vld [vmem:[#allocation6] ss:$16 sps:$4 sm:$0xff]  }
  0x9b   :  { %430 = vmatprep.subr.bf16.mxu0 %v7358_v25  ;;  %503 = vmatprep.subr.bf16.mxu1 %v7360_v26  ;;  %v8447_v13 = vld [vmem:[#allocation6 + $0x8] ss:$16 sps:$4 sm:$0xff]   ;;  %v9605_v18 = vsub.s32 3, %v8495_v15  ;;  %v236_v19 = vld [vmem:[#allocation8] sm:$0xf]  ;;  %v8511_v23 = vsub.s32 1, %v8495_v15 }
  0x9c   :  { %v8508_v22 = vrot.slane %v236_v19, %v9604_v16  ;;  %v241_v26 = vrot.slane %v236_v19, %v8499_v17 }
  0x9d   :  { %9616 = vst [vmem:[#allocation29_spill] sm:$0xff] %v8511_v23 }
  0x9e   :  { %431 = vmatpush1.bf16.msra.mxu0 %v7362_v27  ;;  %504 = vmatpush1.bf16.msra.mxu1 %v7363_v28  ;;  %v8520_v27 = vrot.slane %v236_v19, %v9605_v18 }
  0x9f   :  { %432 = vmatprep.subr.bf16.mxu0 %v7364_v29  ;;  %505 = vmatprep.subr.bf16.mxu1 %v7366_v30  ;;  %v245_v30 = vrot.slane %v236_v19, %v8511_v23 }
  0xa2   :  { %433 = vmatpush1.bf16.msra.mxu0 %v7368_v31  ;;  %506 = vmatpush1.bf16.msra.mxu1 %v7369_v32 }
  0xa3   :  { %795 = vmatprep.subr.bf16.mxu0 %v8335_v35  ;;  %836 = vmatprep.subr.bf16.mxu1 %v8337_v36 }
  0xa5   :  { %451 = vmatmul.mubr.bf16.vlgmr.msra.gmra.mxu0 %v200_v37  ;;  %524 = vmatmul.mubr.bf16.vlgmr.msra.gmra.mxu1 %v200_v37 }
  0xa6   :  { %796 = vmatpush1.bf16.msra.mxu0 %v8339_v38  ;;  %837 = vmatpush1.bf16.msra.mxu1 %v8341_v39 }
  0xa7   :  { %797 = vmatprep.subr.bf16.mxu0 %v8345_v40  ;;  %838 = vmatprep.subr.bf16.mxu1 %v8347_v41 }
  0xa8   :  { %460 = vmatprep.mubr.bf16.mxu0 %v9606_v0  ;;  %533 = vmatprep.mubr.bf16.mxu1 %v9606_v0 }
  0xaa   :  { %798 = vmatpush1.bf16.msra.mxu0 %v8349_v42  ;;  %839 = vmatpush1.bf16.msra.mxu1 %v8351_v43 }
  0xab   :  { %799 = vmatprep.subr.bf16.mxu0 %v8363_v46  ;;  %840 = vmatprep.subr.bf16.mxu1 %v8365_v47 }
  0xad   :  { %461 = vmatmul.mubr.bf16.gmra.mxu0 %v201_v48  ;;  %534 = vmatmul.mubr.bf16.gmra.mxu1 %v201_v48 }
  0xae   :  { %800 = vmatpush1.bf16.msra.mxu0 %v8369_v49  ;;  %841 = vmatpush1.bf16.msra.mxu1 %v8371_v50 }
  0xaf   :  { %801 = vmatprep.subr.bf16.mxu0 %v8375_v51  ;;  %842 = vmatprep.subr.bf16.mxu1 %v8379_v52 }
  0xb0   :  { %470 = vmatprep.mubr.bf16.mxu0 %v9606_v0  ;;  %543 = vmatprep.mubr.bf16.mxu1 %v9606_v0 }
  0xb2   :  { %802 = vmatpush1.bf16.msra.mxu0 %v8381_v53  ;;  %843 = vmatpush1.bf16.msra.mxu1 %v8383_v54 }
  0xb3   :  { %803 = vmatprep.subr.bf16.mxu0 %v8395_v57  ;;  %844 = vmatprep.subr.bf16.mxu1 %v8397_v58 }
  0xb5   :  { %471 = vmatmul.mubr.bf16.gmra.mxu0 %v202_v61  ;;  %544 = vmatmul.mubr.bf16.gmra.mxu1 %v202_v61 }
  0xb6   :  { %804 = vmatpush1.bf16.msra.mxu0 %v8401_v59  ;;  %845 = vmatpush1.bf16.msra.mxu1 %v8403_v60 }
  0xb7   :  { %805 = vmatprep.subr.bf16.mxu0 %v8405_v62  ;;  %846 = vmatprep.subr.bf16.mxu1 %v8407_v63 }
  0xb8   :  { %480 = vmatprep.mubr.bf16.mxu0 %v9606_v0  ;;  %553 = vmatprep.mubr.bf16.mxu1 %v9606_v0 }
  0xba   :  { %806 = vmatpush1.bf16.msra.mxu0 %v8413_v1  ;;  %847 = vmatpush1.bf16.msra.mxu1 %v8415_v2 }
  0xbb   :  { %807 = vmatprep.subr.bf16.mxu0 %v8423_v5  ;;  %848 = vmatprep.subr.bf16.mxu1 %v8425_v6 }
  0xbd   :  { %481 = vmatmul.mubr.bf16.gmra.mxu0 %v203_v9  ;;  %554 = vmatmul.mubr.bf16.gmra.mxu1 %v203_v9 }
  0xbe   :  { %808 = vmatpush1.bf16.msra.mxu0 %v8433_v7  ;;  %849 = vmatpush1.bf16.msra.mxu1 %v8435_v8 }
  0xbf   :  { %809 = vmatprep.subr.bf16.mxu0 %v8437_v10  ;;  %850 = vmatprep.subr.bf16.mxu1 %v8439_v11 }
  0xc0   :  { %827 = vmatprep.mubr.bf16.mxu0 %v9606_v0  ;;  %868 = vmatprep.mubr.bf16.mxu1 %v9606_v0 }
  0xc2   :  { %810 = vmatpush1.bf16.msra.mxu0 %v8445_v12  ;;  %851 = vmatpush1.bf16.msra.mxu1 %v8447_v13 }
  0xc3   :  { %1106 = vmatprep.subr.bf16.mxu0 %v8335_v35  ;;  %1147 = vmatprep.subr.bf16.mxu1 %v8337_v36 }
  0xc5   :  { %828 = vmatmul.mubr.bf16.vlgmr.msra.gmra.mxu0 %v9606_v0  ;;  %869 = vmatmul.mubr.bf16.vlgmr.msra.gmra.mxu1 %v9606_v0 }
  0xc6   :  { %1107 = vmatpush1.bf16.msra.mxu0 %v8339_v38  ;;  %1148 = vmatpush1.bf16.msra.mxu1 %v8341_v39 }
  0xc7   :  { %1108 = vmatprep.subr.bf16.mxu0 %v8345_v40  ;;  %1149 = vmatprep.subr.bf16.mxu1 %v8347_v41 }
  0xc8   :  { %1138 = vmatprep.mubr.bf16.mxu0 %v9606_v0  ;;  %1179 = vmatprep.mubr.bf16.mxu1 %v9606_v0 }
  0xca   :  { %1109 = vmatpush1.bf16.msra.mxu0 %v8349_v42  ;;  %1150 = vmatpush1.bf16.msra.mxu1 %v8351_v43 }
  0xcb   :  { %1110 = vmatprep.subr.bf16.mxu0 %v8363_v46  ;;  %1151 = vmatprep.subr.bf16.mxu1 %v8365_v47 }
  0xce   :  { %1111 = vmatpush1.bf16.msra.mxu0 %v8369_v49  ;;  %1152 = vmatpush1.bf16.msra.mxu1 %v8371_v50 }
  0xcf   :  { %1112 = vmatprep.subr.bf16.mxu0 %v8375_v51  ;;  %1153 = vmatprep.subr.bf16.mxu1 %v8379_v52 }
  0xd2   :  { %1113 = vmatpush1.bf16.msra.mxu0 %v8381_v53  ;;  %1154 = vmatpush1.bf16.msra.mxu1 %v8383_v54 }
  0xd3   :  { %1114 = vmatprep.subr.bf16.mxu0 %v8395_v57  ;;  %1155 = vmatprep.subr.bf16.mxu1 %v8397_v58 }
  0xd6   :  { %1115 = vmatpush1.bf16.msra.mxu0 %v8401_v59  ;;  %1156 = vmatpush1.bf16.msra.mxu1 %v8403_v60 }
  0xd7   :  { %1116 = vmatprep.subr.bf16.mxu0 %v8405_v62  ;;  %1157 = vmatprep.subr.bf16.mxu1 %v8407_v63 }
  0xda   :  { %1117 = vmatpush1.bf16.msra.mxu0 %v8413_v1  ;;  %1158 = vmatpush1.bf16.msra.mxu1 %v8415_v2 }
  0xdb   :  { %1118 = vmatprep.subr.bf16.mxu0 %v8423_v5  ;;  %1159 = vmatprep.subr.bf16.mxu1 %v8425_v6 }
  0xde   :  { %1119 = vmatpush1.bf16.msra.mxu0 %v8433_v7  ;;  %1160 = vmatpush1.bf16.msra.mxu1 %v8435_v8 }
  0xdf   :  { %1120 = vmatprep.subr.bf16.mxu0 %v8437_v10  ;;  %1161 = vmatprep.subr.bf16.mxu1 %v8439_v11 }
  0xe2   :  { %1121 = vmatpush1.bf16.msra.mxu0 %v8445_v12  ;;  %1162 = vmatpush1.bf16.msra.mxu1 %v8447_v13 }
  0xe3   :  { %1418 = vmatprep.subr.bf16.mxu0 %v8335_v35  ;;  %1459 = vmatprep.subr.bf16.mxu1 %v8337_v36 }
 0x165   :  { %v8502_v20 = vpop.f32.mrf.mxu0  ;;  %v8504_v21 = vpop.f32.mrf.mxu1 }
 0x167   :  { %v8513_v24 = vpop.f32.mrf.mxu0  ;;  %v8515_v25 = vpop.f32.mrf.mxu1 }
 0x169   :  { %v456_v28 = vpop.f32.mrf.mxu0  ;;  %v529_v29 = vpop.f32.mrf.mxu1 }
 0x16a   :  { %v8523_v31 = vadd.f32 %v456_v28, %v241_v26  ;;  %v8526_v32 = vadd.f32 %v529_v29, %v8508_v22 }
 0x16b   :  { %v458_v33 = vpop.f32.mrf.mxu0  ;;  %v531_v34 = vpop.f32.mrf.mxu1 }
 0x16c   :  { %v8528_v35 = vadd.f32 %v458_v33, %v245_v30  ;;  %v8531_v37 = vadd.f32 %v531_v34, %v8520_v27 }
 0x16d   :  { %v462_v44 = vpop.f32.mrf.mxu0  ;;  %v535_v45 = vpop.f32.mrf.mxu1 }
 0x16e   :  { %v8533_v48 = vadd.f32 %v462_v44, %v241_v26  ;;  %v8536_v55 = vadd.f32 %v535_v45, %v8508_v22 }
 0x16f   :  { %v464_v56 = vpop.f32.mrf.mxu0  ;;  %v537_v61 = vpop.f32.mrf.mxu1 }
 0x170   :  { %v8538_v3 = vadd.f32 %v464_v56, %v245_v30  ;;  %v8541_v4 = vadd.f32 %v537_v61, %v8520_v27 }
 0x171   :  { %v466_v9 = vpop.f32.mrf.mxu0  ;;  %v539_v14 = vpop.f32.mrf.mxu1 }
 0x172   :  { %v8543_v19 = vadd.f32 %v466_v9, %v241_v26  ;;  %v8546_v28 = vadd.f32 %v539_v14, %v8508_v22 }
 0x173   :  { %v468_v29 = vpop.f32.mrf.mxu0  ;;  %v541_v33 = vpop.f32.mrf.mxu1 }
 0x174   :  { %9617 = vst [vmem:[#allocation30_spill] sm:$0xff] %v8543_v19  ;;  %9618 = vst [vmem:[#allocation31_spill] sm:$0xff] %v8546_v28  ;;  %v8548_v34 = vadd.f32 %v468_v29, %v245_v30  ;;  %v8551_v44 = vadd.f32 %v541_v33, %v8520_v27 }
 0x175   :  { %v472_v45 = vpop.f32.mrf.mxu0  ;;  %v545_v56 = vpop.f32.mrf.mxu1 }
 0x176   :  { %9619 = vst [vmem:[#allocation32_spill] sm:$0xff] %v8548_v34  ;;  %9620 = vst [vmem:[#allocation33_spill] sm:$0xff] %v8551_v44  ;;  %v8553_v16 = vadd.f32 %v472_v45, %v241_v26  ;;  %v8556_v61 = vadd.f32 %v545_v56, %v8508_v22 }
 0x177   :  { %v474_v18 = vpop.f32.mrf.mxu0  ;;  %v547_v9 = vpop.f32.mrf.mxu1 }
 0x178   :  { %9621 = vst [vmem:[#allocation34_spill] sm:$0xff] %v8553_v16  ;;  %9622 = vst [vmem:[#allocation35_spill] sm:$0xff] %v8556_v61  ;;  %v8558_v0 = vadd.f32 %v474_v18, %v245_v30  ;;  %v8561_v14 = vadd.f32 %v547_v9, %v8520_v27 }
 0x179   :  { %v476_v15 = vpop.f32.mrf.mxu0  ;;  %v549_v29 = vpop.f32.mrf.mxu1 }
 0x17a   :  { %9623 = vst [vmem:[#allocation36_spill] sm:$0xff] %v8558_v0  ;;  %9624 = vst [vmem:[#allocation37_spill] sm:$0xff] %v8561_v14  ;;  %v8563_v23 = vadd.f32 %v476_v15, %v241_v26  ;;  %v8566_v33 = vadd.f32 %v549_v29, %v8508_v22 }
 0x17b   :  { %v478_v17 = vpop.f32.mrf.mxu0  ;;  %v551_v45 = vpop.f32.mrf.mxu1 }
 0x17c   :  { %9625 = vst [vmem:[#allocation38_spill] sm:$0xff] %v8563_v23  ;;  %9626 = vst [vmem:[#allocation39_spill] sm:$0xff] %v8566_v33  ;;  %v8568_v16 = vadd.f32 %v478_v17, %v245_v30  ;;  %v8571_v56 = vadd.f32 %v551_v45, %v8520_v27 }
 0x17d   :  { %v482_v61 = vpop.f32.mrf.mxu0  ;;  %v555_v18 = vpop.f32.mrf.mxu1 }
 0x17e   :  { %9627 = vst [vmem:[#allocation40_spill] sm:$0xff] %v8568_v16  ;;  %9628 = vst [vmem:[#allocation41_spill] sm:$0xff] %v8571_v56  ;;  %v8573_v0 = vadd.f32 %v482_v61, %v241_v26  ;;  %v8576_v9 = vadd.f32 %v555_v18, %v8508_v22 }
 0x17f   :  { %v484_v14 = vpop.f32.mrf.mxu0  ;;  %v557_v15 = vpop.f32.mrf.mxu1 }
 0x180   :  { %9629 = vst [vmem:[#allocation42_spill] sm:$0xff] %v8573_v0  ;;  %9630 = vst [vmem:[#allocation43_spill] sm:$0xff] %v8576_v9  ;;  %v8578_v23 = vadd.f32 %v484_v14, %v245_v30  ;;  %v8581_v29 = vadd.f32 %v557_v15, %v8520_v27  ;;  %v453_v0 = vadd.f32 %v8502_v20, %v241_v26 }
 0x181   :  { %v486_v33 = vpop.f32.mrf.mxu0  ;;  %v559_v17 = vpop.f32.mrf.mxu1  ;;  %v455_v15 = vadd.f32 %v8513_v24, %v245_v30 }
 0x182   :  { %9631 = vst [vmem:[#allocation44_spill] sm:$0xff] %v8578_v23  ;;  %9632 = vst [vmem:[#allocation45_spill] sm:$0xff] %v8581_v29  ;;  %v8583_v16 = vadd.f32 %v486_v33, %v241_v26  ;;  %v8586_v45 = vadd.f32 %v559_v17, %v8508_v22  ;;  %v528_v26 = vadd.f32 %v8515_v25, %v8520_v27 }
 0x183   :  { %v488_v56 = vpop.f32.mrf.mxu0  ;;  %v561_v61 = vpop.f32.mrf.mxu1 }
 0x184   :  { %9633 = vst [vmem:[#allocation46_spill] sm:$0xff] %v8583_v16  ;;  %9634 = vst [vmem:[#allocation47_spill] sm:$0xff] %v8586_v45  ;;  %v8589_v18 = vadd.f32 %v488_v56, %v245_v30  ;;  %v8592_v9 = vadd.f32 %v561_v61, %v8520_v27  ;;  %v526_v61 = vadd.f32 %v8504_v21, %v8508_v22 }
 0x185   :  { %v829_v14 = vpop.f32.mrf.mxu0  ;;  %v870_v23 = vpop.f32.mrf.mxu1 }
 0x186   :  { %v877_v29 = vadd.f32 %v829_v14, %v453_v0  ;;  %v879_v30 = vadd.f32 %v870_v23, %v526_v61 }
 0x187   :  { %v831_v28 = vpop.f32.mrf.mxu0  ;;  %v872_v33 = vpop.f32.mrf.mxu1 }
 0x188   :  { %v6611_v16 = vmul.f32 -1.442695, %v877_v29  ;;  %v878_v44 = vadd.f32 %v831_v28, %v455_v15  ;;  %v880_v56 = vadd.f32 %v872_v33, %v528_v26 }
 0x189   :  { %v833_v17 = vpop.f32.mrf.mxu0  ;;  %v874_v45 = vpop.f32.mrf.mxu1 }
 0x18a   :  { %7666 = vpow2.f32 %v6611_v16  ;;  %v6612_v34 = vmul.f32 -1.442695, %v878_v44  ;;  %v6613_v24 = vmul.f32 -1.442695, %v880_v56  ;;  %v9635_v17 = vmov 0  }
 0x18b   :  { %v834_v19 = vpop.f32.mrf.mxu0  ;;  %v875_v20 = vpop.f32.mrf.mxu1 }
 0x18c   :  { %7668 = vpow2.f32 %v6612_v34 }
 0x18d   :  { %7670 = vpow2.f32 %v6613_v24 }
 0x197   :  { %v7667_v0 = vpop.eup %7666 }
 0x198   :  { %v884_v14 = vadd.f32 1.0, %v7667_v0 }
 0x199   :  { %v7669_v29 = vpop.eup %7668 }
 0x19a   :  { %7672 = vrcp.f32 %v884_v14  ;;  %v890_v28 = vadd.f32 1.0, %v7669_v29  ;;  %v7671_v16 = vpop.eup %7670 }
 0x19b   :  { %7674 = vtanh.f32 %v879_v30  ;;  %v897_v45 = vadd.f32 1.0, %v7671_v16 }
 0x19c   :  { %7676 = vrcp.f32 %v890_v28 }
 0x19d   :  { %7678 = vrcp.f32 %v897_v45  ;;  %v7931_v45 = vld [vmem:[#allocation6 + $0xe0] ss:$16 sps:$4 sm:$0xff]  }
 0x1a7   :  { %v7673_v19 = vpop.eup %7672 }
 0x1a8   :  { %v7675_v34 = vpop.eup %7674 }
 0x1a9   :  { %v7677_v44 = vpop.eup %7676  ;;  %v901_v27 = vmul.f32 %v7675_v34, %v7673_v19 }
 0x1aa   :  { %v900_v25 = vmul.f32 0.0, %v7677_v44  ;;  %v7679_v21 = vpop.eup %7678 }
 0x1ac   :  { %v8599_v15 = vadd.f32 %v901_v27, %v900_v25  ;;  %v7932_v25 = vld [vmem:[#allocation6 + $0xe8] ss:$16 sps:$4 sm:$0xff]   ;;  %v7933_v27 = vld [vmem:[#allocation6 + $0xc4] ss:$16 sps:$4 sm:$0xff]  }
 0x1ae   :  { %7680 = vtanh.f32 %v8599_v15 }
 0x1bb   :  { %v7681_v22 = vpop.eup %7680 }
 0x1bc   :  { %v8602_v23 = vmul.f32 %v7681_v22, %v7679_v21  ;;  %v7935_v21 = vld [vmem:[#allocation6 + $0xc0] ss:$16 sps:$4 sm:$0xff]   ;;  %v7936_v22 = vld [vmem:[#allocation6 + $0xc8] ss:$16 sps:$4 sm:$0xff]  }
 0x1be   :  { %v913_v33 = vpack.c.bf16 %v8602_v23, %v8602_v23 }
 0x1c0   :  { %1139 = vmatmul.mubr.bf16.vlgmr.msra.gmra.mxu0 %v913_v33  ;;  %1180 = vmatmul.mubr.bf16.vlgmr.msra.gmra.mxu1 %v913_v33  ;;  %v7937_v33 = vld [vmem:[#allocation6 + $0xa4] ss:$16 sps:$4 sm:$0xff]  }
 0x1c1   :  { %1419 = vmatpush1.bf16.msra.mxu0 %v8339_v38  ;;  %1460 = vmatpush1.bf16.msra.mxu1 %v8341_v39  ;;  %v7930_v38 = vld [vmem:[#allocation6 + $0xe4] ss:$16 sps:$4 sm:$0xff]  }
 0x1c2   :  { %1420 = vmatprep.subr.bf16.mxu0 %v8345_v40  ;;  %1461 = vmatprep.subr.bf16.mxu1 %v8347_v41 }
 0x1c3   :  { %1450 = vmatprep.mubr.bf16.mxu0 %v9635_v17  ;;  %1491 = vmatprep.mubr.bf16.mxu1 %v9635_v17 }
 0x1c5   :  { %1421 = vmatpush1.bf16.msra.mxu0 %v8349_v42  ;;  %1462 = vmatpush1.bf16.msra.mxu1 %v8351_v43 }
 0x1c6   :  { %1422 = vmatprep.subr.bf16.mxu0 %v8363_v46  ;;  %1463 = vmatprep.subr.bf16.mxu1 %v8365_v47 }
 0x1c9   :  { %1423 = vmatpush1.bf16.msra.mxu0 %v8369_v49  ;;  %1464 = vmatpush1.bf16.msra.mxu1 %v8371_v50 }
 0x1ca   :  { %1424 = vmatprep.subr.bf16.mxu0 %v8375_v51  ;;  %1465 = vmatprep.subr.bf16.mxu1 %v8379_v52 }
 0x1cd   :  { %1425 = vmatpush1.bf16.msra.mxu0 %v8381_v53  ;;  %1466 = vmatpush1.bf16.msra.mxu1 %v8383_v54 }
 0x1ce   :  { %1426 = vmatprep.subr.bf16.mxu0 %v8395_v57  ;;  %1467 = vmatprep.subr.bf16.mxu1 %v8397_v58 }
 0x1d1   :  { %1427 = vmatpush1.bf16.msra.mxu0 %v8401_v59  ;;  %1468 = vmatpush1.bf16.msra.mxu1 %v8403_v60 }
 0x1d2   :  { %1428 = vmatprep.subr.bf16.mxu0 %v8405_v62  ;;  %1469 = vmatprep.subr.bf16.mxu1 %v8407_v63 }
 0x1d5   :  { %1429 = vmatpush1.bf16.msra.mxu0 %v8413_v1  ;;  %1470 = vmatpush1.bf16.msra.mxu1 %v8415_v2 }
 0x1d6   :  { %1430 = vmatprep.subr.bf16.mxu0 %v8423_v5  ;;  %1471 = vmatprep.subr.bf16.mxu1 %v8425_v6 }
 0x1d9   :  { %1431 = vmatpush1.bf16.msra.mxu0 %v8433_v7  ;;  %1472 = vmatpush1.bf16.msra.mxu1 %v8435_v8 }
 0x1da   :  { %1432 = vmatprep.subr.bf16.mxu0 %v8437_v10  ;;  %1473 = vmatprep.subr.bf16.mxu1 %v8439_v11 }
 0x1dd   :  { %1433 = vmatpush1.bf16.msra.mxu0 %v8445_v12  ;;  %1474 = vmatpush1.bf16.msra.mxu1 %v8447_v13 }
 0x1de   :  { %1730 = vmatprep.subr.bf16.mxu0 %v7930_v38  ;;  %1771 = vmatprep.subr.bf16.mxu1 %v8337_v36  ;;  %v7938_v38 = vld [vmem:[#allocation6 + $0xac] ss:$16 sps:$4 sm:$0xff]  }
 0x280   :  { %v1140_v39 = vpop.f32.mrf.mxu0  ;;  %v1181_v40 = vpop.f32.mrf.mxu1 }
 0x281   :  { %v1188_v41 = vadd.f32 %v1140_v39, %v8523_v31  ;;  %v1190_v36 = vadd.f32 %v1181_v40, %v8526_v32  ;;  %v7939_v39 = vld [vmem:[#allocation6 + $0xa0] ss:$16 sps:$4 sm:$0xff]   ;;  %v7940_v40 = vld [vmem:[#allocation6 + $0xa8] ss:$16 sps:$4 sm:$0xff]  }
 0x282   :  { %v1142_v42 = vpop.f32.mrf.mxu0  ;;  %v1183_v43 = vpop.f32.mrf.mxu1 }
 0x283   :  { %v6646_v46 = vmul.f32 -1.442695, %v1188_v41  ;;  %v1189_v47 = vadd.f32 %v1142_v42, %v8528_v35  ;;  %v1191_v20 = vadd.f32 %v1183_v43, %v8531_v37  ;;  %v7941_v41 = vld [vmem:[#allocation6 + $0x84] ss:$16 sps:$4 sm:$0xff]   ;;  %v7942_v42 = vld [vmem:[#allocation6 + $0x8c] ss:$16 sps:$4 sm:$0xff]  }
 0x284   :  { %v1144_v49 = vpop.f32.mrf.mxu0  ;;  %v1185_v50 = vpop.f32.mrf.mxu1  ;;  %v7943_v43 = vld [vmem:[#allocation6 + $0x80] ss:$16 sps:$4 sm:$0xff]  }
 0x285   :  { %7682 = vpow2.f32 %v6646_v46  ;;  %v6647_v51 = vmul.f32 -1.442695, %v1189_v47  ;;  %v6648_v26 = vmul.f32 -1.442695, %v1191_v20 }
 0x286   :  { %v1145_v52 = vpop.f32.mrf.mxu0  ;;  %v1186_v53 = vpop.f32.mrf.mxu1 }
 0x287   :  { %7684 = vpow2.f32 %v6647_v51 }
 0x288   :  { %7686 = vtanh.f32 %v1190_v36 }
 0x289   :  { %7688 = vpow2.f32 %v6648_v26 }
 0x292   :  { %v7683_v56 = vpop.eup %7682 }
 0x293   :  { %v1195_v61 = vadd.f32 1.0, %v7683_v56  ;;  %v8684_v56 = vld [vmem:[#allocation6 + $0xe4] ss:$16 sps:$4 sm:$0xff]  }
 0x294   :  { %v7685_v31 = vpop.eup %7684 }
 0x295   :  { %7690 = vrcp.f32 %v1195_v61  ;;  %v1201_v24 = vadd.f32 1.0, %v7685_v31  ;;  %v7687_v35 = vpop.eup %7686  ;;  %v8686_v61 = vld [vmem:[#allocation6 + $0xec] ss:$16 sps:$4 sm:$0xff]   ;;  %v8688_v31 = vld [vmem:[#allocation6 + $0xe0] ss:$16 sps:$4 sm:$0xff]  }
 0x296   :  { %v7689_v0 = vpop.eup %7688 }
 0x297   :  { %7692 = vrcp.f32 %v1201_v24  ;;  %v1208_v28 = vadd.f32 1.0, %v7689_v0  ;;  %v8690_v24 = vld [vmem:[#allocation6 + $0xe8] ss:$16 sps:$4 sm:$0xff]   ;;  %v8698_v0 = vld [vmem:[#allocation6 + $0xcc] ss:$16 sps:$4 sm:$0xff]  }
 0x299   :  { %7694 = vrcp.f32 %v1208_v28  ;;  %v8710_v28 = vld [vmem:[#allocation6 + $0xac] ss:$16 sps:$4 sm:$0xff]  }
 0x2a2   :  { %v7691_v30 = vpop.eup %7690 }
 0x2a3   :  { %v1212_v14 = vmul.f32 %v7691_v30, %v7687_v35  ;;  %v8696_v35 = vld [vmem:[#allocation6 + $0xc4] ss:$16 sps:$4 sm:$0xff]   ;;  %v8700_v30 = vld [vmem:[#allocation6 + $0xc0] ss:$16 sps:$4 sm:$0xff]  }
 0x2a4   :  { %v7693_v29 = vpop.eup %7692 }
 0x2a5   :  { %v1211_v16 = vmul.f32 %v7693_v29, %v8599_v15  ;;  %v7934_v15 = vld [vmem:[#allocation6 + $0xcc] ss:$16 sps:$4 sm:$0xff]   ;;  %v8708_v29 = vld [vmem:[#allocation6 + $0xa4] ss:$16 sps:$4 sm:$0xff]  }
 0x2a6   :  { %v7695_v32 = vpop.eup %7694 }
 0x2a7   :  { %v8644_v37 = vadd.f32 %v1212_v14, %v1211_v16  ;;  %v8702_v14 = vld [vmem:[#allocation6 + $0xc8] ss:$16 sps:$4 sm:$0xff]   ;;  %v8712_v16 = vld [vmem:[#allocation6 + $0xa0] ss:$16 sps:$4 sm:$0xff]  }
 0x2a9   :  { %7696 = vtanh.f32 %v8644_v37 }
 0x2b6   :  { %v7697_v19 = vpop.eup %7696 }
 0x2b7   :  { %v8647_v34 = vmul.f32 %v7697_v19, %v7695_v32  ;;  %v8720_v32 = vld [vmem:[#allocation6 + $0x84] ss:$16 sps:$4 sm:$0xff]   ;;  %v8722_v19 = vld [vmem:[#allocation6 + $0x8c] ss:$16 sps:$4 sm:$0xff]  }
 0x2b9   :  { %v1225_v44 = vpack.c.bf16 %v8647_v34, %v8647_v34 }
 0x2bb   :  { %1451 = vmatmul.mubr.bf16.vlgmr.msra.gmra.mxu0 %v1225_v44  ;;  %1492 = vmatmul.mubr.bf16.vlgmr.msra.gmra.mxu1 %v1225_v44  ;;  %v8724_v44 = vld [vmem:[#allocation6 + $0x80] ss:$16 sps:$4 sm:$0xff]  }
 0x2bc   :  { %1731 = vmatpush1.bf16.msra.mxu0 %v7931_v45  ;;  %1772 = vmatpush1.bf16.msra.mxu1 %v7932_v25  ;;  %v8726_v45 = vld [vmem:[#allocation6 + $0x88] ss:$16 sps:$4 sm:$0xff]   ;;  %v8730_v25 = vld [vmem:[#allocation6 + $0x64] ss:$16 sps:$4 sm:$0xff]  }
 0x2bd   :  { %1732 = vmatprep.subr.bf16.mxu0 %v7933_v27  ;;  %1773 = vmatprep.subr.bf16.mxu1 %v7934_v15  ;;  %v8732_v27 = vld [vmem:[#allocation6 + $0x6c] ss:$16 sps:$4 sm:$0xff]   ;;  %v8736_v15 = vld [vmem:[#allocation6 + $0x60] ss:$16 sps:$4 sm:$0xff]  }
 0x2be   :  { %1762 = vmatprep.mubr.bf16.mxu0 %v9635_v17  ;;  %1803 = vmatprep.mubr.bf16.mxu1 %v9635_v17 }
 0x2c0   :  { %1733 = vmatpush1.bf16.msra.mxu0 %v7935_v21  ;;  %1774 = vmatpush1.bf16.msra.mxu1 %v7936_v22  ;;  %v8738_v21 = vld [vmem:[#allocation6 + $0x68] ss:$16 sps:$4 sm:$0xff]   ;;  %v8742_v22 = vld [vmem:[#allocation6 + $0x44] ss:$16 sps:$4 sm:$0xff]  }
 0x2c1   :  { %1734 = vmatprep.subr.bf16.mxu0 %v7937_v33  ;;  %1775 = vmatprep.subr.bf16.mxu1 %v7938_v38  ;;  %v8744_v33 = vld [vmem:[#allocation6 + $0x4c] ss:$16 sps:$4 sm:$0xff]   ;;  %v8748_v38 = vld [vmem:[#allocation6 + $0x40] ss:$16 sps:$4 sm:$0xff]  }
 0x2c4   :  { %1735 = vmatpush1.bf16.msra.mxu0 %v7939_v39  ;;  %1776 = vmatpush1.bf16.msra.mxu1 %v7940_v40  ;;  %v8750_v39 = vld [vmem:[#allocation6 + $0x48] ss:$16 sps:$4 sm:$0xff]   ;;  %v8754_v40 = vld [vmem:[#allocation6 + $0x24] ss:$16 sps:$4 sm:$0xff]  }
 0x2c5   :  { %1736 = vmatprep.subr.bf16.mxu0 %v7941_v41  ;;  %1777 = vmatprep.subr.bf16.mxu1 %v7942_v42  ;;  %v8756_v41 = vld [vmem:[#allocation6 + $0x2c] ss:$16 sps:$4 sm:$0xff]   ;;  %v8760_v42 = vld [vmem:[#allocation6 + $0x20] ss:$16 sps:$4 sm:$0xff]  }
 0x2c8   :  { %1737 = vmatpush1.bf16.msra.mxu0 %v7943_v43  ;;  %1778 = vmatpush1.bf16.msra.mxu1 %v8383_v54  ;;  %v8762_v43 = vld [vmem:[#allocation6 + $0x28] ss:$16 sps:$4 sm:$0xff]  }
 0x2c9   :  { %1738 = vmatprep.subr.bf16.mxu0 %v8395_v57  ;;  %1779 = vmatprep.subr.bf16.mxu1 %v8397_v58 }
 0x2cc   :  { %1739 = vmatpush1.bf16.msra.mxu0 %v8401_v59  ;;  %1780 = vmatpush1.bf16.msra.mxu1 %v8403_v60 }
 0x2cd   :  { %1740 = vmatprep.subr.bf16.mxu0 %v8405_v62  ;;  %1781 = vmatprep.subr.bf16.mxu1 %v8407_v63 }
 0x2d0   :  { %1741 = vmatpush1.bf16.msra.mxu0 %v8413_v1  ;;  %1782 = vmatpush1.bf16.msra.mxu1 %v8415_v2 }
 0x2d1   :  { %1742 = vmatprep.subr.bf16.mxu0 %v8423_v5  ;;  %1783 = vmatprep.subr.bf16.mxu1 %v8425_v6 }
 0x2d4   :  { %1743 = vmatpush1.bf16.msra.mxu0 %v8433_v7  ;;  %1784 = vmatpush1.bf16.msra.mxu1 %v8435_v8 }
 0x2d5   :  { %1744 = vmatprep.subr.bf16.mxu0 %v8437_v10  ;;  %1785 = vmatprep.subr.bf16.mxu1 %v8439_v11 }
 0x2d8   :  { %1745 = vmatpush1.bf16.msra.mxu0 %v8445_v12  ;;  %1786 = vmatpush1.bf16.msra.mxu1 %v8447_v13 }
 0x2d9   :  { %2042 = vmatprep.subr.bf16.mxu0 %v8684_v56  ;;  %2083 = vmatprep.subr.bf16.mxu1 %v8686_v61 }
 0x37b   :  { %v1452_v54 = vpop.f32.mrf.mxu0  ;;  %v1493_v57 = vpop.f32.mrf.mxu1 }
 0x37c   :  { %v1500_v58 = vadd.f32 %v1452_v54, %v8533_v48  ;;  %v1502_v10 = vadd.f32 %v1493_v57, %v8536_v55  ;;  %v8766_v54 = vld [vmem:[#allocation6 + $0x4] ss:$16 sps:$4 sm:$0xff]   ;;  %v8768_v57 = vld [vmem:[#allocation6 + $0xc] ss:$16 sps:$4 sm:$0xff]  }
 0x37d   :  { %v1454_v59 = vpop.f32.mrf.mxu0  ;;  %v1495_v60 = vpop.f32.mrf.mxu1 }
 0x37e   :  { %v6681_v62 = vmul.f32 -1.442695, %v1500_v58  ;;  %v1501_v63 = vadd.f32 %v1454_v59, %v8538_v3  ;;  %v1503_v8 = vadd.f32 %v1495_v60, %v8541_v4  ;;  %v8772_v58 = vld [vmem:[#allocation6] ss:$16 sps:$4 sm:$0xff]   ;;  %v8774_v59 = vld [vmem:[#allocation6 + $0x8] ss:$16 sps:$4 sm:$0xff]  }
 0x37f   :  { %v1456_v1 = vpop.f32.mrf.mxu0  ;;  %v1497_v2 = vpop.f32.mrf.mxu1 }
 0x380   :  { %7698 = vpow2.f32 %v6681_v62  ;;  %v6682_v5 = vmul.f32 -1.442695, %v1501_v63  ;;  %v6683_v11 = vmul.f32 -1.442695, %v1503_v8  ;;  %v9636_v63 = vld [vmem:[#allocation30_spill] sm:$0xff] }
 0x381   :  { %v1457_v6 = vpop.f32.mrf.mxu0  ;;  %v1498_v7 = vpop.f32.mrf.mxu1 }
 0x382   :  { %7700 = vpow2.f32 %v6682_v5  ;;  %v9637_v7 = vld [vmem:[#allocation32_spill] sm:$0xff] }
 0x383   :  { %7702 = vtanh.f32 %v1502_v10 }
 0x384   :  { %7704 = vpow2.f32 %v6683_v11 }
 0x38d   :  { %v7699_v12 = vpop.eup %7698 }
 0x38e   :  { %v1507_v13 = vadd.f32 1.0, %v7699_v12 }
 0x38f   :  { %v7701_v48 = vpop.eup %7700 }
 0x390   :  { %7706 = vrcp.f32 %v1507_v13  ;;  %v1513_v46 = vadd.f32 1.0, %v7701_v48  ;;  %v7703_v3 = vpop.eup %7702 }
 0x391   :  { %v7705_v47 = vpop.eup %7704 }
 0x392   :  { %7708 = vrcp.f32 %v1513_v46  ;;  %v1520_v52 = vadd.f32 1.0, %v7705_v47  ;;  %v9638_v46 = vld [vmem:[#allocation33_spill] sm:$0xff]  ;;  %v9639_v47 = vld [vmem:[#allocation31_spill] sm:$0xff] }
 0x394   :  { %7710 = vrcp.f32 %v1520_v52 }
 0x39d   :  { %v7707_v49 = vpop.eup %7706 }
 0x39e   :  { %v1524_v50 = vmul.f32 %v7707_v49, %v7703_v3 }
 0x39f   :  { %v7709_v51 = vpop.eup %7708 }
 0x3a0   :  { %v1523_v53 = vmul.f32 %v7709_v51, %v8644_v37  ;;  %v8714_v37 = vld [vmem:[#allocation6 + $0xa8] ss:$16 sps:$4 sm:$0xff]  }
 0x3a1   :  { %v7711_v55 = vpop.eup %7710 }
 0x3a2   :  { %v8675_v4 = vadd.f32 %v1524_v50, %v1523_v53 }
 0x3a4   :  { %7712 = vtanh.f32 %v8675_v4 }
 0x3b1   :  { %v7713_v20 = vpop.eup %7712 }
 0x3b2   :  { %v8678_v36 = vmul.f32 %v7713_v20, %v7711_v55 }
 0x3b4   :  { %v1537_v26 = vpack.c.bf16 %v8678_v36, %v8678_v36 }
 0x3b6   :  { %1763 = vmatmul.mubr.bf16.vlgmr.msra.gmra.mxu0 %v1537_v26  ;;  %1804 = vmatmul.mubr.bf16.vlgmr.msra.gmra.mxu1 %v1537_v26 }
 0x3b7   :  { %2074 = vmatprep.mubr.bf16.mxu0 %v9635_v17  ;;  %2115 = vmatprep.mubr.bf16.mxu1 %v9635_v17 }
 0x3b8   :  { %2043 = vmatpush1.bf16.msra.mxu0 %v8688_v31  ;;  %2084 = vmatpush1.bf16.msra.mxu1 %v8690_v24 }
 0x3b9   :  { %2044 = vmatprep.subr.bf16.mxu0 %v8696_v35  ;;  %2085 = vmatprep.subr.bf16.mxu1 %v8698_v0 }
 0x3bc   :  { %2045 = vmatpush1.bf16.msra.mxu0 %v8700_v30  ;;  %2086 = vmatpush1.bf16.msra.mxu1 %v8702_v14 }
 0x3bd   :  { %2046 = vmatprep.subr.bf16.mxu0 %v8708_v29  ;;  %2087 = vmatprep.subr.bf16.mxu1 %v8710_v28 }
 0x3c0   :  { %2047 = vmatpush1.bf16.msra.mxu0 %v8712_v16  ;;  %2088 = vmatpush1.bf16.msra.mxu1 %v8714_v37 }
 0x3c1   :  { %2048 = vmatprep.subr.bf16.mxu0 %v8720_v32  ;;  %2089 = vmatprep.subr.bf16.mxu1 %v8722_v19 }
 0x3c4   :  { %2049 = vmatpush1.bf16.msra.mxu0 %v8724_v44  ;;  %2090 = vmatpush1.bf16.msra.mxu1 %v8726_v45 }
 0x3c5   :  { %2050 = vmatprep.subr.bf16.mxu0 %v8730_v25  ;;  %2091 = vmatprep.subr.bf16.mxu1 %v8732_v27 }
 0x3c8   :  { %2051 = vmatpush1.bf16.msra.mxu0 %v8736_v15  ;;  %2092 = vmatpush1.bf16.msra.mxu1 %v8738_v21 }
 0x3c9   :  { %2052 = vmatprep.subr.bf16.mxu0 %v8742_v22  ;;  %2093 = vmatprep.subr.bf16.mxu1 %v8744_v33 }
 0x3cc   :  { %2053 = vmatpush1.bf16.msra.mxu0 %v8748_v38  ;;  %2094 = vmatpush1.bf16.msra.mxu1 %v8750_v39 }
 0x3cd   :  { %2054 = vmatprep.subr.bf16.mxu0 %v8754_v40  ;;  %2095 = vmatprep.subr.bf16.mxu1 %v8756_v41 }
 0x3d0   :  { %2055 = vmatpush1.bf16.msra.mxu0 %v8760_v42  ;;  %2096 = vmatpush1.bf16.msra.mxu1 %v8762_v43 }
 0x3d1   :  { %2056 = vmatprep.subr.bf16.mxu0 %v8766_v54  ;;  %2097 = vmatprep.subr.bf16.mxu1 %v8768_v57 }
 0x3d4   :  { %2057 = vmatpush1.bf16.msra.mxu0 %v8772_v58  ;;  %2098 = vmatpush1.bf16.msra.mxu1 %v8774_v59 }
 0x3d5   :  { %2354 = vmatprep.subr.bf16.mxu0 %v8684_v56  ;;  %2395 = vmatprep.subr.bf16.mxu1 %v8686_v61 }
 0x476   :  { %v1764_v60 = vpop.f32.mrf.mxu0  ;;  %v1805_v62 = vpop.f32.mrf.mxu1 }
 0x477   :  { %v1812_v1 = vadd.f32 %v1764_v60, %v9636_v63  ;;  %v1814_v49 = vadd.f32 %v1805_v62, %v9639_v47  ;;  %v9641_v47 = vld [vmem:[#allocation36_spill] sm:$0xff] }
 0x478   :  { %v1766_v2 = vpop.f32.mrf.mxu0  ;;  %v1807_v5 = vpop.f32.mrf.mxu1 }
 0x479   :  { %v6716_v6 = vmul.f32 -1.442695, %v1812_v1  ;;  %v1813_v8 = vadd.f32 %v1766_v2, %v9637_v7  ;;  %v1815_v3 = vadd.f32 %v1807_v5, %v9638_v46 }
 0x47a   :  { %v1768_v10 = vpop.f32.mrf.mxu0  ;;  %v1809_v11 = vpop.f32.mrf.mxu1 }
 0x47b   :  { %7714 = vpow2.f32 %v6716_v6  ;;  %v6717_v12 = vmul.f32 -1.442695, %v1813_v8  ;;  %v6718_v50 = vmul.f32 -1.442695, %v1815_v3 }
 0x47c   :  { %v1769_v13 = vpop.f32.mrf.mxu0  ;;  %v1810_v48 = vpop.f32.mrf.mxu1 }
 0x47d   :  { %7716 = vpow2.f32 %v6717_v12  ;;  %v9640_v12 = vld [vmem:[#allocation34_spill] sm:$0xff] }
 0x47e   :  { %7718 = vtanh.f32 %v1814_v49 }
 0x47f   :  { %7720 = vpow2.f32 %v6718_v50 }
 0x488   :  { %v7715_v51 = vpop.eup %7714 }
 0x489   :  { %v1819_v52 = vadd.f32 1.0, %v7715_v51 }
 0x48a   :  { %v7717_v53 = vpop.eup %7716 }
 0x48b   :  { %7722 = vrcp.f32 %v1819_v52  ;;  %v1825_v55 = vadd.f32 1.0, %v7717_v53  ;;  %v7719_v20 = vpop.eup %7718 }
 0x48c   :  { %v7721_v26 = vpop.eup %7720 }
 0x48d   :  { %7724 = vrcp.f32 %v1825_v55  ;;  %v1832_v2 = vadd.f32 1.0, %v7721_v26 }
 0x48f   :  { %7726 = vrcp.f32 %v1832_v2 }
 0x498   :  { %v7723_v60 = vpop.eup %7722 }
 0x499   :  { %v1836_v63 = vmul.f32 %v7723_v60, %v7719_v20  ;;  %v9642_v20 = vld [vmem:[#allocation37_spill] sm:$0xff]  ;;  %v9643_v60 = vld [vmem:[#allocation35_spill] sm:$0xff] }
 0x49a   :  { %v7725_v1 = vpop.eup %7724 }
 0x49b   :  { %v1835_v6 = vmul.f32 %v7725_v1, %v8675_v4 }
 0x49c   :  { %v7727_v62 = vpop.eup %7726 }
 0x49d   :  { %v8787_v5 = vadd.f32 %v1836_v63, %v1835_v6 }
 0x49f   :  { %7728 = vtanh.f32 %v8787_v5 }
 0x4ac   :  { %v7729_v7 = vpop.eup %7728 }
 0x4ad   :  { %v8790_v8 = vmul.f32 %v7729_v7, %v7727_v62 }
 0x4af   :  { %v1849_v10 = vpack.c.bf16 %v8790_v8, %v8790_v8 }
 0x4b1   :  { %2075 = vmatmul.mubr.bf16.vlgmr.msra.gmra.mxu0 %v1849_v10  ;;  %2116 = vmatmul.mubr.bf16.vlgmr.msra.gmra.mxu1 %v1849_v10 }
 0x4b2   :  { %2355 = vmatpush1.bf16.msra.mxu0 %v8688_v31  ;;  %2396 = vmatpush1.bf16.msra.mxu1 %v8690_v24 }
 0x4b3   :  { %2356 = vmatprep.subr.bf16.mxu0 %v8696_v35  ;;  %2397 = vmatprep.subr.bf16.mxu1 %v8698_v0 }
 0x4b4   :  { %2386 = vmatprep.mubr.bf16.mxu0 %v9635_v17  ;;  %2427 = vmatprep.mubr.bf16.mxu1 %v9635_v17 }
 0x4b6   :  { %2357 = vmatpush1.bf16.msra.mxu0 %v8700_v30  ;;  %2398 = vmatpush1.bf16.msra.mxu1 %v8702_v14 }
 0x4b7   :  { %2358 = vmatprep.subr.bf16.mxu0 %v8708_v29  ;;  %2399 = vmatprep.subr.bf16.mxu1 %v8710_v28 }
 0x4ba   :  { %2359 = vmatpush1.bf16.msra.mxu0 %v8712_v16  ;;  %2400 = vmatpush1.bf16.msra.mxu1 %v8714_v37 }
 0x4bb   :  { %2360 = vmatprep.subr.bf16.mxu0 %v8720_v32  ;;  %2401 = vmatprep.subr.bf16.mxu1 %v8722_v19 }
 0x4be   :  { %2361 = vmatpush1.bf16.msra.mxu0 %v8724_v44  ;;  %2402 = vmatpush1.bf16.msra.mxu1 %v8726_v45 }
 0x4bf   :  { %2362 = vmatprep.subr.bf16.mxu0 %v8730_v25  ;;  %2403 = vmatprep.subr.bf16.mxu1 %v8732_v27 }
 0x4c2   :  { %2363 = vmatpush1.bf16.msra.mxu0 %v8736_v15  ;;  %2404 = vmatpush1.bf16.msra.mxu1 %v8738_v21 }
 0x4c3   :  { %2364 = vmatprep.subr.bf16.mxu0 %v8742_v22  ;;  %2405 = vmatprep.subr.bf16.mxu1 %v8744_v33 }
 0x4c6   :  { %2365 = vmatpush1.bf16.msra.mxu0 %v8748_v38  ;;  %2406 = vmatpush1.bf16.msra.mxu1 %v8750_v39 }
 0x4c7   :  { %2366 = vmatprep.subr.bf16.mxu0 %v8754_v40  ;;  %2407 = vmatprep.subr.bf16.mxu1 %v8756_v41 }
 0x4ca   :  { %2367 = vmatpush1.bf16.msra.mxu0 %v8760_v42  ;;  %2408 = vmatpush1.bf16.msra.mxu1 %v8762_v43 }
 0x4cb   :  { %2368 = vmatprep.subr.bf16.mxu0 %v8766_v54  ;;  %2409 = vmatprep.subr.bf16.mxu1 %v8768_v57 }
 0x4ce   :  { %2369 = vmatpush1.bf16.msra.mxu0 %v8772_v58  ;;  %2410 = vmatpush1.bf16.msra.mxu1 %v8774_v59 }
 0x4cf   :  { %2666 = vmatprep.subr.bf16.mxu0 %v8684_v56  ;;  %2707 = vmatprep.subr.bf16.mxu1 %v8686_v61 }
 0x571   :  { %v2076_v4 = vpop.f32.mrf.mxu0  ;;  %v2117_v11 = vpop.f32.mrf.mxu1 }
 0x572   :  { %v2124_v13 = vadd.f32 %v2076_v4, %v9640_v12  ;;  %v2126_v63 = vadd.f32 %v2117_v11, %v9643_v60 }
 0x573   :  { %v2078_v48 = vpop.f32.mrf.mxu0  ;;  %v2119_v46 = vpop.f32.mrf.mxu1 }
 0x574   :  { %v6751_v3 = vmul.f32 -1.442695, %v2124_v13  ;;  %v2125_v49 = vadd.f32 %v2078_v48, %v9641_v47  ;;  %v2127_v26 = vadd.f32 %v2119_v46, %v9642_v20 }
 0x575   :  { %v2080_v50 = vpop.f32.mrf.mxu0  ;;  %v2121_v51 = vpop.f32.mrf.mxu1 }
 0x576   :  { %7730 = vpow2.f32 %v6751_v3  ;;  %v6752_v52 = vmul.f32 -1.442695, %v2125_v49  ;;  %v6753_v1 = vmul.f32 -1.442695, %v2127_v26 }
 0x577   :  { %v2081_v53 = vpop.f32.mrf.mxu0  ;;  %v2122_v55 = vpop.f32.mrf.mxu1 }
 0x578   :  { %7732 = vpow2.f32 %v6752_v52  ;;  %v9644_v53 = vld [vmem:[#allocation38_spill] sm:$0xff] }
 0x579   :  { %7734 = vtanh.f32 %v2126_v63  ;;  %v9645_v63 = vld [vmem:[#allocation40_spill] sm:$0xff] }
 0x57a   :  { %7736 = vpow2.f32 %v6753_v1 }
 0x583   :  { %v7731_v2 = vpop.eup %7730 }
 0x584   :  { %v2131_v6 = vadd.f32 1.0, %v7731_v2 }
 0x585   :  { %v7733_v62 = vpop.eup %7732 }
 0x586   :  { %7738 = vrcp.f32 %v2131_v6  ;;  %v2137_v7 = vadd.f32 1.0, %v7733_v62  ;;  %v7735_v10 = vpop.eup %7734 }
 0x587   :  { %v7737_v4 = vpop.eup %7736 }
 0x588   :  { %7740 = vrcp.f32 %v2137_v7  ;;  %v2144_v3 = vadd.f32 1.0, %v7737_v4  ;;  %v9646_v4 = vld [vmem:[#allocation41_spill] sm:$0xff] }
 0x58a   :  { %7742 = vrcp.f32 %v2144_v3 }
 0x593   :  { %v7739_v12 = vpop.eup %7738 }
 0x594   :  { %v2148_v13 = vmul.f32 %v7739_v12, %v7735_v10  ;;  %v9647_v12 = vld [vmem:[#allocation39_spill] sm:$0xff] }
 0x595   :  { %v7741_v48 = vpop.eup %7740 }
 0x596   :  { %v2147_v47 = vmul.f32 %v7741_v48, %v8787_v5 }
 0x597   :  { %v7743_v11 = vpop.eup %7742 }
 0x598   :  { %v8833_v46 = vadd.f32 %v2148_v13, %v2147_v47 }
 0x59a   :  { %7744 = vtanh.f32 %v8833_v46 }
 0x5a7   :  { %v7745_v49 = vpop.eup %7744 }
 0x5a8   :  { %v8836_v50 = vmul.f32 %v7745_v49, %v7743_v11 }
 0x5aa   :  { %v2161_v51 = vpack.c.bf16 %v8836_v50, %v8836_v50 }
 0x5ac   :  { %2387 = vmatmul.mubr.bf16.vlgmr.msra.gmra.mxu0 %v2161_v51  ;;  %2428 = vmatmul.mubr.bf16.vlgmr.msra.gmra.mxu1 %v2161_v51 }
 0x5ad   :  { %2667 = vmatpush1.bf16.msra.mxu0 %v8688_v31  ;;  %2708 = vmatpush1.bf16.msra.mxu1 %v8690_v24 }
 0x5ae   :  { %2668 = vmatprep.subr.bf16.mxu0 %v8696_v35  ;;  %2709 = vmatprep.subr.bf16.mxu1 %v8698_v0 }
 0x5af   :  { %2698 = vmatprep.mubr.bf16.mxu0 %v9635_v17  ;;  %2739 = vmatprep.mubr.bf16.mxu1 %v9635_v17 }
 0x5b1   :  { %2669 = vmatpush1.bf16.msra.mxu0 %v8700_v30  ;;  %2710 = vmatpush1.bf16.msra.mxu1 %v8702_v14 }
 0x5b2   :  { %2670 = vmatprep.subr.bf16.mxu0 %v8708_v29  ;;  %2711 = vmatprep.subr.bf16.mxu1 %v8710_v28 }
 0x5b5   :  { %2671 = vmatpush1.bf16.msra.mxu0 %v8712_v16  ;;  %2712 = vmatpush1.bf16.msra.mxu1 %v8714_v37 }
 0x5b6   :  { %2672 = vmatprep.subr.bf16.mxu0 %v8720_v32  ;;  %2713 = vmatprep.subr.bf16.mxu1 %v8722_v19 }
 0x5b9   :  { %2673 = vmatpush1.bf16.msra.mxu0 %v8724_v44  ;;  %2714 = vmatpush1.bf16.msra.mxu1 %v8726_v45 }
 0x5ba   :  { %2674 = vmatprep.subr.bf16.mxu0 %v8730_v25  ;;  %2715 = vmatprep.subr.bf16.mxu1 %v8732_v27 }
 0x5bd   :  { %2675 = vmatpush1.bf16.msra.mxu0 %v8736_v15  ;;  %2716 = vmatpush1.bf16.msra.mxu1 %v8738_v21 }
 0x5be   :  { %2676 = vmatprep.subr.bf16.mxu0 %v8742_v22  ;;  %2717 = vmatprep.subr.bf16.mxu1 %v8744_v33 }
 0x5c1   :  { %2677 = vmatpush1.bf16.msra.mxu0 %v8748_v38  ;;  %2718 = vmatpush1.bf16.msra.mxu1 %v8750_v39 }
 0x5c2   :  { %2678 = vmatprep.subr.bf16.mxu0 %v8754_v40  ;;  %2719 = vmatprep.subr.bf16.mxu1 %v8756_v41 }
 0x5c5   :  { %2679 = vmatpush1.bf16.msra.mxu0 %v8760_v42  ;;  %2720 = vmatpush1.bf16.msra.mxu1 %v8762_v43 }
 0x5c6   :  { %2680 = vmatprep.subr.bf16.mxu0 %v8766_v54  ;;  %2721 = vmatprep.subr.bf16.mxu1 %v8768_v57 }
 0x5c9   :  { %2681 = vmatpush1.bf16.msra.mxu0 %v8772_v58  ;;  %2722 = vmatpush1.bf16.msra.mxu1 %v8774_v59 }
 0x5ca   :  { %2978 = vmatprep.subr.bf16.mxu0 %v8684_v56  ;;  %3019 = vmatprep.subr.bf16.mxu1 %v8686_v61 }
 0x66c   :  { %v2388_v5 = vpop.f32.mrf.mxu0  ;;  %v2429_v52 = vpop.f32.mrf.mxu1 }
 0x66d   :  { %v2436_v55 = vadd.f32 %v2388_v5, %v9644_v53  ;;  %v2438_v61 = vadd.f32 %v2429_v52, %v9647_v12  ;;  %v7469_v12 = vld [vmem:[#allocation9 + $0xe8] ss:$16 sps:$4 sm:$0xff]  }
 0x66e   :  { %v2390_v20 = vpop.f32.mrf.mxu0  ;;  %v2431_v26 = vpop.f32.mrf.mxu1 }
 0x66f   :  { %v6786_v60 = vmul.f32 -1.442695, %v2436_v55  ;;  %v2437_v1 = vadd.f32 %v2390_v20, %v9645_v63  ;;  %v2439_v56 = vadd.f32 %v2431_v26, %v9646_v4 }
 0x670   :  { %v2392_v2 = vpop.f32.mrf.mxu0  ;;  %v2433_v6 = vpop.f32.mrf.mxu1 }
 0x671   :  { %7746 = vpow2.f32 %v6786_v60  ;;  %v6787_v62 = vmul.f32 -1.442695, %v2437_v1  ;;  %v6788_v13 = vmul.f32 -1.442695, %v2439_v56  ;;  %v7466_v56 = vld [vmem:[#allocation9 + $0xe0] ss:$16 sps:$4 sm:$0xff]  }
 0x672   :  { %v2393_v7 = vpop.f32.mrf.mxu0  ;;  %v2434_v10 = vpop.f32.mrf.mxu1 }
 0x673   :  { %7748 = vpow2.f32 %v6787_v62 }
 0x674   :  { %7750 = vtanh.f32 %v2438_v61 }
 0x675   :  { %7752 = vpow2.f32 %v6788_v13  ;;  %v7474_v13 = vld [vmem:[#allocation9 + $0xc4] ss:$16 sps:$4 sm:$0xff]  }
 0x67e   :  { %v7747_v48 = vpop.eup %7746 }
 0x67f   :  { %v2443_v3 = vadd.f32 1.0, %v7747_v48  ;;  %v7477_v48 = vld [vmem:[#allocation9 + $0xcc] ss:$16 sps:$4 sm:$0xff]  }
 0x680   :  { %v7749_v47 = vpop.eup %7748 }
 0x681   :  { %7754 = vrcp.f32 %v2443_v3  ;;  %v2449_v11 = vadd.f32 1.0, %v7749_v47  ;;  %v7751_v49 = vpop.eup %7750  ;;  %v7472_v3 = vld [vmem:[#allocation9 + $0xc0] ss:$16 sps:$4 sm:$0xff]   ;;  %v7475_v47 = vld [vmem:[#allocation9 + $0xc8] ss:$16 sps:$4 sm:$0xff]  }
 0x682   :  { %v7753_v51 = vpop.eup %7752 }
 0x683   :  { %7756 = vrcp.f32 %v2449_v11  ;;  %v2456_v20 = vadd.f32 1.0, %v7753_v51  ;;  %v7480_v11 = vld [vmem:[#allocation9 + $0xa4] ss:$16 sps:$4 sm:$0xff]   ;;  %v7478_v51 = vld [vmem:[#allocation9 + $0xa0] ss:$16 sps:$4 sm:$0xff]  }
 0x685   :  { %7758 = vrcp.f32 %v2456_v20  ;;  %v7484_v20 = vld [vmem:[#allocation9 + $0x80] ss:$16 sps:$4 sm:$0xff]  }
 0x68e   :  { %v7755_v5 = vpop.eup %7754 }
 0x68f   :  { %v2460_v53 = vmul.f32 %v7755_v5, %v7751_v49  ;;  %v7483_v49 = vld [vmem:[#allocation9 + $0xac] ss:$16 sps:$4 sm:$0xff]   ;;  %v7481_v5 = vld [vmem:[#allocation9 + $0xa8] ss:$16 sps:$4 sm:$0xff]  }
 0x690   :  { %v7757_v55 = vpop.eup %7756 }
 0x691   :  { %v2459_v60 = vmul.f32 %v7757_v55, %v8833_v46  ;;  %v7489_v55 = vld [vmem:[#allocation9 + $0x8c] ss:$16 sps:$4 sm:$0xff]  }
 0x692   :  { %v7759_v52 = vpop.eup %7758 }
 0x693   :  { %v8879_v26 = vadd.f32 %v2460_v53, %v2459_v60  ;;  %v7486_v53 = vld [vmem:[#allocation9 + $0x84] ss:$16 sps:$4 sm:$0xff]   ;;  %v7487_v60 = vld [vmem:[#allocation9 + $0x88] ss:$16 sps:$4 sm:$0xff]  }
 0x695   :  { %7760 = vtanh.f32 %v8879_v26 }
 0x6a2   :  { %v7761_v63 = vpop.eup %7760 }
 0x6a3   :  { %v8882_v1 = vmul.f32 %v7761_v63, %v7759_v52  ;;  %v7495_v52 = vld [vmem:[#allocation9 + $0x6c] ss:$16 sps:$4 sm:$0xff]   ;;  %v7490_v63 = vld [vmem:[#allocation9 + $0x60] ss:$16 sps:$4 sm:$0xff]  }
 0x6a5   :  { %v2473_v2 = vpack.c.bf16 %v8882_v1, %v8882_v1 }
 0x6a7   :  { %2699 = vmatmul.mubr.bf16.vlgmr.msra.gmra.mxu0 %v2473_v2  ;;  %2740 = vmatmul.mubr.bf16.vlgmr.msra.gmra.mxu1 %v2473_v2  ;;  %v7493_v2 = vld [vmem:[#allocation9 + $0x68] ss:$16 sps:$4 sm:$0xff]  }
 0x6a8   :  { %2979 = vmatpush1.bf16.msra.mxu0 %v8688_v31  ;;  %3020 = vmatpush1.bf16.msra.mxu1 %v8690_v24  ;;  %v7468_v31 = vld [vmem:[#allocation9 + $0xe4] ss:$16 sps:$4 sm:$0xff]   ;;  %v7471_v24 = vld [vmem:[#allocation9 + $0xec] ss:$16 sps:$4 sm:$0xff]  }
 0x6a9   :  { %2980 = vmatprep.subr.bf16.mxu0 %v8696_v35  ;;  %3021 = vmatprep.subr.bf16.mxu1 %v8698_v0 }
 0x6aa   :  { %3010 = vmatprep.mubr.bf16.mxu0 %v9635_v17  ;;  %3051 = vmatprep.mubr.bf16.mxu1 %v9635_v17 }
 0x6ac   :  { %2981 = vmatpush1.bf16.msra.mxu0 %v8700_v30  ;;  %3022 = vmatpush1.bf16.msra.mxu1 %v8702_v14  ;;  %v9648_v30 = vld [vmem:[#allocation42_spill] sm:$0xff] }
 0x6ad   :  { %2982 = vmatprep.subr.bf16.mxu0 %v8708_v29  ;;  %3023 = vmatprep.subr.bf16.mxu1 %v8710_v28 }
 0x6b0   :  { %2983 = vmatpush1.bf16.msra.mxu0 %v8712_v16  ;;  %3024 = vmatpush1.bf16.msra.mxu1 %v8714_v37  ;;  %v9649_v37 = vld [vmem:[#allocation44_spill] sm:$0xff] }
 0x6b1   :  { %2984 = vmatprep.subr.bf16.mxu0 %v8720_v32  ;;  %3025 = vmatprep.subr.bf16.mxu1 %v8722_v19 }
 0x6b4   :  { %2985 = vmatpush1.bf16.msra.mxu0 %v8724_v44  ;;  %3026 = vmatpush1.bf16.msra.mxu1 %v8726_v45 }
 0x6b5   :  { %2986 = vmatprep.subr.bf16.mxu0 %v8730_v25  ;;  %3027 = vmatprep.subr.bf16.mxu1 %v8732_v27 }
 0x6b8   :  { %2987 = vmatpush1.bf16.msra.mxu0 %v8736_v15  ;;  %3028 = vmatpush1.bf16.msra.mxu1 %v8738_v21  ;;  %v9650_v15 = vld [vmem:[#allocation45_spill] sm:$0xff] }
 0x6b9   :  { %2988 = vmatprep.subr.bf16.mxu0 %v8742_v22  ;;  %3029 = vmatprep.subr.bf16.mxu1 %v8744_v33  ;;  %v9651_v22 = vld [vmem:[#allocation43_spill] sm:$0xff] }
 0x6bc   :  { %2989 = vmatpush1.bf16.msra.mxu0 %v8748_v38  ;;  %3030 = vmatpush1.bf16.msra.mxu1 %v8750_v39 }
 0x6bd   :  { %2990 = vmatprep.subr.bf16.mxu0 %v8754_v40  ;;  %3031 = vmatprep.subr.bf16.mxu1 %v8756_v41 }
 0x6c0   :  { %2991 = vmatpush1.bf16.msra.mxu0 %v8760_v42  ;;  %3032 = vmatpush1.bf16.msra.mxu1 %v8762_v43 }
 0x6c1   :  { %2992 = vmatprep.subr.bf16.mxu0 %v8766_v54  ;;  %3033 = vmatprep.subr.bf16.mxu1 %v8768_v57 }
 0x6c4   :  { %2993 = vmatpush1.bf16.msra.mxu0 %v8772_v58  ;;  %3034 = vmatpush1.bf16.msra.mxu1 %v8774_v59 }
 0x6c5   :  { %3316 = vmatprep.subr.bf16.mxu0 %v7468_v31  ;;  %3389 = vmatprep.subr.bf16.mxu1 %v7471_v24  ;;  %v7498_v31 = vld [vmem:[#allocation9 + $0x44] ss:$16 sps:$4 sm:$0xff]   ;;  %v7501_v24 = vld [vmem:[#allocation9 + $0x4c] ss:$16 sps:$4 sm:$0xff]  }
 0x767   :  { %v2700_v35 = vpop.f32.mrf.mxu0  ;;  %v2741_v0 = vpop.f32.mrf.mxu1 }
 0x768   :  { %v2748_v14 = vadd.f32 %v2700_v35, %v9648_v30  ;;  %v2750_v33 = vadd.f32 %v2741_v0, %v9651_v22  ;;  %v7496_v35 = vld [vmem:[#allocation9 + $0x40] ss:$16 sps:$4 sm:$0xff]   ;;  %v7499_v0 = vld [vmem:[#allocation9 + $0x48] ss:$16 sps:$4 sm:$0xff]   ;;  %v7504_v30 = vld [vmem:[#allocation9 + $0x24] ss:$16 sps:$4 sm:$0xff]  }
 0x769   :  { %v2702_v29 = vpop.f32.mrf.mxu0  ;;  %v2743_v28 = vpop.f32.mrf.mxu1  ;;  %v8970_v22 = vld [vmem:[#allocation11 + $0xac] ss:$16 sps:$4 sm:$0xff]  }
 0x76a   :  { %v6821_v16 = vmul.f32 -1.442695, %v2748_v14  ;;  %v2749_v32 = vadd.f32 %v2702_v29, %v9649_v37  ;;  %v2751_v21 = vadd.f32 %v2743_v28, %v9650_v15  ;;  %v7507_v14 = vld [vmem:[#allocation9 + $0x2c] ss:$16 sps:$4 sm:$0xff]   ;;  %v7502_v29 = vld [vmem:[#allocation9 + $0x20] ss:$16 sps:$4 sm:$0xff]  }
 0x76b   :  { %v2704_v19 = vpop.f32.mrf.mxu0  ;;  %v2745_v44 = vpop.f32.mrf.mxu1  ;;  %v7505_v28 = vld [vmem:[#allocation9 + $0x28] ss:$16 sps:$4 sm:$0xff]   ;;  %v7513_v37 = vld [vmem:[#allocation9 + $0xc] ss:$16 sps:$4 sm:$0xff]  }
 0x76c   :  { %7762 = vpow2.f32 %v6821_v16  ;;  %v6822_v45 = vmul.f32 -1.442695, %v2749_v32  ;;  %v6823_v38 = vmul.f32 -1.442695, %v2751_v21  ;;  %v7510_v16 = vld [vmem:[#allocation9 + $0x4] ss:$16 sps:$4 sm:$0xff]   ;;  %v3098_v44 = vpack.c.bf16 %v8647_v34, %v8602_v23 }
 0x76d   :  { %v2705_v25 = vpop.f32.mrf.mxu0  ;;  %v2746_v27 = vpop.f32.mrf.mxu1  ;;  %v7508_v32 = vld [vmem:[#allocation9] ss:$16 sps:$4 sm:$0xff]   ;;  %v7511_v19 = vld [vmem:[#allocation9 + $0x8] ss:$16 sps:$4 sm:$0xff]   ;;  %v8944_v23 = vld [vmem:[#allocation11 + $0xe4] ss:$16 sps:$4 sm:$0xff]  }
 0x76e   :  { %7764 = vpow2.f32 %v6822_v45  ;;  %v3099_v45 = vpack.c.bf16 %v8790_v8, %v8678_v36  ;;  %v3100_v25 = vpack.c.bf16 %v8882_v1, %v8836_v50  ;;  %v8946_v34 = vld [vmem:[#allocation11 + $0xec] ss:$16 sps:$4 sm:$0xff]   ;;  %v8948_v36 = vld [vmem:[#allocation11 + $0xe0] ss:$16 sps:$4 sm:$0xff]   ;;  %v8950_v8 = vld [vmem:[#allocation11 + $0xe8] ss:$16 sps:$4 sm:$0xff]  }
 0x76f   :  { %7766 = vtanh.f32 %v2750_v33  ;;  %v8956_v50 = vld [vmem:[#allocation11 + $0xc4] ss:$16 sps:$4 sm:$0xff]   ;;  %v8958_v1 = vld [vmem:[#allocation11 + $0xcc] ss:$16 sps:$4 sm:$0xff]   ;;  %v8960_v27 = vld [vmem:[#allocation11 + $0xc0] ss:$16 sps:$4 sm:$0xff]  }
 0x770   :  { %7768 = vpow2.f32 %v6823_v38  ;;  %v8962_v15 = vld [vmem:[#allocation11 + $0xc8] ss:$16 sps:$4 sm:$0xff]   ;;  %v8968_v21 = vld [vmem:[#allocation11 + $0xa4] ss:$16 sps:$4 sm:$0xff]   ;;  %v8972_v33 = vld [vmem:[#allocation11 + $0xa0] ss:$16 sps:$4 sm:$0xff]  }
 0x771   :  { %v8974_v38 = vld [vmem:[#allocation11 + $0xa8] ss:$16 sps:$4 sm:$0xff]  }
 0x779   :  { %v7763_v39 = vpop.eup %7762 }
 0x77a   :  { %v2755_v40 = vadd.f32 1.0, %v7763_v39  ;;  %v8980_v39 = vld [vmem:[#allocation11 + $0x84] ss:$16 sps:$4 sm:$0xff]  }
 0x77b   :  { %v7765_v41 = vpop.eup %7764 }
 0x77c   :  { %7770 = vrcp.f32 %v2755_v40  ;;  %v2761_v42 = vadd.f32 1.0, %v7765_v41  ;;  %v7767_v43 = vpop.eup %7766  ;;  %v8982_v40 = vld [vmem:[#allocation11 + $0x8c] ss:$16 sps:$4 sm:$0xff]   ;;  %v8984_v41 = vld [vmem:[#allocation11 + $0x80] ss:$16 sps:$4 sm:$0xff]  }
 0x77d   :  { %v7769_v54 = vpop.eup %7768 }
 0x77e   :  { %7772 = vrcp.f32 %v2761_v42  ;;  %v2768_v46 = vadd.f32 1.0, %v7769_v54  ;;  %v8986_v42 = vld [vmem:[#allocation11 + $0x88] ss:$16 sps:$4 sm:$0xff]   ;;  %v8994_v54 = vld [vmem:[#allocation11 + $0x6c] ss:$16 sps:$4 sm:$0xff]  }
 0x780   :  { %7774 = vrcp.f32 %v2768_v46  ;;  %v9006_v46 = vld [vmem:[#allocation11 + $0x4c] ss:$16 sps:$4 sm:$0xff]  }
 0x789   :  { %v7771_v57 = vpop.eup %7770 }
 0x78a   :  { %v2772_v58 = vmul.f32 %v7771_v57, %v7767_v43  ;;  %v8992_v43 = vld [vmem:[#allocation11 + $0x64] ss:$16 sps:$4 sm:$0xff]   ;;  %v8996_v57 = vld [vmem:[#allocation11 + $0x60] ss:$16 sps:$4 sm:$0xff]  }
 0x78b   :  { %v7773_v59 = vpop.eup %7772 }
 0x78c   :  { %v2771_v6 = vmul.f32 %v7773_v59, %v8879_v26  ;;  %v7492_v26 = vld [vmem:[#allocation9 + $0x64] ss:$16 sps:$4 sm:$0xff]  }
 0x78d   :  { %v7775_v7 = vpop.eup %7774  ;;  %v9004_v59 = vld [vmem:[#allocation11 + $0x44] ss:$16 sps:$4 sm:$0xff]  }
 0x78e   :  { %v8923_v62 = vadd.f32 %v2772_v58, %v2771_v6  ;;  %v8998_v58 = vld [vmem:[#allocation11 + $0x68] ss:$16 sps:$4 sm:$0xff]   ;;  %v9008_v6 = vld [vmem:[#allocation11 + $0x40] ss:$16 sps:$4 sm:$0xff]  }
 0x790   :  { %7776 = vtanh.f32 %v8923_v62 }
 0x79d   :  { %v7777_v10 = vpop.eup %7776 }
 0x79e   :  { %v8926_v4 = vmul.f32 %v7777_v10, %v7775_v7  ;;  %v9010_v7 = vld [vmem:[#allocation11 + $0x48] ss:$16 sps:$4 sm:$0xff]   ;;  %v9016_v10 = vld [vmem:[#allocation11 + $0x24] ss:$16 sps:$4 sm:$0xff]  }
 0x7a0   :  { %v2785_v61 = vpack.c.bf16 %v8926_v4, %v8926_v4 }
 0x7a2   :  { %3011 = vmatmul.mubr.bf16.vlgmr.msra.gmra.mxu0 %v2785_v61  ;;  %3052 = vmatmul.mubr.bf16.vlgmr.msra.gmra.mxu1 %v2785_v61  ;;  %v9022_v61 = vld [vmem:[#allocation11 + $0x28] ss:$16 sps:$4 sm:$0xff]  }
 0x7a3   :  { %3317 = vmatpush1.bf16.msra.mxu0 %v7466_v56  ;;  %3390 = vmatpush1.bf16.msra.mxu1 %v7469_v12  ;;  %v9018_v56 = vld [vmem:[#allocation11 + $0x2c] ss:$16 sps:$4 sm:$0xff]   ;;  %v9020_v12 = vld [vmem:[#allocation11 + $0x20] ss:$16 sps:$4 sm:$0xff]  }
 0x7a4   :  { %3318 = vmatprep.subr.bf16.mxu0 %v7474_v13  ;;  %3391 = vmatprep.subr.bf16.mxu1 %v7477_v48  ;;  %v9026_v13 = vld [vmem:[#allocation11 + $0x4] ss:$16 sps:$4 sm:$0xff]   ;;  %v9028_v48 = vld [vmem:[#allocation11 + $0xc] ss:$16 sps:$4 sm:$0xff]  }
 0x7a5   :  { %3348 = vmatprep.mubr.bf16.mxu0 %v9635_v17  ;;  %3421 = vmatprep.mubr.bf16.mxu1 %v9635_v17 }
 0x7a7   :  { %3319 = vmatpush1.bf16.msra.mxu0 %v7472_v3  ;;  %3392 = vmatpush1.bf16.msra.mxu1 %v7475_v47  ;;  %v9032_v3 = vld [vmem:[#allocation11] ss:$16 sps:$4 sm:$0xff]   ;;  %v9034_v47 = vld [vmem:[#allocation11 + $0x8] ss:$16 sps:$4 sm:$0xff]  }
 0x7a8   :  { %3320 = vmatprep.subr.bf16.mxu0 %v7480_v11  ;;  %3393 = vmatprep.subr.bf16.mxu1 %v7483_v49 }
 0x7ab   :  { %3321 = vmatpush1.bf16.msra.mxu0 %v7478_v51  ;;  %3394 = vmatpush1.bf16.msra.mxu1 %v7481_v5  ;;  %v9652_v51 = vld [vmem:[#allocation46_spill] sm:$0xff] }
 0x7ac   :  { %3322 = vmatprep.subr.bf16.mxu0 %v7486_v53  ;;  %3395 = vmatprep.subr.bf16.mxu1 %v7489_v55 }
 0x7af   :  { %3323 = vmatpush1.bf16.msra.mxu0 %v7484_v20  ;;  %3396 = vmatpush1.bf16.msra.mxu1 %v7487_v60 }
 0x7b0   :  { %3324 = vmatprep.subr.bf16.mxu0 %v7492_v26  ;;  %3397 = vmatprep.subr.bf16.mxu1 %v7495_v52 }
 0x7b3   :  { %3325 = vmatpush1.bf16.msra.mxu0 %v7490_v63  ;;  %3398 = vmatpush1.bf16.msra.mxu1 %v7493_v2 }
 0x7b4   :  { %3326 = vmatprep.subr.bf16.mxu0 %v7498_v31  ;;  %3399 = vmatprep.subr.bf16.mxu1 %v7501_v24 }
 0x7b7   :  { %3327 = vmatpush1.bf16.msra.mxu0 %v7496_v35  ;;  %3400 = vmatpush1.bf16.msra.mxu1 %v7499_v0  ;;  %v9653_v35 = vld [vmem:[#allocation47_spill] sm:$0xff] }
 0x7b8   :  { %3328 = vmatprep.subr.bf16.mxu0 %v7504_v30  ;;  %3401 = vmatprep.subr.bf16.mxu1 %v7507_v14 }
 0x7bb   :  { %3329 = vmatpush1.bf16.msra.mxu0 %v7502_v29  ;;  %3402 = vmatpush1.bf16.msra.mxu1 %v7505_v28 }
 0x7bc   :  { %3330 = vmatprep.subr.bf16.mxu0 %v7510_v16  ;;  %3403 = vmatprep.subr.bf16.mxu1 %v7513_v37 }
 0x7bf   :  { %3331 = vmatpush1.bf16.msra.mxu0 %v7508_v32  ;;  %3404 = vmatpush1.bf16.msra.mxu1 %v7511_v19 }
 0x7c0   :  { %3690 = vmatprep.subr.bf16.mxu0 %v8944_v23  ;;  %3731 = vmatprep.subr.bf16.mxu1 %v8946_v34 }
 0x7c2   :  { %3349 = vmatmul.mubr.bf16.vlgmr.msra.gmra.mxu0 %v3098_v44  ;;  %3422 = vmatmul.mubr.bf16.vlgmr.msra.gmra.mxu1 %v3098_v44 }
 0x7c3   :  { %3358 = vmatprep.mubr.bf16.mxu0 %v9635_v17  ;;  %3431 = vmatprep.mubr.bf16.mxu1 %v9635_v17 }
 0x7c4   :  { %3691 = vmatpush1.bf16.msra.mxu0 %v8948_v36  ;;  %3732 = vmatpush1.bf16.msra.mxu1 %v8950_v8 }
 0x7c5   :  { %3692 = vmatprep.subr.bf16.mxu0 %v8956_v50  ;;  %3733 = vmatprep.subr.bf16.mxu1 %v8958_v1 }
 0x7c8   :  { %3693 = vmatpush1.bf16.msra.mxu0 %v8960_v27  ;;  %3734 = vmatpush1.bf16.msra.mxu1 %v8962_v15 }
 0x7c9   :  { %3694 = vmatprep.subr.bf16.mxu0 %v8968_v21  ;;  %3735 = vmatprep.subr.bf16.mxu1 %v8970_v22 }
 0x7ca   :  { %3359 = vmatmul.mubr.bf16.gmra.mxu0 %v3099_v45  ;;  %3432 = vmatmul.mubr.bf16.gmra.mxu1 %v3099_v45 }
 0x7cb   :  { %3368 = vmatprep.mubr.bf16.mxu0 %v9635_v17  ;;  %3441 = vmatprep.mubr.bf16.mxu1 %v9635_v17 }
 0x7cc   :  { %3695 = vmatpush1.bf16.msra.mxu0 %v8972_v33  ;;  %3736 = vmatpush1.bf16.msra.mxu1 %v8974_v38 }
 0x7cd   :  { %3696 = vmatprep.subr.bf16.mxu0 %v8980_v39  ;;  %3737 = vmatprep.subr.bf16.mxu1 %v8982_v40 }
 0x7d0   :  { %3697 = vmatpush1.bf16.msra.mxu0 %v8984_v41  ;;  %3738 = vmatpush1.bf16.msra.mxu1 %v8986_v42 }
 0x7d1   :  { %3698 = vmatprep.subr.bf16.mxu0 %v8992_v43  ;;  %3739 = vmatprep.subr.bf16.mxu1 %v8994_v54 }
 0x7d2   :  { %3369 = vmatmul.mubr.bf16.gmra.mxu0 %v3100_v25  ;;  %3442 = vmatmul.mubr.bf16.gmra.mxu1 %v3100_v25 }
 0x7d3   :  { %3378 = vmatprep.mubr.bf16.mxu0 %v9635_v17  ;;  %3451 = vmatprep.mubr.bf16.mxu1 %v9635_v17 }
 0x7d4   :  { %3699 = vmatpush1.bf16.msra.mxu0 %v8996_v57  ;;  %3740 = vmatpush1.bf16.msra.mxu1 %v8998_v58 }
 0x7d5   :  { %3700 = vmatprep.subr.bf16.mxu0 %v9004_v59  ;;  %3741 = vmatprep.subr.bf16.mxu1 %v9006_v46 }
 0x7d8   :  { %3701 = vmatpush1.bf16.msra.mxu0 %v9008_v6  ;;  %3742 = vmatpush1.bf16.msra.mxu1 %v9010_v7 }
 0x7d9   :  { %3702 = vmatprep.subr.bf16.mxu0 %v9016_v10  ;;  %3743 = vmatprep.subr.bf16.mxu1 %v9018_v56 }
 0x7dc   :  { %3703 = vmatpush1.bf16.msra.mxu0 %v9020_v12  ;;  %3744 = vmatpush1.bf16.msra.mxu1 %v9022_v61 }
 0x7dd   :  { %3704 = vmatprep.subr.bf16.mxu0 %v9026_v13  ;;  %3745 = vmatprep.subr.bf16.mxu1 %v9028_v48 }
 0x7e0   :  { %3705 = vmatpush1.bf16.msra.mxu0 %v9032_v3  ;;  %3746 = vmatpush1.bf16.msra.mxu1 %v9034_v47 }
 0x7e1   :  { %3998 = vmatprep.subr.bf16.mxu0 %v8944_v23  ;;  %4039 = vmatprep.subr.bf16.mxu1 %v8946_v34 }
 0x862   :  { %v3012_v11 = vpop.f32.mrf.mxu0  ;;  %v3053_v49 = vpop.f32.mrf.mxu1 }
 0x863   :  { %v3060_v5 = vadd.f32 %v3012_v11, %v9652_v51  ;;  %v3062_v0 = vadd.f32 %v3053_v49, %v9653_v35 }
 0x864   :  { %v3014_v53 = vpop.f32.mrf.mxu0  ;;  %v3055_v55 = vpop.f32.mrf.mxu1 }
 0x865   :  { %v6856_v20 = vmul.f32 -1.442695, %v3060_v5  ;;  %v3061_v60 = vadd.f32 %v3014_v53, %v8589_v18  ;;  %v3063_v24 = vadd.f32 %v3055_v55, %v8592_v9 }
 0x866   :  { %v3016_v26 = vpop.f32.mrf.mxu0  ;;  %v3057_v52 = vpop.f32.mrf.mxu1 }
 0x867   :  { %7778 = vpow2.f32 %v6856_v20  ;;  %v6857_v63 = vmul.f32 -1.442695, %v3061_v60  ;;  %v6858_v30 = vmul.f32 -1.442695, %v3063_v24 }
 0x868   :  { %v3017_v2 = vpop.f32.mrf.mxu0  ;;  %v3058_v31 = vpop.f32.mrf.mxu1 }
 0x869   :  { %7780 = vpow2.f32 %v6857_v63 }
 0x86a   :  { %7782 = vtanh.f32 %v3062_v0 }
 0x86b   :  { %7784 = vpow2.f32 %v6858_v30 }
 0x874   :  { %v7779_v14 = vpop.eup %7778 }
 0x875   :  { %v3067_v29 = vadd.f32 1.0, %v7779_v14 }
 0x876   :  { %v7781_v28 = vpop.eup %7780 }
 0x877   :  { %7786 = vrcp.f32 %v3067_v29  ;;  %v3073_v16 = vadd.f32 1.0, %v7781_v28  ;;  %v7783_v18 = vpop.eup %7782 }
 0x878   :  { %v7785_v37 = vpop.eup %7784 }
 0x879   :  { %7788 = vrcp.f32 %v3073_v16  ;;  %v3080_v45 = vadd.f32 1.0, %v7785_v37 }
 0x87b   :  { %7790 = vrcp.f32 %v3080_v45  ;;  %v3134_v45 = vld [vmem:[#allocation12] sm:$0xf] }
 0x884   :  { %v7787_v32 = vpop.eup %7786 }
 0x885   :  { %v3084_v19 = vmul.f32 %v7787_v32, %v7783_v18 }
 0x886   :  { %v7789_v44 = vpop.eup %7788 }
 0x887   :  { %v3083_v25 = vmul.f32 %v7789_v44, %v8923_v62  ;;  %v3350_v62 = vpop.f32.mrf.mxu0 }
 0x888   :  { %v7791_v11 = vpop.eup %7790 }
 0x889   :  { %v3085_v9 = vadd.f32 %v3084_v19, %v3083_v25  ;;  %v3352_v53 = vpop.f32.mrf.mxu0 }
 0x88b   :  { %7792 = vtanh.f32 %v3085_v9  ;;  %v9086_v20 = vpop.f32.mrf.mxu0 }
 0x88d   :  { %v9090_v26 = vpop.f32.mrf.mxu0 }
 0x88f   :  { %v9094_v63 = vpop.f32.mrf.mxu0 }
 0x891   :  { %v9098_v31 = vpop.f32.mrf.mxu0 }
 0x893   :  { %v9102_v35 = vpop.f32.mrf.mxu0 }
 0x894   :  { %9655 = vst [vmem:[#allocation32_spill] sm:$0xff] %v9102_v35 }
 0x895   :  { %v9106_v30 = vpop.f32.mrf.mxu0 }
 0x896   :  { %9657 = vst [vmem:[#allocation31_spill] sm:$0xff] %v9106_v30  ;;  %v9677_v30 = vld [vmem:[#allocation27_spill] sm:$0xff] }
 0x897   :  { %v9110_v29 = vpop.f32.mrf.mxu0  ;;  %v9678_v35 = vsub.s32 3, %v9677_v30 }
 0x898   :  { %v7793_v49 = vpop.eup %7792  ;;  %9659 = vst [vmem:[#allocation36_spill] sm:$0xff] %v9110_v29 }
 0x899   :  { %v3087_v51 = vmul.f32 %v7793_v49, %v7791_v11  ;;  %v9114_v16 = vpop.f32.mrf.mxu0 }
 0x89a   :  { %9661 = vst [vmem:[#allocation35_spill] sm:$0xff] %v9114_v16 }
 0x89b   :  { %v3101_v5 = vpack.c.bf16 %v3087_v51, %v8926_v4  ;;  %v3423_v4 = vpop.f32.mrf.mxu1  ;;  %v9118_v37 = vpop.f32.mrf.mxu0  ;;  %v9671_v51 = vld [vmem:[#allocation28_spill] sm:$0xff] }
 0x89c   :  { %9663 = vst [vmem:[#allocation40_spill] sm:$0xff] %v9118_v37 }
 0x89d   :  { %3379 = vmatmul.mubr.bf16.gmra.mxu0 %v3101_v5  ;;  %3452 = vmatmul.mubr.bf16.gmra.mxu1 %v3101_v5  ;;  %v3425_v55 = vpop.f32.mrf.mxu1  ;;  %v9122_v19 = vpop.f32.mrf.mxu0  ;;  %v9135_v5 = vrot.slane %v3134_v45, %v9671_v51 }
 0x89e   :  { %3722 = vmatprep.mubr.bf16.mxu0 %v9635_v17  ;;  %3763 = vmatprep.mubr.bf16.mxu1 %v9635_v17  ;;  %9665 = vst [vmem:[#allocation39_spill] sm:$0xff] %v9122_v19 }
 0x89f   :  { %v9088_v60 = vpop.f32.mrf.mxu1 }
 0x8a1   :  { %v9092_v52 = vpop.f32.mrf.mxu1 }
 0x8a3   :  { %v9096_v2 = vpop.f32.mrf.mxu1 }
 0x8a4   :  { %9654 = vst [vmem:[#allocation30_spill] sm:$0xff] %v9096_v2 }
 0x8a5   :  { %3723 = vmatmul.mubr.bf16.vlgmr.msra.gmra.mxu0 %v9635_v17  ;;  %3764 = vmatmul.mubr.bf16.vlgmr.msra.gmra.mxu1 %v9635_v17  ;;  %v9100_v24 = vpop.f32.mrf.mxu1 }
 0x8a6   :  { %3999 = vmatpush1.bf16.msra.mxu0 %v8948_v36  ;;  %4040 = vmatpush1.bf16.msra.mxu1 %v8950_v8 }
 0x8a7   :  { %4000 = vmatprep.subr.bf16.mxu0 %v8956_v50  ;;  %4041 = vmatprep.subr.bf16.mxu1 %v8958_v1  ;;  %v9104_v0 = vpop.f32.mrf.mxu1 }
 0x8a8   :  { %4030 = vmatprep.mubr.bf16.mxu0 %v9635_v17  ;;  %4071 = vmatprep.mubr.bf16.mxu1 %v9635_v17  ;;  %9656 = vst [vmem:[#allocation33_spill] sm:$0xff] %v9104_v0 }
 0x8a9   :  { %v9108_v14 = vpop.f32.mrf.mxu1 }
 0x8aa   :  { %4001 = vmatpush1.bf16.msra.mxu0 %v8960_v27  ;;  %4042 = vmatpush1.bf16.msra.mxu1 %v8962_v15  ;;  %9658 = vst [vmem:[#allocation34_spill] sm:$0xff] %v9108_v14 }
 0x8ab   :  { %4002 = vmatprep.subr.bf16.mxu0 %v8968_v21  ;;  %4043 = vmatprep.subr.bf16.mxu1 %v8970_v22  ;;  %v9112_v28 = vpop.f32.mrf.mxu1 }
 0x8ac   :  { %9660 = vst [vmem:[#allocation37_spill] sm:$0xff] %v9112_v28 }
 0x8ad   :  { %v9116_v18 = vpop.f32.mrf.mxu1 }
 0x8ae   :  { %4003 = vmatpush1.bf16.msra.mxu0 %v8972_v33  ;;  %4044 = vmatpush1.bf16.msra.mxu1 %v8974_v38  ;;  %9662 = vst [vmem:[#allocation38_spill] sm:$0xff] %v9116_v18 }
 0x8af   :  { %4004 = vmatprep.subr.bf16.mxu0 %v8980_v39  ;;  %4045 = vmatprep.subr.bf16.mxu1 %v8982_v40  ;;  %v9120_v32 = vpop.f32.mrf.mxu1 }
 0x8b0   :  { %9664 = vst [vmem:[#allocation41_spill] sm:$0xff] %v9120_v32  ;;  %v9674_v32 = vld [vmem:[#allocation29_spill] sm:$0xff] }
 0x8b1   :  { %v9124_v44 = vpop.f32.mrf.mxu1  ;;  %v9142_v19 = vrot.slane %v3134_v45, %v9674_v32 }
 0x8b2   :  { %4005 = vmatpush1.bf16.msra.mxu0 %v8984_v41  ;;  %4046 = vmatpush1.bf16.msra.mxu1 %v8986_v42  ;;  %9666 = vst [vmem:[#allocation42_spill] sm:$0xff] %v9124_v44 }
 0x8b3   :  { %4006 = vmatprep.subr.bf16.mxu0 %v8992_v43  ;;  %4047 = vmatprep.subr.bf16.mxu1 %v8994_v54 }
 0x8b6   :  { %4007 = vmatpush1.bf16.msra.mxu0 %v8996_v57  ;;  %4048 = vmatpush1.bf16.msra.mxu1 %v8998_v58 }
 0x8b7   :  { %4008 = vmatprep.subr.bf16.mxu0 %v9004_v59  ;;  %4049 = vmatprep.subr.bf16.mxu1 %v9006_v46 }
 0x8ba   :  { %4009 = vmatpush1.bf16.msra.mxu0 %v9008_v6  ;;  %4050 = vmatpush1.bf16.msra.mxu1 %v9010_v7 }
 0x8bb   :  { %4010 = vmatprep.subr.bf16.mxu0 %v9016_v10  ;;  %4051 = vmatprep.subr.bf16.mxu1 %v9018_v56 }
 0x8be   :  { %4011 = vmatpush1.bf16.msra.mxu0 %v9020_v12  ;;  %4052 = vmatpush1.bf16.msra.mxu1 %v9022_v61 }
 0x8bf   :  { %4012 = vmatprep.subr.bf16.mxu0 %v9026_v13  ;;  %4053 = vmatprep.subr.bf16.mxu1 %v9028_v48 }
 0x8c2   :  { %4013 = vmatpush1.bf16.msra.mxu0 %v9032_v3  ;;  %4054 = vmatpush1.bf16.msra.mxu1 %v9034_v47 }
 0x8c3   :  { %4306 = vmatprep.subr.bf16.mxu0 %v8944_v23  ;;  %4347 = vmatprep.subr.bf16.mxu1 %v8946_v34 }
 0x95d   :  { %v9126_v25 = vpop.f32.mrf.mxu0  ;;  %v9128_v9 = vpop.f32.mrf.mxu1 }
 0x95e   :  { %9667 = vst [vmem:[#allocation44_spill] sm:$0xff] %v9126_v25  ;;  %9668 = vst [vmem:[#allocation45_spill] sm:$0xff] %v9128_v9  ;;  %v3351_v9 = vadd.f32 %v3350_v62, %v9135_v5 }
 0x95f   :  { %v9130_v11 = vpop.f32.mrf.mxu0  ;;  %v9132_v49 = vpop.f32.mrf.mxu1 }
 0x960   :  { %9669 = vst [vmem:[#allocation43_spill] sm:$0xff] %v9130_v11  ;;  %9670 = vst [vmem:[#allocation46_spill] sm:$0xff] %v9132_v49  ;;  %v3353_v49 = vadd.f32 %v3352_v53, %v9142_v19  ;;  %v9679_v53 = vsub.s32 2, %v9677_v30 }
 0x961   :  { %v9137_v28 = vpop.f32.mrf.mxu0  ;;  %v9139_v37 = vpop.f32.mrf.mxu1 }
 0x962   :  { %9672 = vst [vmem:[#allocation47_spill] sm:$0xff] %v9137_v28  ;;  %9673 = vst [vmem:[#allocation48_spill] sm:$0xff] %v9139_v37 }
 0x963   :  { %v9144_v44 = vpop.f32.mrf.mxu0  ;;  %v9146_v18 = vpop.f32.mrf.mxu1 }
 0x964   :  { %9675 = vst [vmem:[#allocation49_spill] sm:$0xff] %v9144_v44  ;;  %9676 = vst [vmem:[#allocation50_spill] sm:$0xff] %v9146_v18  ;;  %v9152_v44 = vrot.slane %v3134_v45, %v9678_v35 }
 0x965   :  { %v3724_v25 = vpop.f32.mrf.mxu0  ;;  %v3765_v11 = vpop.f32.mrf.mxu1 }
 0x966   :  { %v3772_v16 = vadd.f32 %v3724_v25, %v3351_v9  ;;  %v3426_v62 = vadd.f32 %v3425_v55, %v9152_v44  ;;  %v9157_v25 = vrot.slane %v3134_v45, %v9679_v53 }
 0x967   :  { %v3726_v51 = vpop.f32.mrf.mxu0  ;;  %v3767_v29 = vpop.f32.mrf.mxu1 }
 0x968   :  { %v6923_v0 = vmul.f32 -1.442695, %v3772_v16  ;;  %v3773_v28 = vadd.f32 %v3726_v51, %v3353_v49  ;;  %v3775_v9 = vadd.f32 %v3767_v29, %v3426_v62  ;;  %v3424_v16 = vadd.f32 %v3423_v4, %v9157_v25 }
 0x969   :  { %v3728_v14 = vpop.f32.mrf.mxu0  ;;  %v3769_v37 = vpop.f32.mrf.mxu1 }
 0x96a   :  { %7794 = vpow2.f32 %v6923_v0  ;;  %v6924_v32 = vmul.f32 -1.442695, %v3773_v28  ;;  %v6925_v14 = vmul.f32 -1.442695, %v3775_v9  ;;  %v3774_v0 = vadd.f32 %v3765_v11, %v3424_v16 }
 0x96b   :  { %v3729_v18 = vpop.f32.mrf.mxu0  ;;  %v3770_v2 = vpop.f32.mrf.mxu1  ;;  %v3355_v9 = vadd.f32 %v9086_v20, %v9135_v5 }
 0x96c   :  { %7796 = vpow2.f32 %v6924_v32 }
 0x96d   :  { %7798 = vpow2.f32 %v6925_v14 }
 0x977   :  { %v7795_v37 = vpop.eup %7794 }
 0x978   :  { %v3779_v28 = vadd.f32 1.0, %v7795_v37  ;;  %v3357_v37 = vadd.f32 %v9090_v26, %v9142_v19 }
 0x979   :  { %v7797_v49 = vpop.eup %7796 }
 0x97a   :  { %7800 = vrcp.f32 %v3779_v28  ;;  %v3785_v35 = vadd.f32 1.0, %v7797_v49  ;;  %v7799_v2 = vpop.eup %7798 }
 0x97b   :  { %7802 = vtanh.f32 %v3774_v0  ;;  %v3792_v30 = vadd.f32 1.0, %v7799_v2 }
 0x97c   :  { %7804 = vrcp.f32 %v3785_v35 }
 0x97d   :  { %7806 = vrcp.f32 %v3792_v30 }
 0x987   :  { %v7801_v18 = vpop.eup %7800 }
 0x988   :  { %v7803_v55 = vpop.eup %7802 }
 0x989   :  { %v7805_v32 = vpop.eup %7804  ;;  %v3796_v51 = vmul.f32 %v7803_v55, %v7801_v18 }
 0x98a   :  { %v3795_v45 = vmul.f32 0.0, %v7805_v32  ;;  %v7807_v4 = vpop.eup %7806 }
 0x98c   :  { %v9160_v29 = vadd.f32 %v3796_v51, %v3795_v45  ;;  %v3428_v45 = vadd.f32 %v9088_v60, %v9157_v25 }
 0x98e   :  { %7808 = vtanh.f32 %v9160_v29 }
 0x99b   :  { %v7809_v11 = vpop.eup %7808 }
 0x99c   :  { %v3799_v62 = vmul.f32 %v7809_v11, %v7807_v4 }
 0x99e   :  { %v3805_v53 = vpack.c.bf16 %v3799_v62, %v3799_v62 }
 0x9a0   :  { %4031 = vmatmul.mubr.bf16.vlgmr.msra.gmra.mxu0 %v3805_v53  ;;  %4072 = vmatmul.mubr.bf16.vlgmr.msra.gmra.mxu1 %v3805_v53 }
 0x9a1   :  { %4307 = vmatpush1.bf16.msra.mxu0 %v8948_v36  ;;  %4348 = vmatpush1.bf16.msra.mxu1 %v8950_v8 }
 0x9a2   :  { %4308 = vmatprep.subr.bf16.mxu0 %v8956_v50  ;;  %4349 = vmatprep.subr.bf16.mxu1 %v8958_v1 }
 0x9a3   :  { %4338 = vmatprep.mubr.bf16.mxu0 %v9635_v17  ;;  %4379 = vmatprep.mubr.bf16.mxu1 %v9635_v17 }
 0x9a5   :  { %4309 = vmatpush1.bf16.msra.mxu0 %v8960_v27  ;;  %4350 = vmatpush1.bf16.msra.mxu1 %v8962_v15 }
 0x9a6   :  { %4310 = vmatprep.subr.bf16.mxu0 %v8968_v21  ;;  %4351 = vmatprep.subr.bf16.mxu1 %v8970_v22 }
 0x9a9   :  { %4311 = vmatpush1.bf16.msra.mxu0 %v8972_v33  ;;  %4352 = vmatpush1.bf16.msra.mxu1 %v8974_v38 }
 0x9aa   :  { %4312 = vmatprep.subr.bf16.mxu0 %v8980_v39  ;;  %4353 = vmatprep.subr.bf16.mxu1 %v8982_v40 }
 0x9ad   :  { %4313 = vmatpush1.bf16.msra.mxu0 %v8984_v41  ;;  %4354 = vmatpush1.bf16.msra.mxu1 %v8986_v42 }
 0x9ae   :  { %4314 = vmatprep.subr.bf16.mxu0 %v8992_v43  ;;  %4355 = vmatprep.subr.bf16.mxu1 %v8994_v54 }
 0x9b1   :  { %4315 = vmatpush1.bf16.msra.mxu0 %v8996_v57  ;;  %4356 = vmatpush1.bf16.msra.mxu1 %v8998_v58 }
 0x9b2   :  { %4316 = vmatprep.subr.bf16.mxu0 %v9004_v59  ;;  %4357 = vmatprep.subr.bf16.mxu1 %v9006_v46 }
 0x9b5   :  { %4317 = vmatpush1.bf16.msra.mxu0 %v9008_v6  ;;  %4358 = vmatpush1.bf16.msra.mxu1 %v9010_v7 }
 0x9b6   :  { %4318 = vmatprep.subr.bf16.mxu0 %v9016_v10  ;;  %4359 = vmatprep.subr.bf16.mxu1 %v9018_v56 }
 0x9b9   :  { %4319 = vmatpush1.bf16.msra.mxu0 %v9020_v12  ;;  %4360 = vmatpush1.bf16.msra.mxu1 %v9022_v61 }
 0x9ba   :  { %4320 = vmatprep.subr.bf16.mxu0 %v9026_v13  ;;  %4361 = vmatprep.subr.bf16.mxu1 %v9028_v48 }
 0x9bd   :  { %4321 = vmatpush1.bf16.msra.mxu0 %v9032_v3  ;;  %4362 = vmatpush1.bf16.msra.mxu1 %v9034_v47 }
 0x9be   :  { %4614 = vmatprep.subr.bf16.mxu0 %v8944_v23  ;;  %4655 = vmatprep.subr.bf16.mxu1 %v8946_v34  ;;  %v3430_v34 = vadd.f32 %v9092_v52, %v9152_v44 }
 0xa60   :  { %v4032_v16 = vpop.f32.mrf.mxu0  ;;  %v4073_v14 = vpop.f32.mrf.mxu1 }
 0xa61   :  { %v4080_v0 = vadd.f32 %v4032_v16, %v3355_v9  ;;  %v4082_v26 = vadd.f32 %v4073_v14, %v3428_v45  ;;  %v9267_v45 = vld [vmem:[#allocation11 + $0xc4] ss:$16 sps:$4 sm:$0xff]  }
 0xa62   :  { %v4034_v28 = vpop.f32.mrf.mxu0  ;;  %v4075_v49 = vpop.f32.mrf.mxu1 }
 0xa63   :  { %v6958_v35 = vmul.f32 -1.442695, %v4080_v0  ;;  %v4081_v2 = vadd.f32 %v4034_v28, %v3357_v37  ;;  %v4083_v20 = vadd.f32 %v4075_v49, %v3430_v34  ;;  %v9259_v34 = vld [vmem:[#allocation11 + $0xe0] ss:$16 sps:$4 sm:$0xff]  }
 0xa64   :  { %v4036_v18 = vpop.f32.mrf.mxu0  ;;  %v4077_v55 = vpop.f32.mrf.mxu1 }
 0xa65   :  { %7810 = vpow2.f32 %v6958_v35  ;;  %v6959_v32 = vmul.f32 -1.442695, %v4081_v2  ;;  %v6960_v51 = vmul.f32 -1.442695, %v4083_v20  ;;  %v9261_v20 = vld [vmem:[#allocation11 + $0xe8] ss:$16 sps:$4 sm:$0xff]  }
 0xa66   :  { %v4037_v23 = vpop.f32.mrf.mxu0  ;;  %v4078_v30 = vpop.f32.mrf.mxu1 }
 0xa67   :  { %7812 = vpow2.f32 %v6959_v32  ;;  %v9255_v23 = vld [vmem:[#allocation11 + $0xe4] ss:$16 sps:$4 sm:$0xff]   ;;  %v9257_v30 = vld [vmem:[#allocation11 + $0xec] ss:$16 sps:$4 sm:$0xff]  }
 0xa68   :  { %7814 = vtanh.f32 %v4082_v26  ;;  %v9269_v26 = vld [vmem:[#allocation11 + $0xcc] ss:$16 sps:$4 sm:$0xff]  }
 0xa69   :  { %7816 = vpow2.f32 %v6960_v51  ;;  %v9271_v51 = vld [vmem:[#allocation11 + $0xc0] ss:$16 sps:$4 sm:$0xff]  }
 0xa72   :  { %v7811_v4 = vpop.eup %7810 }
 0xa73   :  { %v4087_v11 = vadd.f32 1.0, %v7811_v4  ;;  %v9273_v4 = vld [vmem:[#allocation11 + $0xc8] ss:$16 sps:$4 sm:$0xff]  }
 0xa74   :  { %v7813_v62 = vpop.eup %7812 }
 0xa75   :  { %7818 = vrcp.f32 %v4087_v11  ;;  %v4093_v53 = vadd.f32 1.0, %v7813_v62  ;;  %v7815_v9 = vpop.eup %7814  ;;  %v9279_v11 = vld [vmem:[#allocation11 + $0xa4] ss:$16 sps:$4 sm:$0xff]   ;;  %v9281_v62 = vld [vmem:[#allocation11 + $0xac] ss:$16 sps:$4 sm:$0xff]  }
 0xa76   :  { %v7817_v16 = vpop.eup %7816 }
 0xa77   :  { %7820 = vrcp.f32 %v4093_v53  ;;  %v4100_v52 = vadd.f32 1.0, %v7817_v16  ;;  %v9283_v53 = vld [vmem:[#allocation11 + $0xa0] ss:$16 sps:$4 sm:$0xff]   ;;  %v9291_v16 = vld [vmem:[#allocation11 + $0x84] ss:$16 sps:$4 sm:$0xff]  }
 0xa79   :  { %7822 = vrcp.f32 %v4100_v52  ;;  %v9301_v52 = vld [vmem:[#allocation11 + $0x64] ss:$16 sps:$4 sm:$0xff]  }
 0xa82   :  { %v7819_v37 = vpop.eup %7818 }
 0xa83   :  { %v4104_v0 = vmul.f32 %v7819_v37, %v7815_v9  ;;  %v9285_v9 = vld [vmem:[#allocation11 + $0xa8] ss:$16 sps:$4 sm:$0xff]   ;;  %v9293_v37 = vld [vmem:[#allocation11 + $0x8c] ss:$16 sps:$4 sm:$0xff]  }
 0xa84   :  { %v7821_v28 = vpop.eup %7820 }
 0xa85   :  { %v4103_v49 = vmul.f32 %v7821_v28, %v9160_v29  ;;  %v9297_v28 = vld [vmem:[#allocation11 + $0x88] ss:$16 sps:$4 sm:$0xff]  }
 0xa86   :  { %v7823_v60 = vpop.eup %7822 }
 0xa87   :  { %v9206_v35 = vadd.f32 %v4104_v0, %v4103_v49  ;;  %v9295_v0 = vld [vmem:[#allocation11 + $0x80] ss:$16 sps:$4 sm:$0xff]   ;;  %v9303_v49 = vld [vmem:[#allocation11 + $0x6c] ss:$16 sps:$4 sm:$0xff]  }
 0xa89   :  { %7824 = vtanh.f32 %v9206_v35 }
 0xa96   :  { %v7825_v14 = vpop.eup %7824 }
 0xa97   :  { %v4107_v2 = vmul.f32 %v7825_v14, %v7823_v60  ;;  %v9309_v60 = vld [vmem:[#allocation11 + $0x68] ss:$16 sps:$4 sm:$0xff]   ;;  %v9313_v14 = vld [vmem:[#allocation11 + $0x44] ss:$16 sps:$4 sm:$0xff]  }
 0xa99   :  { %v4113_v18 = vpack.c.bf16 %v4107_v2, %v4107_v2  ;;  %v9315_v2 = vld [vmem:[#allocation11 + $0x4c] ss:$16 sps:$4 sm:$0xff]  }
 0xa9b   :  { %4339 = vmatmul.mubr.bf16.vlgmr.msra.gmra.mxu0 %v4113_v18  ;;  %4380 = vmatmul.mubr.bf16.vlgmr.msra.gmra.mxu1 %v4113_v18  ;;  %v9319_v18 = vld [vmem:[#allocation11 + $0x40] ss:$16 sps:$4 sm:$0xff]  }
 0xa9c   :  { %4615 = vmatpush1.bf16.msra.mxu0 %v8948_v36  ;;  %4656 = vmatpush1.bf16.msra.mxu1 %v8950_v8  ;;  %v3361_v36 = vadd.f32 %v9094_v63, %v9135_v5 }
 0xa9d   :  { %4616 = vmatprep.subr.bf16.mxu0 %v8956_v50  ;;  %4657 = vmatprep.subr.bf16.mxu1 %v8958_v1  ;;  %v3363_v1 = vadd.f32 %v9098_v31, %v9142_v19 }
 0xa9e   :  { %4646 = vmatprep.mubr.bf16.mxu0 %v9635_v17  ;;  %4687 = vmatprep.mubr.bf16.mxu1 %v9635_v17 }
 0xaa0   :  { %4617 = vmatpush1.bf16.msra.mxu0 %v8960_v27  ;;  %4658 = vmatpush1.bf16.msra.mxu1 %v8962_v15 }
 0xaa1   :  { %4618 = vmatprep.subr.bf16.mxu0 %v8968_v21  ;;  %4659 = vmatprep.subr.bf16.mxu1 %v8970_v22 }
 0xaa4   :  { %4619 = vmatpush1.bf16.msra.mxu0 %v8972_v33  ;;  %4660 = vmatpush1.bf16.msra.mxu1 %v8974_v38 }
 0xaa5   :  { %4620 = vmatprep.subr.bf16.mxu0 %v8980_v39  ;;  %4661 = vmatprep.subr.bf16.mxu1 %v8982_v40 }
 0xaa8   :  { %4621 = vmatpush1.bf16.msra.mxu0 %v8984_v41  ;;  %4662 = vmatpush1.bf16.msra.mxu1 %v8986_v42 }
 0xaa9   :  { %4622 = vmatprep.subr.bf16.mxu0 %v8992_v43  ;;  %4663 = vmatprep.subr.bf16.mxu1 %v8994_v54  ;;  %v3436_v43 = vadd.f32 %v9100_v24, %v9152_v44 }
 0xaac   :  { %4623 = vmatpush1.bf16.msra.mxu0 %v8996_v57  ;;  %4664 = vmatpush1.bf16.msra.mxu1 %v8998_v58  ;;  %v9680_v57 = vld [vmem:[#allocation30_spill] sm:$0xff] }
 0xaad   :  { %4624 = vmatprep.subr.bf16.mxu0 %v9004_v59  ;;  %4665 = vmatprep.subr.bf16.mxu1 %v9006_v46  ;;  %v3434_v58 = vadd.f32 %v9680_v57, %v9157_v25 }
 0xab0   :  { %4625 = vmatpush1.bf16.msra.mxu0 %v9008_v6  ;;  %4666 = vmatpush1.bf16.msra.mxu1 %v9010_v7 }
 0xab1   :  { %4626 = vmatprep.subr.bf16.mxu0 %v9016_v10  ;;  %4667 = vmatprep.subr.bf16.mxu1 %v9018_v56 }
 0xab4   :  { %4627 = vmatpush1.bf16.msra.mxu0 %v9020_v12  ;;  %4668 = vmatpush1.bf16.msra.mxu1 %v9022_v61 }
 0xab5   :  { %4628 = vmatprep.subr.bf16.mxu0 %v9026_v13  ;;  %4669 = vmatprep.subr.bf16.mxu1 %v9028_v48 }
 0xab8   :  { %4629 = vmatpush1.bf16.msra.mxu0 %v9032_v3  ;;  %4670 = vmatpush1.bf16.msra.mxu1 %v9034_v47 }
 0xab9   :  { %4922 = vmatprep.subr.bf16.mxu0 %v9255_v23  ;;  %4963 = vmatprep.subr.bf16.mxu1 %v9257_v30 }
 0xb5b   :  { %v4340_v8 = vpop.f32.mrf.mxu0  ;;  %v4381_v50 = vpop.f32.mrf.mxu1 }
 0xb5c   :  { %v4388_v27 = vadd.f32 %v4340_v8, %v3361_v36  ;;  %v4390_v59 = vadd.f32 %v4381_v50, %v3434_v58  ;;  %v9321_v36 = vld [vmem:[#allocation11 + $0x48] ss:$16 sps:$4 sm:$0xff]   ;;  %v9325_v8 = vld [vmem:[#allocation11 + $0x24] ss:$16 sps:$4 sm:$0xff]   ;;  %v9327_v50 = vld [vmem:[#allocation11 + $0x2c] ss:$16 sps:$4 sm:$0xff]  }
 0xb5d   :  { %v4342_v15 = vpop.f32.mrf.mxu0  ;;  %v4383_v21 = vpop.f32.mrf.mxu1 }
 0xb5e   :  { %v6993_v22 = vmul.f32 -1.442695, %v4388_v27  ;;  %v4389_v33 = vadd.f32 %v4342_v15, %v3363_v1  ;;  %v4391_v54 = vadd.f32 %v4383_v21, %v3436_v43  ;;  %v9331_v1 = vld [vmem:[#allocation11 + $0x20] ss:$16 sps:$4 sm:$0xff]   ;;  %v9333_v27 = vld [vmem:[#allocation11 + $0x28] ss:$16 sps:$4 sm:$0xff]  }
 0xb5f   :  { %v4344_v38 = vpop.f32.mrf.mxu0  ;;  %v4385_v39 = vpop.f32.mrf.mxu1  ;;  %v9337_v15 = vld [vmem:[#allocation11 + $0x4] ss:$16 sps:$4 sm:$0xff]   ;;  %v9339_v21 = vld [vmem:[#allocation11 + $0xc] ss:$16 sps:$4 sm:$0xff]  }
 0xb60   :  { %7826 = vpow2.f32 %v6993_v22  ;;  %v6994_v40 = vmul.f32 -1.442695, %v4389_v33  ;;  %v6995_v46 = vmul.f32 -1.442695, %v4391_v54  ;;  %v9343_v22 = vld [vmem:[#allocation11] ss:$16 sps:$4 sm:$0xff]  }
 0xb61   :  { %v4345_v41 = vpop.f32.mrf.mxu0  ;;  %v4386_v42 = vpop.f32.mrf.mxu1  ;;  %v9345_v33 = vld [vmem:[#allocation11 + $0x8] ss:$16 sps:$4 sm:$0xff]   ;;  %v9681_v38 = vld [vmem:[#allocation32_spill] sm:$0xff] }
 0xb62   :  { %7828 = vpow2.f32 %v6994_v40  ;;  %v3365_v39 = vadd.f32 %v9681_v38, %v9135_v5  ;;  %v9682_v42 = vld [vmem:[#allocation31_spill] sm:$0xff] }
 0xb63   :  { %7830 = vtanh.f32 %v4390_v59  ;;  %v3367_v43 = vadd.f32 %v9682_v42, %v9142_v19 }
 0xb64   :  { %7832 = vpow2.f32 %v6995_v46 }
 0xb6d   :  { %v7827_v6 = vpop.eup %7826 }
 0xb6e   :  { %v4395_v7 = vadd.f32 1.0, %v7827_v6 }
 0xb6f   :  { %v7829_v10 = vpop.eup %7828 }
 0xb70   :  { %7834 = vrcp.f32 %v4395_v7  ;;  %v4401_v56 = vadd.f32 1.0, %v7829_v10  ;;  %v7831_v12 = vpop.eup %7830 }
 0xb71   :  { %v7833_v61 = vpop.eup %7832 }
 0xb72   :  { %7836 = vrcp.f32 %v4401_v56  ;;  %v4408_v47 = vadd.f32 1.0, %v7833_v61  ;;  %v9683_v61 = vld [vmem:[#allocation34_spill] sm:$0xff] }
 0xb74   :  { %7838 = vrcp.f32 %v4408_v47 }
 0xb7d   :  { %v7835_v13 = vpop.eup %7834 }
 0xb7e   :  { %v4412_v48 = vmul.f32 %v7835_v13, %v7831_v12  ;;  %v3440_v13 = vadd.f32 %v9683_v61, %v9152_v44  ;;  %v9686_v61 = vld [vmem:[#allocation35_spill] sm:$0xff] }
 0xb7f   :  { %v7837_v3 = vpop.eup %7836 }
 0xb80   :  { %v4411_v63 = vmul.f32 %v7837_v3, %v9206_v35  ;;  %v9307_v35 = vld [vmem:[#allocation11 + $0x60] ss:$16 sps:$4 sm:$0xff]   ;;  %v9684_v3 = vld [vmem:[#allocation33_spill] sm:$0xff] }
 0xb81   :  { %v7839_v24 = vpop.eup %7838  ;;  %v3438_v47 = vadd.f32 %v9684_v3, %v9157_v25 }
 0xb82   :  { %v9250_v31 = vadd.f32 %v4412_v48, %v4411_v63 }
 0xb84   :  { %7840 = vtanh.f32 %v9250_v31 }
 0xb91   :  { %v7841_v29 = vpop.eup %7840 }
 0xb92   :  { %v4415_v55 = vmul.f32 %v7841_v29, %v7839_v24 }
 0xb94   :  { %v4421_v32 = vpack.c.bf16 %v4415_v55, %v4415_v55 }
 0xb96   :  { %4647 = vmatmul.mubr.bf16.vlgmr.msra.gmra.mxu0 %v4421_v32  ;;  %4688 = vmatmul.mubr.bf16.vlgmr.msra.gmra.mxu1 %v4421_v32 }
 0xb97   :  { %4954 = vmatprep.mubr.bf16.mxu0 %v9635_v17  ;;  %4995 = vmatprep.mubr.bf16.mxu1 %v9635_v17 }
 0xb98   :  { %4923 = vmatpush1.bf16.msra.mxu0 %v9259_v34  ;;  %4964 = vmatpush1.bf16.msra.mxu1 %v9261_v20 }
 0xb99   :  { %4924 = vmatprep.subr.bf16.mxu0 %v9267_v45  ;;  %4965 = vmatprep.subr.bf16.mxu1 %v9269_v26 }
 0xb9c   :  { %4925 = vmatpush1.bf16.msra.mxu0 %v9271_v51  ;;  %4966 = vmatpush1.bf16.msra.mxu1 %v9273_v4 }
 0xb9d   :  { %4926 = vmatprep.subr.bf16.mxu0 %v9279_v11  ;;  %4967 = vmatprep.subr.bf16.mxu1 %v9281_v62 }
 0xba0   :  { %4927 = vmatpush1.bf16.msra.mxu0 %v9283_v53  ;;  %4968 = vmatpush1.bf16.msra.mxu1 %v9285_v9 }
 0xba1   :  { %4928 = vmatprep.subr.bf16.mxu0 %v9291_v16  ;;  %4969 = vmatprep.subr.bf16.mxu1 %v9293_v37 }
 0xba4   :  { %4929 = vmatpush1.bf16.msra.mxu0 %v9295_v0  ;;  %4970 = vmatpush1.bf16.msra.mxu1 %v9297_v28 }
 0xba5   :  { %4930 = vmatprep.subr.bf16.mxu0 %v9301_v52  ;;  %4971 = vmatprep.subr.bf16.mxu1 %v9303_v49 }
 0xba8   :  { %4931 = vmatpush1.bf16.msra.mxu0 %v9307_v35  ;;  %4972 = vmatpush1.bf16.msra.mxu1 %v9309_v60 }
 0xba9   :  { %4932 = vmatprep.subr.bf16.mxu0 %v9313_v14  ;;  %4973 = vmatprep.subr.bf16.mxu1 %v9315_v2 }
 0xbac   :  { %4933 = vmatpush1.bf16.msra.mxu0 %v9319_v18  ;;  %4974 = vmatpush1.bf16.msra.mxu1 %v9321_v36 }
 0xbad   :  { %4934 = vmatprep.subr.bf16.mxu0 %v9325_v8  ;;  %4975 = vmatprep.subr.bf16.mxu1 %v9327_v50 }
 0xbb0   :  { %4935 = vmatpush1.bf16.msra.mxu0 %v9331_v1  ;;  %4976 = vmatpush1.bf16.msra.mxu1 %v9333_v27 }
 0xbb1   :  { %4936 = vmatprep.subr.bf16.mxu0 %v9337_v15  ;;  %4977 = vmatprep.subr.bf16.mxu1 %v9339_v21 }
 0xbb4   :  { %4937 = vmatpush1.bf16.msra.mxu0 %v9343_v22  ;;  %4978 = vmatpush1.bf16.msra.mxu1 %v9345_v33 }
 0xbb5   :  { %5230 = vmatprep.subr.bf16.mxu0 %v9255_v23  ;;  %5271 = vmatprep.subr.bf16.mxu1 %v9257_v30 }
 0xc56   :  { %v4648_v40 = vpop.f32.mrf.mxu0  ;;  %v4689_v41 = vpop.f32.mrf.mxu1 }
 0xc57   :  { %v4696_v54 = vadd.f32 %v4648_v40, %v3365_v39  ;;  %v4698_v63 = vadd.f32 %v4689_v41, %v3438_v47 }
 0xc58   :  { %v4650_v57 = vpop.f32.mrf.mxu0  ;;  %v4691_v58 = vpop.f32.mrf.mxu1 }
 0xc59   :  { %v7028_v59 = vmul.f32 -1.442695, %v4696_v54  ;;  %v4697_v46 = vadd.f32 %v4650_v57, %v3367_v43  ;;  %v4699_v48 = vadd.f32 %v4691_v58, %v3440_v13  ;;  %v3373_v13 = vadd.f32 %v9686_v61, %v9142_v19 }
 0xc5a   :  { %v4652_v6 = vpop.f32.mrf.mxu0  ;;  %v4693_v7 = vpop.f32.mrf.mxu1 }
 0xc5b   :  { %7842 = vpow2.f32 %v7028_v59  ;;  %v7029_v10 = vmul.f32 -1.442695, %v4697_v46  ;;  %v7030_v24 = vmul.f32 -1.442695, %v4699_v48 }
 0xc5c   :  { %v4653_v56 = vpop.f32.mrf.mxu0  ;;  %v4694_v12 = vpop.f32.mrf.mxu1 }
 0xc5d   :  { %7844 = vpow2.f32 %v7029_v10 }
 0xc5e   :  { %7846 = vtanh.f32 %v4698_v63 }
 0xc5f   :  { %7848 = vpow2.f32 %v7030_v24 }
 0xc68   :  { %v7843_v29 = vpop.eup %7842 }
 0xc69   :  { %v4703_v55 = vadd.f32 1.0, %v7843_v29 }
 0xc6a   :  { %v7845_v32 = vpop.eup %7844 }
 0xc6b   :  { %7850 = vrcp.f32 %v4703_v55  ;;  %v4709_v38 = vadd.f32 1.0, %v7845_v32  ;;  %v7847_v39 = vpop.eup %7846 }
 0xc6c   :  { %v7849_v40 = vpop.eup %7848 }
 0xc6d   :  { %7852 = vrcp.f32 %v4709_v38  ;;  %v4716_v57 = vadd.f32 1.0, %v7849_v40  ;;  %v9687_v40 = vld [vmem:[#allocation38_spill] sm:$0xff] }
 0xc6f   :  { %7854 = vrcp.f32 %v4716_v57 }
 0xc78   :  { %v7851_v42 = vpop.eup %7850 }
 0xc79   :  { %v4720_v43 = vmul.f32 %v7851_v42, %v7847_v39  ;;  %v3446_v42 = vadd.f32 %v9687_v40, %v9152_v44  ;;  %v9690_v40 = vld [vmem:[#allocation39_spill] sm:$0xff] }
 0xc7a   :  { %v7853_v54 = vpop.eup %7852 }
 0xc7b   :  { %v4719_v58 = vmul.f32 %v7853_v54, %v9250_v31  ;;  %v9685_v31 = vld [vmem:[#allocation36_spill] sm:$0xff]  ;;  %v9688_v54 = vld [vmem:[#allocation37_spill] sm:$0xff] }
 0xc7c   :  { %v7855_v41 = vpop.eup %7854  ;;  %v3371_v10 = vadd.f32 %v9685_v31, %v9135_v5  ;;  %v3444_v57 = vadd.f32 %v9688_v54, %v9157_v25 }
 0xc7d   :  { %v9362_v59 = vadd.f32 %v4720_v43, %v4719_v58 }
 0xc7f   :  { %7856 = vtanh.f32 %v9362_v59 }
 0xc8c   :  { %v7857_v46 = vpop.eup %7856 }
 0xc8d   :  { %v4723_v6 = vmul.f32 %v7857_v46, %v7855_v41 }
 0xc8f   :  { %v4729_v7 = vpack.c.bf16 %v4723_v6, %v4723_v6 }
 0xc91   :  { %4955 = vmatmul.mubr.bf16.vlgmr.msra.gmra.mxu0 %v4729_v7  ;;  %4996 = vmatmul.mubr.bf16.vlgmr.msra.gmra.mxu1 %v4729_v7 }
 0xc92   :  { %5231 = vmatpush1.bf16.msra.mxu0 %v9259_v34  ;;  %5272 = vmatpush1.bf16.msra.mxu1 %v9261_v20 }
 0xc93   :  { %5232 = vmatprep.subr.bf16.mxu0 %v9267_v45  ;;  %5273 = vmatprep.subr.bf16.mxu1 %v9269_v26 }
 0xc94   :  { %5262 = vmatprep.mubr.bf16.mxu0 %v9635_v17  ;;  %5303 = vmatprep.mubr.bf16.mxu1 %v9635_v17 }
 0xc96   :  { %5233 = vmatpush1.bf16.msra.mxu0 %v9271_v51  ;;  %5274 = vmatpush1.bf16.msra.mxu1 %v9273_v4 }
 0xc97   :  { %5234 = vmatprep.subr.bf16.mxu0 %v9279_v11  ;;  %5275 = vmatprep.subr.bf16.mxu1 %v9281_v62 }
 0xc9a   :  { %5235 = vmatpush1.bf16.msra.mxu0 %v9283_v53  ;;  %5276 = vmatpush1.bf16.msra.mxu1 %v9285_v9 }
 0xc9b   :  { %5236 = vmatprep.subr.bf16.mxu0 %v9291_v16  ;;  %5277 = vmatprep.subr.bf16.mxu1 %v9293_v37 }
 0xc9e   :  { %5237 = vmatpush1.bf16.msra.mxu0 %v9295_v0  ;;  %5278 = vmatpush1.bf16.msra.mxu1 %v9297_v28 }
 0xc9f   :  { %5238 = vmatprep.subr.bf16.mxu0 %v9301_v52  ;;  %5279 = vmatprep.subr.bf16.mxu1 %v9303_v49 }
 0xca2   :  { %5239 = vmatpush1.bf16.msra.mxu0 %v9307_v35  ;;  %5280 = vmatpush1.bf16.msra.mxu1 %v9309_v60 }
 0xca3   :  { %5240 = vmatprep.subr.bf16.mxu0 %v9313_v14  ;;  %5281 = vmatprep.subr.bf16.mxu1 %v9315_v2 }
 0xca6   :  { %5241 = vmatpush1.bf16.msra.mxu0 %v9319_v18  ;;  %5282 = vmatpush1.bf16.msra.mxu1 %v9321_v36 }
 0xca7   :  { %5242 = vmatprep.subr.bf16.mxu0 %v9325_v8  ;;  %5283 = vmatprep.subr.bf16.mxu1 %v9327_v50 }
 0xcaa   :  { %5243 = vmatpush1.bf16.msra.mxu0 %v9331_v1  ;;  %5284 = vmatpush1.bf16.msra.mxu1 %v9333_v27 }
 0xcab   :  { %5244 = vmatprep.subr.bf16.mxu0 %v9337_v15  ;;  %5285 = vmatprep.subr.bf16.mxu1 %v9339_v21 }
 0xcae   :  { %5245 = vmatpush1.bf16.msra.mxu0 %v9343_v22  ;;  %5286 = vmatpush1.bf16.msra.mxu1 %v9345_v33 }
 0xcaf   :  { %5538 = vmatprep.subr.bf16.mxu0 %v9255_v23  ;;  %5579 = vmatprep.subr.bf16.mxu1 %v9257_v30 }
 0xd51   :  { %v4956_v56 = vpop.f32.mrf.mxu0  ;;  %v4997_v12 = vpop.f32.mrf.mxu1 }
 0xd52   :  { %v5004_v48 = vadd.f32 %v4956_v56, %v3371_v10  ;;  %v5006_v58 = vadd.f32 %v4997_v12, %v3444_v57 }
 0xd53   :  { %v4958_v3 = vpop.f32.mrf.mxu0  ;;  %v4999_v47 = vpop.f32.mrf.mxu1 }
 0xd54   :  { %v7063_v63 = vmul.f32 -1.442695, %v5004_v48  ;;  %v5005_v24 = vadd.f32 %v4958_v3, %v3373_v13  ;;  %v5007_v43 = vadd.f32 %v4999_v47, %v3446_v42  ;;  %v3377_v42 = vadd.f32 %v9690_v40, %v9142_v19 }
 0xd55   :  { %v4960_v29 = vpop.f32.mrf.mxu0  ;;  %v5001_v55 = vpop.f32.mrf.mxu1 }
 0xd56   :  { %7858 = vpow2.f32 %v7063_v63  ;;  %v7064_v32 = vmul.f32 -1.442695, %v5005_v24  ;;  %v7065_v41 = vmul.f32 -1.442695, %v5007_v43 }
 0xd57   :  { %v4961_v38 = vpop.f32.mrf.mxu0  ;;  %v5002_v39 = vpop.f32.mrf.mxu1 }
 0xd58   :  { %7860 = vpow2.f32 %v7064_v32 }
 0xd59   :  { %7862 = vtanh.f32 %v5006_v58 }
 0xd5a   :  { %7864 = vpow2.f32 %v7065_v41 }
 0xd63   :  { %v7859_v46 = vpop.eup %7858 }
 0xd64   :  { %v5011_v6 = vadd.f32 1.0, %v7859_v46 }
 0xd65   :  { %v7861_v7 = vpop.eup %7860 }
 0xd66   :  { %7866 = vrcp.f32 %v5011_v6  ;;  %v5017_v31 = vadd.f32 1.0, %v7861_v7  ;;  %v7863_v10 = vpop.eup %7862 }
 0xd67   :  { %v7865_v56 = vpop.eup %7864 }
 0xd68   :  { %7868 = vrcp.f32 %v5017_v31  ;;  %v5024_v3 = vadd.f32 1.0, %v7865_v56 }
 0xd6a   :  { %7870 = vrcp.f32 %v5024_v3 }
 0xd73   :  { %v7867_v61 = vpop.eup %7866 }
 0xd74   :  { %v5028_v13 = vmul.f32 %v7867_v61, %v7863_v10  ;;  %v9692_v61 = vld [vmem:[#allocation41_spill] sm:$0xff] }
 0xd75   :  { %v7869_v48 = vpop.eup %7868 }
 0xd76   :  { %v5027_v47 = vmul.f32 %v7869_v48, %v9362_v59  ;;  %v9689_v59 = vld [vmem:[#allocation40_spill] sm:$0xff] }
 0xd77   :  { %v7871_v12 = vpop.eup %7870  ;;  %v3375_v32 = vadd.f32 %v9689_v59, %v9135_v5 }
 0xd78   :  { %v9408_v63 = vadd.f32 %v5028_v13, %v5027_v47  ;;  %v3448_v13 = vadd.f32 %v9692_v61, %v9157_v25  ;;  %v7610_v61 = vld [vmem:[#allocation14 + $0x38] sm:$0xff]  }
 0xd7a   :  { %7872 = vtanh.f32 %v9408_v63 }
 0xd87   :  { %v7873_v24 = vpop.eup %7872 }
 0xd88   :  { %v5031_v29 = vmul.f32 %v7873_v24, %v7871_v12 }
 0xd8a   :  { %v5037_v55 = vpack.c.bf16 %v5031_v29, %v5031_v29 }
 0xd8c   :  { %5263 = vmatmul.mubr.bf16.vlgmr.msra.gmra.mxu0 %v5037_v55  ;;  %5304 = vmatmul.mubr.bf16.vlgmr.msra.gmra.mxu1 %v5037_v55 }
 0xd8d   :  { %5539 = vmatpush1.bf16.msra.mxu0 %v9259_v34  ;;  %5580 = vmatpush1.bf16.msra.mxu1 %v9261_v20 }
 0xd8e   :  { %5540 = vmatprep.subr.bf16.mxu0 %v9267_v45  ;;  %5581 = vmatprep.subr.bf16.mxu1 %v9269_v26 }
 0xd8f   :  { %5570 = vmatprep.mubr.bf16.mxu0 %v9635_v17  ;;  %5611 = vmatprep.mubr.bf16.mxu1 %v9635_v17 }
 0xd91   :  { %5541 = vmatpush1.bf16.msra.mxu0 %v9271_v51  ;;  %5582 = vmatpush1.bf16.msra.mxu1 %v9273_v4 }
 0xd92   :  { %5542 = vmatprep.subr.bf16.mxu0 %v9279_v11  ;;  %5583 = vmatprep.subr.bf16.mxu1 %v9281_v62 }
 0xd95   :  { %5543 = vmatpush1.bf16.msra.mxu0 %v9283_v53  ;;  %5584 = vmatpush1.bf16.msra.mxu1 %v9285_v9 }
 0xd96   :  { %5544 = vmatprep.subr.bf16.mxu0 %v9291_v16  ;;  %5585 = vmatprep.subr.bf16.mxu1 %v9293_v37 }
 0xd99   :  { %5545 = vmatpush1.bf16.msra.mxu0 %v9295_v0  ;;  %5586 = vmatpush1.bf16.msra.mxu1 %v9297_v28 }
 0xd9a   :  { %5546 = vmatprep.subr.bf16.mxu0 %v9301_v52  ;;  %5587 = vmatprep.subr.bf16.mxu1 %v9303_v49 }
 0xd9d   :  { %5547 = vmatpush1.bf16.msra.mxu0 %v9307_v35  ;;  %5588 = vmatpush1.bf16.msra.mxu1 %v9309_v60 }
 0xd9e   :  { %5548 = vmatprep.subr.bf16.mxu0 %v9313_v14  ;;  %5589 = vmatprep.subr.bf16.mxu1 %v9315_v2 }
 0xda1   :  { %5549 = vmatpush1.bf16.msra.mxu0 %v9319_v18  ;;  %5590 = vmatpush1.bf16.msra.mxu1 %v9321_v36 }
 0xda2   :  { %5550 = vmatprep.subr.bf16.mxu0 %v9325_v8  ;;  %5591 = vmatprep.subr.bf16.mxu1 %v9327_v50 }
 0xda5   :  { %5551 = vmatpush1.bf16.msra.mxu0 %v9331_v1  ;;  %5592 = vmatpush1.bf16.msra.mxu1 %v9333_v27 }
 0xda6   :  { %5552 = vmatprep.subr.bf16.mxu0 %v9337_v15  ;;  %5593 = vmatprep.subr.bf16.mxu1 %v9339_v21 }
 0xda9   :  { %5553 = vmatpush1.bf16.msra.mxu0 %v9343_v22  ;;  %5594 = vmatpush1.bf16.msra.mxu1 %v9345_v33 }
 0xdaa   :  { %5846 = vmatprep.subr.bf16.mxu0 %v9255_v23  ;;  %5887 = vmatprep.subr.bf16.mxu1 %v9257_v30  ;;  %v9691_v30 = vld [vmem:[#allocation42_spill] sm:$0xff] }
 0xdab   :  { %v3450_v10 = vadd.f32 %v9691_v30, %v9152_v44 }
 0xe4c   :  { %v5264_v38 = vpop.f32.mrf.mxu0  ;;  %v5305_v39 = vpop.f32.mrf.mxu1 }
 0xe4d   :  { %v5312_v43 = vadd.f32 %v5264_v38, %v3375_v32  ;;  %v5314_v48 = vadd.f32 %v5305_v39, %v3448_v13  ;;  %v8194_v13 = vmov 0.0  }
 0xe4e   :  { %v5266_v54 = vpop.f32.mrf.mxu0  ;;  %v5307_v57 = vpop.f32.mrf.mxu1 }
 0xe4f   :  { %v7098_v58 = vmul.f32 -1.442695, %v5312_v43  ;;  %v5313_v41 = vadd.f32 %v5266_v54, %v3377_v42  ;;  %v5315_v56 = vadd.f32 %v5307_v57, %v3450_v10 }
 0xe50   :  { %v5268_v46 = vpop.f32.mrf.mxu0  ;;  %v5309_v6 = vpop.f32.mrf.mxu1 }
 0xe51   :  { %7874 = vpow2.f32 %v7098_v58  ;;  %v7099_v7 = vmul.f32 -1.442695, %v5313_v41  ;;  %v7100_v3 = vmul.f32 -1.442695, %v5315_v56 }
 0xe52   :  { %v5269_v23 = vpop.f32.mrf.mxu0  ;;  %v5310_v31 = vpop.f32.mrf.mxu1 }
 0xe53   :  { %7876 = vpow2.f32 %v7099_v7 }
 0xe54   :  { %7878 = vtanh.f32 %v5314_v48  ;;  %v7611_v48 = vld [vmem:[#allocation14 + $0x30] sm:$0xff]  }
 0xe55   :  { %7880 = vpow2.f32 %v7100_v3  ;;  %v7612_v3 = vld [vmem:[#allocation14 + $0x28] sm:$0xff]  }
 0xe5e   :  { %v7875_v47 = vpop.eup %7874 }
 0xe5f   :  { %v5319_v12 = vadd.f32 1.0, %v7875_v47  ;;  %v7613_v47 = vld [vmem:[#allocation14 + $0x20] sm:$0xff]  }
 0xe60   :  { %v7877_v24 = vpop.eup %7876 }
 0xe61   :  { %7882 = vrcp.f32 %v5319_v12  ;;  %v5325_v29 = vadd.f32 1.0, %v7877_v24  ;;  %v7879_v55 = vpop.eup %7878  ;;  %v7614_v12 = vld [vmem:[#allocation14 + $0x18] sm:$0xff]   ;;  %v7615_v24 = vld [vmem:[#allocation14 + $0x10] sm:$0xff]  }
 0xe62   :  { %v7881_v59 = vpop.eup %7880 }
 0xe63   :  { %7884 = vrcp.f32 %v5325_v29  ;;  %v5332_v42 = vadd.f32 1.0, %v7881_v59  ;;  %v7616_v29 = vld [vmem:[#allocation14 + $0x8] sm:$0xff]   ;;  %v7618_v59 = vld [vmem:[#allocation15 + $0x38] sm:$0xff]  }
 0xe65   :  { %7886 = vrcp.f32 %v5332_v42 }
 0xe6e   :  { %v7883_v32 = vpop.eup %7882 }
 0xe6f   :  { %v5336_v38 = vmul.f32 %v7883_v32, %v7879_v55  ;;  %v7617_v55 = vld [vmem:[#allocation14] sm:$0xff]   ;;  %v7619_v32 = vld [vmem:[#allocation15 + $0x30] sm:$0xff]  }
 0xe70   :  { %v7885_v40 = vpop.eup %7884 }
 0xe71   :  { %v5335_v43 = vmul.f32 %v7885_v40, %v9408_v63 }
 0xe72   :  { %v7887_v39 = vpop.eup %7886 }
 0xe73   :  { %v9454_v54 = vadd.f32 %v5336_v38, %v5335_v43  ;;  %v9697_v38 = vld [vmem:[#allocation47_spill] sm:$0xff] }
 0xe74   :  { %v3385_v40 = vadd.f32 %v9697_v38, %v9135_v5  ;;  %v7635_v38 = vld [vmem:[#allocation18 + $0x40] ss:$8 sps:$4 sm:$0xff]  }
 0xe75   :  { %7888 = vtanh.f32 %v9454_v54 }
 0xe82   :  { %v7889_v57 = vpop.eup %7888 }
 0xe83   :  { %v5339_v58 = vmul.f32 %v7889_v57, %v7887_v39 }
 0xe85   :  { %v5345_v41 = vpack.c.bf16 %v5339_v58, %v5339_v58 }
 0xe87   :  { %5571 = vmatmul.mubr.bf16.vlgmr.msra.gmra.mxu0 %v5345_v41  ;;  %5612 = vmatmul.mubr.bf16.vlgmr.msra.gmra.mxu1 %v5345_v41 }
 0xe88   :  { %5847 = vmatpush1.bf16.msra.mxu0 %v9259_v34  ;;  %5888 = vmatpush1.bf16.msra.mxu1 %v9261_v20  ;;  %v9693_v34 = vld [vmem:[#allocation44_spill] sm:$0xff] }
 0xe89   :  { %5848 = vmatprep.subr.bf16.mxu0 %v9267_v45  ;;  %5889 = vmatprep.subr.bf16.mxu1 %v9269_v26  ;;  %v3381_v20 = vadd.f32 %v9693_v34, %v9135_v5 }
 0xe8a   :  { %5878 = vmatprep.mubr.bf16.mxu0 %v9635_v17  ;;  %5919 = vmatprep.mubr.bf16.mxu1 %v9635_v17 }
 0xe8c   :  { %5849 = vmatpush1.bf16.msra.mxu0 %v9271_v51  ;;  %5890 = vmatpush1.bf16.msra.mxu1 %v9273_v4  ;;  %v9694_v51 = vld [vmem:[#allocation43_spill] sm:$0xff] }
 0xe8d   :  { %5850 = vmatprep.subr.bf16.mxu0 %v9279_v11  ;;  %5891 = vmatprep.subr.bf16.mxu1 %v9281_v62  ;;  %v3383_v4 = vadd.f32 %v9694_v51, %v9142_v19 }
 0xe90   :  { %5851 = vmatpush1.bf16.msra.mxu0 %v9283_v53  ;;  %5892 = vmatpush1.bf16.msra.mxu1 %v9285_v9 }
 0xe91   :  { %5852 = vmatprep.subr.bf16.mxu0 %v9291_v16  ;;  %5893 = vmatprep.subr.bf16.mxu1 %v9293_v37 }
 0xe94   :  { %5853 = vmatpush1.bf16.msra.mxu0 %v9295_v0  ;;  %5894 = vmatpush1.bf16.msra.mxu1 %v9297_v28 }
 0xe95   :  { %5854 = vmatprep.subr.bf16.mxu0 %v9301_v52  ;;  %5895 = vmatprep.subr.bf16.mxu1 %v9303_v49 }
 0xe98   :  { %5855 = vmatpush1.bf16.msra.mxu0 %v9307_v35  ;;  %5896 = vmatpush1.bf16.msra.mxu1 %v9309_v60  ;;  %v9695_v35 = vld [vmem:[#allocation46_spill] sm:$0xff] }
 0xe99   :  { %5856 = vmatprep.subr.bf16.mxu0 %v9313_v14  ;;  %5897 = vmatprep.subr.bf16.mxu1 %v9315_v2  ;;  %v3456_v60 = vadd.f32 %v9695_v35, %v9152_v44  ;;  %v9696_v2 = vld [vmem:[#allocation45_spill] sm:$0xff] }
 0xe9c   :  { %5857 = vmatpush1.bf16.msra.mxu0 %v9319_v18  ;;  %5898 = vmatpush1.bf16.msra.mxu1 %v9321_v36  ;;  %v3454_v18 = vadd.f32 %v9696_v2, %v9157_v25 }
 0xe9d   :  { %5858 = vmatprep.subr.bf16.mxu0 %v9325_v8  ;;  %5899 = vmatprep.subr.bf16.mxu1 %v9327_v50 }
 0xea0   :  { %5859 = vmatpush1.bf16.msra.mxu0 %v9331_v1  ;;  %5900 = vmatpush1.bf16.msra.mxu1 %v9333_v27 }
 0xea1   :  { %5860 = vmatprep.subr.bf16.mxu0 %v9337_v15  ;;  %5901 = vmatprep.subr.bf16.mxu1 %v9339_v21 }
 0xea4   :  { %5861 = vmatpush1.bf16.msra.mxu0 %v9343_v22  ;;  %5902 = vmatpush1.bf16.msra.mxu1 %v9345_v33 }
 0xea5   :  { %7262 = vmatprep.subr.bf16.mxu0 %v8194_v13  ;;  %7282 = vmatprep.subr.bf16.mxu1 %v8194_v13 }
 0xf47   :  { %v5572_v45 = vpop.f32.mrf.mxu0  ;;  %v5613_v26 = vpop.f32.mrf.mxu1 }
 0xf48   :  { %v5620_v11 = vadd.f32 %v5572_v45, %v3381_v20  ;;  %v5622_v36 = vadd.f32 %v5613_v26, %v3454_v18 }
 0xf49   :  { %v5574_v62 = vpop.f32.mrf.mxu0  ;;  %v5615_v53 = vpop.f32.mrf.mxu1 }
 0xf4a   :  { %v7133_v9 = vmul.f32 -1.442695, %v5620_v11  ;;  %v5621_v16 = vadd.f32 %v5574_v62, %v3383_v4  ;;  %v5623_v14 = vadd.f32 %v5615_v53, %v3456_v60  ;;  %v9699_v62 = vld [vmem:[#allocation50_spill] sm:$0xff] }
 0xf4b   :  { %v5576_v37 = vpop.f32.mrf.mxu0  ;;  %v5617_v0 = vpop.f32.mrf.mxu1  ;;  %v3460_v5 = vadd.f32 %v9699_v62, %v9152_v44 }
 0xf4c   :  { %7890 = vpow2.f32 %v7133_v9  ;;  %v7134_v28 = vmul.f32 -1.442695, %v5621_v16  ;;  %v7135_v8 = vmul.f32 -1.442695, %v5623_v14  ;;  %v9700_v9 = vld [vmem:[#allocation48_spill] sm:$0xff] }
 0xf4d   :  { %v5577_v52 = vpop.f32.mrf.mxu0  ;;  %v5618_v49 = vpop.f32.mrf.mxu1  ;;  %v3458_v16 = vadd.f32 %v9700_v9, %v9157_v25 }
 0xf4e   :  { %7892 = vpow2.f32 %v7134_v28 }
 0xf4f   :  { %7894 = vtanh.f32 %v5622_v36 }
 0xf50   :  { %7896 = vpow2.f32 %v7135_v8 }
 0xf59   :  { %v7891_v50 = vpop.eup %7890 }
 0xf5a   :  { %v5627_v1 = vadd.f32 1.0, %v7891_v50 }
 0xf5b   :  { %v7893_v27 = vpop.eup %7892 }
 0xf5c   :  { %7898 = vrcp.f32 %v5627_v1  ;;  %v5633_v15 = vadd.f32 1.0, %v7893_v27  ;;  %v7895_v21 = vpop.eup %7894 }
 0xf5d   :  { %v7897_v22 = vpop.eup %7896 }
 0xf5e   :  { %7900 = vrcp.f32 %v5633_v15  ;;  %v5640_v6 = vadd.f32 1.0, %v7897_v22  ;;  %v7620_v15 = vld [vmem:[#allocation15 + $0x28] sm:$0xff]   ;;  %v7622_v22 = vld [vmem:[#allocation15 + $0x18] sm:$0xff]  }
 0xf60   :  { %7902 = vrcp.f32 %v5640_v6  ;;  %v7628_v6 = vld [vmem:[#allocation18 + $0x74] ss:$8 sps:$4 sm:$0xff]  }
 0xf69   :  { %v7899_v33 = vpop.eup %7898 }
 0xf6a   :  { %v5644_v63 = vmul.f32 %v7899_v33, %v7895_v21  ;;  %v7621_v21 = vld [vmem:[#allocation15 + $0x20] sm:$0xff]   ;;  %v7623_v33 = vld [vmem:[#allocation15 + $0x10] sm:$0xff]  }
 0xf6b   :  { %v7901_v46 = vpop.eup %7900 }
 0xf6c   :  { %v5643_v7 = vmul.f32 %v7901_v46, %v9454_v54  ;;  %v9698_v54 = vld [vmem:[#allocation49_spill] sm:$0xff] }
 0xf6d   :  { %v7903_v31 = vpop.eup %7902  ;;  %v3387_v39 = vadd.f32 %v9698_v54, %v9142_v19  ;;  %v7626_v46 = vld [vmem:[#allocation18 + $0x70] ss:$8 sps:$4 sm:$0xff]   ;;  %v7641_v54 = vld [vmem:[#allocation18 + $0x20] ss:$8 sps:$4 sm:$0xff]  }
 0xf6e   :  { %v9498_v23 = vadd.f32 %v5644_v63, %v5643_v7  ;;  %v7624_v63 = vld [vmem:[#allocation15 + $0x8] sm:$0xff]  }
 0xf6f   :  { %v7631_v7 = vld [vmem:[#allocation18 + $0x64] ss:$8 sps:$4 sm:$0xff]  }
 0xf70   :  { %7904 = vtanh.f32 %v9498_v23 }
 0xf7d   :  { %v7905_v30 = vpop.eup %7904 }
 0xf7e   :  { %v5647_v10 = vmul.f32 %v7905_v30, %v7903_v31  ;;  %v7171_v31 = vld [vmem:[%s9596_s8] ss:$0 sm:$0xff] }
 0xf80   :  { %v5653_v56 = vpack.c.bf16 %v5647_v10, %v5647_v10 }
 0xf82   :  { %5879 = vmatmul.mubr.bf16.vlgmr.msra.gmra.mxu0 %v5653_v56  ;;  %5920 = vmatmul.mubr.bf16.vlgmr.msra.gmra.mxu1 %v5653_v56 }
 0xf83   :  { %7263 = vmatpush3.bf16.msra.mxu0 %v7610_v61  ;;  %7278 = vmatprep.mubr.msk.bf16.mxu0 %vm8195_vm0, %v8194_v13 }
 0xf84   :  { %7264 = vmatprep.subr.bf16.mxu0 %v8194_v13  ;;  %7298 = vmatprep.mubr.msk.bf16.mxu1 %vm8195_vm0, %v8194_v13 }
 0xf85   :  { %7283 = vmatpush3.bf16.msra.mxu1 %v7618_v59  ;;  %v7632_v59 = vld [vmem:[#allocation18 + $0x50] ss:$8 sps:$4 sm:$0xff]  }
 0xf86   :  { %7284 = vmatprep.subr.bf16.mxu1 %v8194_v13 }
 0xf87   :  { %7265 = vmatpush3.bf16.msra.mxu0 %v7611_v48 }
 0xf88   :  { %7266 = vmatprep.subr.bf16.mxu0 %v8194_v13 }
 0xf89   :  { %7285 = vmatpush3.bf16.msra.mxu1 %v7619_v32  ;;  %v7637_v32 = vld [vmem:[#allocation18 + $0x44] ss:$8 sps:$4 sm:$0xff]  }
 0xf8a   :  { %7286 = vmatprep.subr.bf16.mxu1 %v8194_v13 }
 0xf8b   :  { %7267 = vmatpush3.bf16.msra.mxu0 %v7612_v3 }
 0xf8c   :  { %7268 = vmatprep.subr.bf16.mxu0 %v8194_v13 }
 0xf8d   :  { %7287 = vmatpush3.bf16.msra.mxu1 %v7620_v15 }
 0xf8e   :  { %7288 = vmatprep.subr.bf16.mxu1 %v8194_v13 }
 0xf8f   :  { %7269 = vmatpush3.bf16.msra.mxu0 %v7613_v47 }
 0xf90   :  { %7270 = vmatprep.subr.bf16.mxu0 %v8194_v13 }
 0xf91   :  { %7289 = vmatpush3.bf16.msra.mxu1 %v7621_v21  ;;  %v9702_v21 = vld [vmem:[#allocation29_spill] sm:$0xff] }
 0xf92   :  { %7290 = vmatprep.subr.bf16.mxu1 %v8194_v13 }
 0xf93   :  { %7271 = vmatpush3.bf16.msra.mxu0 %v7614_v12 }
 0xf94   :  { %7272 = vmatprep.subr.bf16.mxu0 %v8194_v13 }
 0xf95   :  { %7291 = vmatpush3.bf16.msra.mxu1 %v7622_v22 }
 0xf96   :  { %7292 = vmatprep.subr.bf16.mxu1 %v8194_v13 }
 0xf97   :  { %7273 = vmatpush3.bf16.msra.mxu0 %v7615_v24 }
 0xf98   :  { %7274 = vmatprep.subr.bf16.mxu0 %v8194_v13 }
 0xf99   :  { %7293 = vmatpush3.bf16.msra.mxu1 %v7623_v33 }
 0xf9a   :  { %7294 = vmatprep.subr.bf16.mxu1 %v8194_v13 }
 0xf9b   :  { %7275 = vmatpush3.bf16.msra.mxu0 %v7616_v29 }
 0xf9c   :  { %7276 = vmatprep.subr.bf16.mxu0 %v8194_v13 }
 0xf9d   :  { %7295 = vmatpush3.bf16.msra.mxu1 %v7624_v63 }
 0xf9e   :  { %7296 = vmatprep.subr.bf16.mxu1 %v8194_v13 }
 0xf9f   :  { %7277 = vmatpush3.bf16.msra.mxu0 %v7617_v55  ;;  %v7634_v55 = vld [vmem:[#allocation18 + $0x54] ss:$8 sps:$4 sm:$0xff]  }
 0xfa0   :  { %6301 = vmatprep.subr.bf16.mxu0 %v7628_v6 }
0x1042   :  { %v5880_v42 = vpop.f32.mrf.mxu0  ;;  %v5921_v43 = vpop.f32.mrf.mxu1 }
0x1043   :  { %v5928_v57 = vadd.f32 %v5880_v42, %v3385_v40  ;;  %v5930_v19 = vadd.f32 %v5921_v43, %v3458_v16  ;;  %v7640_v40 = vld [vmem:[#allocation18 + $0x34] ss:$8 sps:$4 sm:$0xff]   ;;  %v7638_v42 = vld [vmem:[#allocation18 + $0x30] ss:$8 sps:$4 sm:$0xff]   ;;  %v7643_v43 = vld [vmem:[#allocation18 + $0x24] ss:$8 sps:$4 sm:$0xff]  }
0x1044   :  { %v5882_v58 = vpop.f32.mrf.mxu0  ;;  %v5923_v41 = vpop.f32.mrf.mxu1 }
0x1045   :  { %v7168_v34 = vmul.f32 -1.442695, %v5928_v57  ;;  %v5929_v20 = vadd.f32 %v5882_v58, %v3387_v39  ;;  %v5931_v53 = vadd.f32 %v5923_v41, %v3460_v5  ;;  %v7646_v39 = vld [vmem:[#allocation18 + $0x14] ss:$8 sps:$4 sm:$0xff]   ;;  %v7644_v57 = vld [vmem:[#allocation18 + $0x10] ss:$8 sps:$4 sm:$0xff]  }
0x1046   :  { %v5884_v45 = vpop.f32.mrf.mxu0  ;;  %v5925_v26 = vpop.f32.mrf.mxu1  ;;  %v7649_v58 = vld [vmem:[#allocation18 + $0x4] ss:$8 sps:$4 sm:$0xff]   ;;  %v7647_v41 = vld [vmem:[#allocation18] ss:$8 sps:$4 sm:$0xff]  }
0x1047   :  { %7906 = vpow2.f32 %v7168_v34  ;;  %v7169_v51 = vmul.f32 -1.442695, %v5929_v20  ;;  %v7170_v37 = vmul.f32 -1.442695, %v5931_v53  ;;  %v7650_v34 = vld [vmem:[%s9601_s13 + $0x78] sm:$0xff]  }
0x1048   :  { %v5885_v4 = vpop.f32.mrf.mxu0  ;;  %v5926_v11 = vpop.f32.mrf.mxu1  ;;  %v7651_v20 = vld [vmem:[%s9601_s13 + $0x38] sm:$0xff]   ;;  %v7180_v45 = vld [vmem:[#allocation17] ss:$0 sm:$0xff] }
0x1049   :  { %7908 = vpow2.f32 %v7169_v51 }
0x104a   :  { %7910 = vtanh.f32 %v5930_v19 }
0x104b   :  { %7912 = vpow2.f32 %v7170_v37 }
0x1054   :  { %v7907_v0 = vpop.eup %7906 }
0x1055   :  { %v5935_v28 = vadd.f32 1.0, %v7907_v0  ;;  %v7652_v0 = vld [vmem:[%s9601_s13 + $0x70] sm:$0xff]  }
0x1056   :  { %v7909_v52 = vpop.eup %7908 }
0x1057   :  { %7914 = vrcp.f32 %v5935_v28  ;;  %v5941_v49 = vadd.f32 1.0, %v7909_v52  ;;  %v7911_v35 = vpop.eup %7910  ;;  %v7653_v28 = vld [vmem:[%s9601_s13 + $0x30] sm:$0xff]   ;;  %v7654_v52 = vld [vmem:[%s9601_s13 + $0x68] sm:$0xff]  }
0x1058   :  { %v7913_v60 = vpop.eup %7912 }
0x1059   :  { %7916 = vrcp.f32 %v5941_v49  ;;  %v5948_v44 = vadd.f32 1.0, %v7913_v60  ;;  %v7655_v49 = vld [vmem:[%s9601_s13 + $0x28] sm:$0xff]   ;;  %v7657_v60 = vld [vmem:[%s9601_s13 + $0x20] sm:$0xff]  }
0x105b   :  { %7918 = vrcp.f32 %v5948_v44  ;;  %v7661_v44 = vld [vmem:[%s9601_s13 + $0x10] sm:$0xff]  }
0x1064   :  { %v7915_v14 = vpop.eup %7914 }
0x1065   :  { %v5952_v2 = vmul.f32 %v7915_v14, %v7911_v35  ;;  %v7656_v35 = vld [vmem:[%s9601_s13 + $0x60] sm:$0xff]   ;;  %v7658_v14 = vld [vmem:[%s9601_s13 + $0x58] sm:$0xff]  }
0x1066   :  { %v7917_v18 = vpop.eup %7916 }
0x1067   :  { %v5951_v36 = vmul.f32 %v7917_v18, %v9498_v23  ;;  %v7629_v23 = vld [vmem:[#allocation18 + $0x60] ss:$8 sps:$4 sm:$0xff]  }
0x1068   :  { %v7919_v25 = vpop.eup %7918  ;;  %v7660_v18 = vld [vmem:[%s9601_s13 + $0x50] sm:$0xff]  }
0x1069   :  { %v5953_v8 = vadd.f32 %v5952_v2, %v5951_v36  ;;  %v7659_v2 = vld [vmem:[%s9601_s13 + $0x18] sm:$0xff]   ;;  %v7662_v36 = vld [vmem:[%s9601_s13 + $0x48] sm:$0xff]  }
0x106b   :  { %7920 = vtanh.f32 %v5953_v8  ;;  %v7663_v8 = vld [vmem:[%s9601_s13 + $0x8] sm:$0xff]  }
0x1078   :  { %v7921_v50 = vpop.eup %7920 }
0x1079   :  { %v5955_v1 = vmul.f32 %v7921_v50, %v7919_v25  ;;  %v7664_v25 = vld [vmem:[%s9601_s13 + $0x40] sm:$0xff]  }
0x107a   :  { %v7665_v50 = vld [vmem:[%s9601_s13] sm:$0xff]  }
0x107b   :  { %v5957_v27 = vpack.c.bf16 %v5955_v1, %v5955_v1  ;;  %v6209_v1 = vld [vmem:[#allocation20] sm:$0x3] }
0x107c   :  { %v6218_v22 = vrot.slane %v6209_v1, %v9702_v21 }
0x107d   :  { %7279 = vmatmul.mubr.bf16.vlgmr.msra.gmra.mxu0 %v5957_v27  ;;  %v9701_v27 = vld [vmem:[#allocation28_spill] sm:$0xff] }
0x107e   :  { %6333 = vmatprep.mubr.bf16.mxu0 %v9635_v17  ;;  %v7625_v17 = vld [vmem:[#allocation15] sm:$0xff]   ;;  %6302 = vmatpush1.bf16.msra.mxu0 %v7626_v46  ;;  %v6214_v15 = vrot.slane %v6209_v1, %v9701_v27 }
0x107f   :  { %7297 = vmatpush3.bf16.msra.mxu1 %v7625_v17  ;;  %6303 = vmatprep.subr.bf16.mxu0 %v7631_v7 }
0x1080   :  { %7240 = vmatprep.subr.bf16.mxu1 %v7650_v34 }
0x1082   :  { %6304 = vmatpush1.bf16.msra.mxu0 %v7629_v23 }
0x1083   :  { %6305 = vmatprep.subr.bf16.mxu0 %v7634_v55  ;;  %v7205_v55 = vld [vmem:[%s9602_s14] ss:$0 sm:$0xff] }
0x1086   :  { %6306 = vmatpush1.bf16.msra.mxu0 %v7632_v59 }
0x1087   :  { %6307 = vmatprep.subr.bf16.mxu0 %v7637_v32 }
0x108a   :  { %6308 = vmatpush1.bf16.msra.mxu0 %v7635_v38 }
0x108b   :  { %6309 = vmatprep.subr.bf16.mxu0 %v7640_v40 }
0x108e   :  { %6310 = vmatpush1.bf16.msra.mxu0 %v7638_v42 }
0x108f   :  { %6311 = vmatprep.subr.bf16.mxu0 %v7643_v43 }
0x1092   :  { %6312 = vmatpush1.bf16.msra.mxu0 %v7641_v54 }
0x1093   :  { %6313 = vmatprep.subr.bf16.mxu0 %v7646_v39 }
0x1096   :  { %6314 = vmatpush1.bf16.msra.mxu0 %v7644_v57 }
0x1097   :  { %6315 = vmatprep.subr.bf16.mxu0 %v7649_v58 }
0x109a   :  { %6316 = vmatpush1.bf16.msra.mxu0 %v7647_v41 }
0x113d   :  { %v6063_v30 = vpop.f32.mrf.mxu0 }
0x113e   :  { %v6064_v10 = vadd.f32 %v7171_v31, %v6063_v30 }
0x113f   :  { %v7280_v56 = vpop.f32.mrf.mxu0 }
0x1140   :  { %v6071_v61 = vmul.f32 0.70710677, %v6064_v10  ;;  %v6069_v47 = vmul.f32 0.5, %v6064_v10 }
0x1141   :  { %v6066_v48 = vpop.f32.mrf.mxu0 }
0x1142   :  { %7922 = verf.f32 %v6071_v61 }
0x1143   :  { %v7281_v13 = vpop.f32.mrf.mxu0 }
0x114f   :  { %v7923_v3 = vpop.eup %7922 }
0x1150   :  { %v6073_v12 = vadd.f32 1.0, %v7923_v3 }
0x1152   :  { %v6074_v24 = vmul.f32 %v6073_v12, %v6069_v47 }
0x1154   :  { %v6075_v29 = vpack.c.bf16 %v6074_v24, %v6074_v24 }
0x1156   :  { %7299 = vmatmul.mubr.bf16.vlgmr.msra.gmra.mxu1 %v6075_v29 }
0x1157   :  { %7241 = vmatpush3.bf16.msra.mxu1 %v7651_v20 }
0x1158   :  { %7242 = vmatprep.subr.bf16.mxu1 %v7652_v0 }
0x115b   :  { %7243 = vmatpush3.bf16.msra.mxu1 %v7653_v28 }
0x115c   :  { %7244 = vmatprep.subr.bf16.mxu1 %v7654_v52 }
0x115f   :  { %7245 = vmatpush3.bf16.msra.mxu1 %v7655_v49 }
0x1160   :  { %7246 = vmatprep.subr.bf16.mxu1 %v7656_v35 }
0x1163   :  { %7247 = vmatpush3.bf16.msra.mxu1 %v7657_v60 }
0x1164   :  { %7248 = vmatprep.subr.bf16.mxu1 %v7658_v14 }
0x1167   :  { %7249 = vmatpush3.bf16.msra.mxu1 %v7659_v2 }
0x1168   :  { %7250 = vmatprep.subr.bf16.mxu1 %v7660_v18 }
0x116b   :  { %7251 = vmatpush3.bf16.msra.mxu1 %v7661_v44 }
0x116c   :  { %7252 = vmatprep.subr.bf16.mxu1 %v7662_v36 }
0x116f   :  { %7253 = vmatpush3.bf16.msra.mxu1 %v7663_v8 }
0x1170   :  { %7254 = vmatprep.subr.bf16.mxu1 %v7664_v25 }
0x1173   :  { %7255 = vmatpush3.bf16.msra.mxu1 %v7665_v50 }
0x1216   :  { %v6181_v26 = vpop.f32.mrf.mxu1 }
0x1217   :  { %v6182_v51 = vadd.f32 %v7180_v45, %v6181_v26 }
0x1218   :  { %v7300_v4 = vpop.f32.mrf.mxu1 }
0x1219   :  { %v6188_v11 = vmul.f32 0.70710677, %v6182_v51  ;;  %v6187_v9 = vmul.f32 0.5, %v6182_v51 }
0x121a   :  { %v6184_v62 = vpop.f32.mrf.mxu1 }
0x121b   :  { %7924 = verf.f32 %v6188_v11 }
0x121c   :  { %v7301_v5 = vpop.f32.mrf.mxu1 }
0x1228   :  { %v7925_v53 = vpop.eup %7924 }
0x1229   :  { %v6190_v16 = vadd.f32 1.0, %v7925_v53 }
0x122b   :  { %v6191_v19 = vmul.f32 %v6190_v16, %v6187_v9 }
0x122d   :  { %v6192_v37 = vpack.c.bf16 %v6191_v19, %v6191_v19 }
0x122f   :  { %6334 = vmatmul.mubr.bf16.vlgmr.msra.gmra.mxu0 %v6192_v37 }
0x12ef   :  { %v6335_v33 = vpop.f32.mrf.mxu0 }
0x12f0   :  { %v6336_v63 = vadd.f32 %v6335_v33, %v6214_v15 }
0x12f1   :  { %v6337_v17 = vpop.f32.mrf.mxu0 }
0x12f2   :  { %v6344_v46 = vmul.f32 0.70710677, %v6336_v63  ;;  %v6338_v6 = vadd.f32 %v6337_v17, %v6218_v22  ;;  %v6342_v61 = vmul.f32 0.5, %v6336_v63 }
0x12f3   :  { %v6339_v7 = vpop.f32.mrf.mxu0 }
0x12f4   :  { %7926 = verf.f32 %v6344_v46  ;;  %v6345_v23 = vmul.f32 0.70710677, %v6338_v6  ;;  %v6343_v48 = vmul.f32 0.5, %v6338_v6 }
0x12f5   :  { %v6340_v31 = vpop.f32.mrf.mxu0 }
0x12f6   :  { %7928 = verf.f32 %v6345_v23 }
0x1301   :  { %v7927_v30 = vpop.eup %7926 }
0x1302   :  { %v6348_v10 = vadd.f32 1.0, %v7927_v30 }
0x1303   :  { %v7929_v56 = vpop.eup %7928 }
0x1304   :  { %v6349_v13 = vadd.f32 1.0, %v7929_v56  ;;  %v6350_v3 = vmul.f32 %v6348_v10, %v6342_v61 }
0x1306   :  { %v6351_v47 = vmul.f32 %v6349_v13, %v6343_v48  ;;  %v6352_v24 = vpack.c.bf16 %v6350_v3, %v6350_v3 }
0x1308   :  { %v6353_v12 = vpack.c.bf16 %v6351_v47, %v6351_v47 }
0x130a   :  { %6521 = vmatprep.mubr.bf16.mxu1 %v6353_v12 }
0x130b   :  { %6522 = vmatmul.mubr.bf16.vlgmr.msra.gmra.mxu1 %v6352_v24 }
0x13cb   :  { %v7256_v29 = vpop.f32.mrf.mxu1 }
0x13cd   :  { %v7257_v59 = vpop.f32.mrf.mxu1 }
0x13ce   :  { %v7258_v32 = vadd.f32 %v7257_v59, %v7256_v29 }
0x13cf   :  { %v7259_v38 = vpop.f32.mrf.mxu1 }
0x13d0   :  { %v6524_v40 = vadd.f32 %v7258_v32, %v7205_v55 }
0x13d1   :  { %v7260_v42 = vpop.f32.mrf.mxu1 }
0x13d2   :  { %6529 = vst [vmem:[%s9603_s15] sm:$0xff] %v6524_v40 }
0x13d3   :  { %6534 = vsyncpa [#allocation5], 1 }
0x13d4   :  { %6535 = vsyncpa [#allocation7], 1 }
0x13d5   :  { %6536 = vsyncpa [#allocation10], 1 }
0x13d6   :  { %6537 = vsyncpa [#allocation13], 1 }
0x13d7   :  { %6538 = vsyncpa [#allocation16], 1 }
0x13d8   :  { %6539 = vsyncpa [#allocation19], 1 }

</bundles_post_ra>
